<compile_context>
chip_gen: v7x
topology: tpu7x:2x2x1
jax: 0.10.0
libtpu: 0.0.40
codegen_flags: <defaults>
</compile_context>

<pallas_src>
import math

import jax
import jax.numpy as jnp
import numpy as np
from jax.experimental import pallas as pl
from jax.experimental.pallas import tpu as pltpu


# ---------------------------------------------------------------------------
# Single fused kernel: all layers, both directions, full sequence.
# Weights per layer are stacked over directions and gate-fused:
#   wi: (D, in_dim, 3H)   columns ordered [r | z | n]
#   wh: (D, H,      3H)
#   bi: (D, 1,      3H)
#   bh: (D, 1,      3H)
# x is passed flattened to (T*B, input_size) so no in-kernel reshape is needed.
# ---------------------------------------------------------------------------
def make_encoder_kernel(T, B, H, input_size, num_layers, num_directions):
    D = num_directions
    G = 3 * H

    def kernel(*refs):
        x_ref, h0_ref = refs[0], refs[1]
        n_w = num_layers * 4
        w_refs = refs[2:2 + n_w]
        out_ref, hn_ref = refs[2 + n_w], refs[3 + n_w]
        act_scr = refs[4 + n_w:4 + n_w + D]          # D x VMEM (T*B, H)

        for l in range(num_layers):
            wi_ref, wh_ref, bi_ref, bh_ref = w_refs[4 * l:4 * (l + 1)]

            # ---- hoisted input projection: all timesteps at once, one fused
            #      3H-wide matmul per direction (off the serial critical path).
            if l == 0:
                srcs = [x_ref[...]]                              # (T*B, in)
            else:
                srcs = [act_scr[s][...] for s in range(D)]       # (T*B, H) each

            gi_all = []
            for d in range(D):
                wi_d = wi_ref[d]                                 # (in_dim, 3H)
                acc = None
                off = 0
                for src in srcs:
                    w_part = wi_d[off:off + src.shape[1], :]
                    p = jnp.dot(src, w_part,
                                preferred_element_type=jnp.float32)
                    acc = p if acc is None else acc + p
                    off += src.shape[1]
                gi_all.append(acc + bi_ref[d])                   # (T*B, 3H)

            # Hoist recurrent weights/biases out of the time loop.
            wh_vals = [wh_ref[d] for d in range(D)]              # (H, 3H)
            bh_vals = [bh_ref[d] for d in range(D)]              # (1, 3H)
            h = [h0_ref[l * D + d] for d in range(D)]            # (B, H)

            # ---- sequential GRU recurrence: only h @ Wh per step; fully
            #      unrolled at trace time (T static & small).
            for t in range(T):
                for d in range(D):
                    t_idx = t if d == 0 else T - 1 - t
                    rows = slice(t_idx * B, (t_idx + 1) * B)
                    h_prev = h[d]
                    gi = gi_all[d][rows]                         # (B, 3H)
                    gh = (jnp.dot(h_prev, wh_vals[d],
                                  preferred_element_type=jnp.float32)
                          + bh_vals[d])                          # (B, 3H)
                    r = jax.nn.sigmoid(gi[:, 0:H] + gh[:, 0:H])
                    z = jax.nn.sigmoid(gi[:, H:2 * H] + gh[:, H:2 * H])
                    n = jnp.tanh(gi[:, 2 * H:] + r * gh[:, 2 * H:])
                    h_new = (1.0 - z) * n + z * h_prev
                    act_scr[d][rows, :] = h_new
                    h[d] = h_new

            # Final hidden of this layer (written once, not per step).
            for d in range(D):
                hn_ref[l * D + d] = h[d]

        # ---- single contiguous output writeback (last layer, both dirs) ----
        out_ref[...] = jnp.concatenate([act_scr[d][...] for d in range(D)],
                                       axis=-1)

    return kernel


def encoder_forward(params, x, h0, num_layers, num_directions):
    """Mirrors nn.GRU forward: returns (output, h_n)."""
    T, B, input_size = x.shape
    H = h0.shape[-1]
    D = num_directions
    kernel = make_encoder_kernel(T, B, H, input_size, num_layers, D)

    weight_args = []
    for l in range(num_layers):
        weight_args.extend(params[l])                 # wi, wh, bi, bh

    x2d = x.reshape(T * B, input_size)                # free XLA reshape outside
    out2d, hn = pl.pallas_call(
        kernel,
        out_shape=(jax.ShapeDtypeStruct((T * B, D * H), jnp.float32),
                   jax.ShapeDtypeStruct((num_layers * D, B, H), jnp.float32)),
        scratch_shapes=[pltpu.VMEM((T * B, H), jnp.float32) for _ in range(D)],
    )(x2d, h0, *weight_args)
    return out2d.reshape(T, B, D * H), hn


# ---------------------------------------------------------------------------
# Deterministic parameter init (PyTorch GRU init: U(-1/sqrt(H), 1/sqrt(H))).
# PyTorch weight_ih_l{k}(rev): (3H, in_dim), rows [r; z; n]  -> transpose to
# (in_dim, 3H) with gate-fused columns [r | z | n]; stacked over directions.
# ---------------------------------------------------------------------------
def init_gru_params(key, input_size, hidden_per_dir, num_layers, num_directions):
    params = []
    H = hidden_per_dir
    D = num_directions
    k = 1.0 / math.sqrt(H)
    for l in range(num_layers):
        in_dim = input_size if l == 0 else D * H
        wi_l, wh_l, bi_l, bh_l = [], [], [], []
        for _ in range(D):
            key, k1, k2, k3, k4 = jax.random.split(key, 5)
            w_ih = jax.random.uniform(k1, (3 * H, in_dim), jnp.float32, -k, k)
            w_hh = jax.random.uniform(k2, (3 * H, H), jnp.float32, -k, k)
            b_ih = jax.random.uniform(k3, (3 * H,), jnp.float32, -k, k)
            b_hh = jax.random.uniform(k4, (3 * H,), jnp.float32, -k, k)
            wi_l.append(w_ih.T)                      # (in_dim, 3H)
            wh_l.append(w_hh.T)                      # (H, 3H)
            bi_l.append(b_ih.reshape(1, 3 * H))
            bh_l.append(b_hh.reshape(1, 3 * H))
        params.append((jnp.stack(wi_l), jnp.stack(wh_l),
                       jnp.stack(bi_l), jnp.stack(bh_l)))
    return params


# ---------------------------------------------------------------------------
# Pure-JAX reference (same math, no Pallas) for correctness check.
# ---------------------------------------------------------------------------
def reference_forward(params, x, h0, num_layers, num_directions):
    T, B, _ = x.shape
    H = h0.shape[-1]
    D = num_directions
    layer_in = x
    hn_list = []
    for l in range(num_layers):
        wi, wh, bi, bh = params[l]
        dir_outs = []
        for d in range(D):
            xd = layer_in if d == 0 else layer_in[::-1]
            h_t = h0[l * D + d]
            hs = []
            for t in range(T):
                gi = xd[t] @ wi[d] + bi[d]
                gh = h_t @ wh[d] + bh[d]
                r = jax.nn.sigmoid(gi[:, 0:H] + gh[:, 0:H])
                z = jax.nn.sigmoid(gi[:, H:2 * H] + gh[:, H:2 * H])
                n = jnp.tanh(gi[:, 2 * H:] + r * gh[:, 2 * H:])
                h_t = (1.0 - z) * n + z * h_t
                hs.append(h_t)
            out = jnp.stack(hs, axis=0)
            if d == 1:
                out = out[::-1]
            dir_outs.append(out)
            hn_list.append(h_t)
        layer_in = jnp.concatenate(dir_outs, axis=-1)
    return layer_in, jnp.stack(hn_list, axis=0)


if __name__ == "__main__":
    # Encoder(input_size=8, hidden_size=32, num_layers=2, dropout=0.0,
    #         bidirectional=True)
    input_size = 8
    hidden_size = 32
    num_layers = 2
    bidirectional = True
    num_directions = 2 if bidirectional else 1
    hidden_per_dir = hidden_size // num_directions     # 16

    seq_len, batch = 8, 2

    root = jax.random.PRNGKey(0)
    k_param, k_x, k_h = jax.random.split(root, 3)

    params = init_gru_params(k_param, input_size, hidden_per_dir,
                             num_layers, num_directions)
    x = jax.random.normal(k_x, (seq_len, batch, input_size), jnp.float32)
    h0 = jax.random.normal(
        k_h, (num_layers * num_directions, batch, hidden_per_dir), jnp.float32)

    output, hn = encoder_forward(params, x, h0, num_layers, num_directions)
    output, hn = jax.block_until_ready((output, hn))

    ref_out, ref_hn = reference_forward(params, x, h0, num_layers, num_directions)
    np.testing.assert_allclose(np.asarray(output), np.asarray(ref_out),
                               rtol=1e-2, atol=1e-2)
    np.testing.assert_allclose(np.asarray(hn), np.asarray(ref_hn),
                               rtol=1e-2, atol=1e-2)

    assert output.shape == (seq_len, batch, hidden_size)
    assert hn.shape == (num_layers * num_directions, batch, hidden_per_dir)

    print("KERNEL_OK")
</pallas_src>

<mosaic_0001>
module attributes {stable_mosaic.version = 11 : i64} {
  func.func @kernel(%arg0: memref<16x8xf32, #tpu.memory_space<vmem>>, %arg1: memref<4x2x16xf32, #tpu.memory_space<vmem>>, %arg2: memref<2x8x48xf32, #tpu.memory_space<vmem>>, %arg3: memref<2x16x48xf32, #tpu.memory_space<vmem>>, %arg4: memref<2x1x48xf32, #tpu.memory_space<vmem>>, %arg5: memref<2x1x48xf32, #tpu.memory_space<vmem>>, %arg6: memref<2x32x48xf32, #tpu.memory_space<vmem>>, %arg7: memref<2x16x48xf32, #tpu.memory_space<vmem>>, %arg8: memref<2x1x48xf32, #tpu.memory_space<vmem>>, %arg9: memref<2x1x48xf32, #tpu.memory_space<vmem>>, %arg10: memref<16x32xf32, #tpu.memory_space<vmem>>, %arg11: memref<4x2x16xf32, #tpu.memory_space<vmem>>, %arg12: memref<16x16xf32, #tpu.memory_space<vmem>>, %arg13: memref<16x16xf32, #tpu.memory_space<vmem>>) attributes {dimension_semantics = [], scalar_prefetch = 0 : i64, scratch_operands = 2 : i64, tpu.core_type = #tpu.core_type<tc>} {
    %c0 = arith.constant 0 : index
    %c0_0 = arith.constant 0 : index
    %0 = vector.load %arg0[%c0, %c0_0] : memref<16x8xf32, #tpu.memory_space<vmem>>, vector<16x8xf32>
    %c0_1 = arith.constant 0 : index
    %c0_2 = arith.constant 0 : index
    %c0_3 = arith.constant 0 : index
    %1 = vector.load %arg2[%c0_1, %c0_2, %c0_3] : memref<2x8x48xf32, #tpu.memory_space<vmem>>, vector<1x8x48xf32>
    %2 = vector.shape_cast %1 : vector<1x8x48xf32> to vector<8x48xf32>
    %cst = arith.constant dense<0.000000e+00> : vector<16x48xf32>
    %3 = tpu.matmul %0, %2, %cst {dimension_numbers = #tpu.dot_dimension_numbers<[1], [0], [0], [1], [0, 0, 1, 1], [], []>} : vector<16x8xf32>, vector<8x48xf32>, vector<16x48xf32> -> vector<16x48xf32>
    %c0_4 = arith.constant 0 : index
    %c0_5 = arith.constant 0 : index
    %c0_6 = arith.constant 0 : index
    %4 = vector.load %arg4[%c0_4, %c0_5, %c0_6] : memref<2x1x48xf32, #tpu.memory_space<vmem>>, vector<1x1x48xf32>
    %5 = vector.shape_cast %4 : vector<1x1x48xf32> to vector<1x48xf32>
    %6 = vector.broadcast %5 : vector<1x48xf32> to vector<16x48xf32>
    %7 = arith.addf %3, %6 : vector<16x48xf32>
    %c1 = arith.constant 1 : index
    %c0_7 = arith.constant 0 : index
    %c0_8 = arith.constant 0 : index
    %8 = vector.load %arg2[%c1, %c0_7, %c0_8] : memref<2x8x48xf32, #tpu.memory_space<vmem>>, vector<1x8x48xf32>
    %9 = vector.shape_cast %8 : vector<1x8x48xf32> to vector<8x48xf32>
    %cst_9 = arith.constant dense<0.000000e+00> : vector<16x48xf32>
    %10 = tpu.matmul %0, %9, %cst_9 {dimension_numbers = #tpu.dot_dimension_numbers<[1], [0], [0], [1], [0, 0, 1, 1], [], []>} : vector<16x8xf32>, vector<8x48xf32>, vector<16x48xf32> -> vector<16x48xf32>
    %c1_10 = arith.constant 1 : index
    %c0_11 = arith.constant 0 : index
    %c0_12 = arith.constant 0 : index
    %11 = vector.load %arg4[%c1_10, %c0_11, %c0_12] : memref<2x1x48xf32, #tpu.memory_space<vmem>>, vector<1x1x48xf32>
    %12 = vector.shape_cast %11 : vector<1x1x48xf32> to vector<1x48xf32>
    %13 = vector.broadcast %12 : vector<1x48xf32> to vector<16x48xf32>
    %14 = arith.addf %10, %13 : vector<16x48xf32>
    %c0_13 = arith.constant 0 : index
    %c0_14 = arith.constant 0 : index
    %c0_15 = arith.constant 0 : index
    %15 = vector.load %arg3[%c0_13, %c0_14, %c0_15] : memref<2x16x48xf32, #tpu.memory_space<vmem>>, vector<1x16x48xf32>
    %16 = vector.shape_cast %15 : vector<1x16x48xf32> to vector<16x48xf32>
    %c1_16 = arith.constant 1 : index
    %c0_17 = arith.constant 0 : index
    %c0_18 = arith.constant 0 : index
    %17 = vector.load %arg3[%c1_16, %c0_17, %c0_18] : memref<2x16x48xf32, #tpu.memory_space<vmem>>, vector<1x16x48xf32>
    %18 = vector.shape_cast %17 : vector<1x16x48xf32> to vector<16x48xf32>
    %c0_19 = arith.constant 0 : index
    %c0_20 = arith.constant 0 : index
    %c0_21 = arith.constant 0 : index
    %19 = vector.load %arg5[%c0_19, %c0_20, %c0_21] : memref<2x1x48xf32, #tpu.memory_space<vmem>>, vector<1x1x48xf32>
    %20 = vector.shape_cast %19 : vector<1x1x48xf32> to vector<1x48xf32>
    %c1_22 = arith.constant 1 : index
    %c0_23 = arith.constant 0 : index
    %c0_24 = arith.constant 0 : index
    %21 = vector.load %arg5[%c1_22, %c0_23, %c0_24] : memref<2x1x48xf32, #tpu.memory_space<vmem>>, vector<1x1x48xf32>
    %22 = vector.shape_cast %21 : vector<1x1x48xf32> to vector<1x48xf32>
    %c0_25 = arith.constant 0 : index
    %c0_26 = arith.constant 0 : index
    %c0_27 = arith.constant 0 : index
    %23 = vector.load %arg1[%c0_25, %c0_26, %c0_27] : memref<4x2x16xf32, #tpu.memory_space<vmem>>, vector<1x2x16xf32>
    %24 = vector.shape_cast %23 : vector<1x2x16xf32> to vector<2x16xf32>
    %c1_28 = arith.constant 1 : index
    %c0_29 = arith.constant 0 : index
    %c0_30 = arith.constant 0 : index
    %25 = vector.load %arg1[%c1_28, %c0_29, %c0_30] : memref<4x2x16xf32, #tpu.memory_space<vmem>>, vector<1x2x16xf32>
    %26 = vector.shape_cast %25 : vector<1x2x16xf32> to vector<2x16xf32>
    %27 = vector.extract_strided_slice %7 {offsets = [0, 0], sizes = [2, 48], strides = [1, 1]} : vector<16x48xf32> to vector<2x48xf32>
    %cst_31 = arith.constant dense<0.000000e+00> : vector<2x48xf32>
    %28 = tpu.matmul %24, %16, %cst_31 {dimension_numbers = #tpu.dot_dimension_numbers<[1], [0], [0], [1], [0, 0, 1, 1], [], []>} : vector<2x16xf32>, vector<16x48xf32>, vector<2x48xf32> -> vector<2x48xf32>
    %29 = vector.broadcast %20 : vector<1x48xf32> to vector<2x48xf32>
    %30 = arith.addf %28, %29 : vector<2x48xf32>
    %31 = vector.extract_strided_slice %27 {offsets = [0, 0], sizes = [2, 16], strides = [1, 1]} : vector<2x48xf32> to vector<2x16xf32>
    %32 = vector.extract_strided_slice %30 {offsets = [0, 0], sizes = [2, 16], strides = [1, 1]} : vector<2x48xf32> to vector<2x16xf32>
    %33 = arith.addf %31, %32 : vector<2x16xf32>
    %34 = arith.negf %33 : vector<2x16xf32>
    %35 = math.exp %34 : vector<2x16xf32>
    %cst_32 = arith.constant 1.000000e+00 : f32
    %36 = vector.broadcast %cst_32 : f32 to vector<2x16xf32>
    %37 = arith.addf %36, %35 : vector<2x16xf32>
    %38 = arith.divf %36, %37 : vector<2x16xf32>
    %39 = vector.extract_strided_slice %27 {offsets = [0, 16], sizes = [2, 16], strides = [1, 1]} : vector<2x48xf32> to vector<2x16xf32>
    %40 = vector.extract_strided_slice %30 {offsets = [0, 16], sizes = [2, 16], strides = [1, 1]} : vector<2x48xf32> to vector<2x16xf32>
    %41 = arith.addf %39, %40 : vector<2x16xf32>
    %42 = arith.negf %41 : vector<2x16xf32>
    %43 = math.exp %42 : vector<2x16xf32>
    %cst_33 = arith.constant 1.000000e+00 : f32
    %44 = vector.broadcast %cst_33 : f32 to vector<2x16xf32>
    %45 = arith.addf %44, %43 : vector<2x16xf32>
    %46 = arith.divf %44, %45 : vector<2x16xf32>
    %47 = vector.extract_strided_slice %27 {offsets = [0, 32], sizes = [2, 16], strides = [1, 1]} : vector<2x48xf32> to vector<2x16xf32>
    %48 = vector.extract_strided_slice %30 {offsets = [0, 32], sizes = [2, 16], strides = [1, 1]} : vector<2x48xf32> to vector<2x16xf32>
    %49 = arith.mulf %38, %48 : vector<2x16xf32>
    %50 = arith.addf %47, %49 : vector<2x16xf32>
    %51 = math.tanh %50 : vector<2x16xf32>
    %cst_34 = arith.constant 1.000000e+00 : f32
    %52 = vector.broadcast %cst_34 : f32 to vector<2x16xf32>
    %53 = arith.subf %52, %46 : vector<2x16xf32>
    %54 = arith.mulf %53, %51 : vector<2x16xf32>
    %55 = arith.mulf %46, %24 : vector<2x16xf32>
    %56 = arith.addf %54, %55 : vector<2x16xf32>
    %c0_35 = arith.constant 0 : index
    %c0_36 = arith.constant 0 : index
    %57 = vector.load %arg12[%c0_35, %c0_36] : memref<16x16xf32, #tpu.memory_space<vmem>>, vector<2x16xf32>
    tpu.vector_store %arg12[%c0_35, %c0_36], %56 {strides = array<i32>} : memref<16x16xf32, #tpu.memory_space<vmem>>, vector<2x16xf32>,
    %58 = vector.extract_strided_slice %14 {offsets = [14, 0], sizes = [2, 48], strides = [1, 1]} : vector<16x48xf32> to vector<2x48xf32>
    %cst_37 = arith.constant dense<0.000000e+00> : vector<2x48xf32>
    %59 = tpu.matmul %26, %18, %cst_37 {dimension_numbers = #tpu.dot_dimension_numbers<[1], [0], [0], [1], [0, 0, 1, 1], [], []>} : vector<2x16xf32>, vector<16x48xf32>, vector<2x48xf32> -> vector<2x48xf32>
    %60 = vector.broadcast %22 : vector<1x48xf32> to vector<2x48xf32>
    %61 = arith.addf %59, %60 : vector<2x48xf32>
    %62 = vector.extract_strided_slice %58 {offsets = [0, 0], sizes = [2, 16], strides = [1, 1]} : vector<2x48xf32> to vector<2x16xf32>
    %63 = vector.extract_strided_slice %61 {offsets = [0, 0], sizes = [2, 16], strides = [1, 1]} : vector<2x48xf32> to vector<2x16xf32>
    %64 = arith.addf %62, %63 : vector<2x16xf32>
    %65 = arith.negf %64 : vector<2x16xf32>
    %66 = math.exp %65 : vector<2x16xf32>
    %cst_38 = arith.constant 1.000000e+00 : f32
    %67 = vector.broadcast %cst_38 : f32 to vector<2x16xf32>
    %68 = arith.addf %67, %66 : vector<2x16xf32>
    %69 = arith.divf %67, %68 : vector<2x16xf32>
    %70 = vector.extract_strided_slice %58 {offsets = [0, 16], sizes = [2, 16], strides = [1, 1]} : vector<2x48xf32> to vector<2x16xf32>
    %71 = vector.extract_strided_slice %61 {offsets = [0, 16], sizes = [2, 16], strides = [1, 1]} : vector<2x48xf32> to vector<2x16xf32>
    %72 = arith.addf %70, %71 : vector<2x16xf32>
    %73 = arith.negf %72 : vector<2x16xf32>
    %74 = math.exp %73 : vector<2x16xf32>
    %cst_39 = arith.constant 1.000000e+00 : f32
    %75 = vector.broadcast %cst_39 : f32 to vector<2x16xf32>
    %76 = arith.addf %75, %74 : vector<2x16xf32>
    %77 = arith.divf %75, %76 : vector<2x16xf32>
    %78 = vector.extract_strided_slice %58 {offsets = [0, 32], sizes = [2, 16], strides = [1, 1]} : vector<2x48xf32> to vector<2x16xf32>
    %79 = vector.extract_strided_slice %61 {offsets = [0, 32], sizes = [2, 16], strides = [1, 1]} : vector<2x48xf32> to vector<2x16xf32>
    %80 = arith.mulf %69, %79 : vector<2x16xf32>
    %81 = arith.addf %78, %80 : vector<2x16xf32>
    %82 = math.tanh %81 : vector<2x16xf32>
    %cst_40 = arith.constant 1.000000e+00 : f32
    %83 = vector.broadcast %cst_40 : f32 to vector<2x16xf32>
    %84 = arith.subf %83, %77 : vector<2x16xf32>
    %85 = arith.mulf %84, %82 : vector<2x16xf32>
    %86 = arith.mulf %77, %26 : vector<2x16xf32>
    %87 = arith.addf %85, %86 : vector<2x16xf32>
    %c14 = arith.constant 14 : index
    %c0_41 = arith.constant 0 : index
    %88 = vector.load %arg13[%c14, %c0_41] : memref<16x16xf32, #tpu.memory_space<vmem>>, vector<2x16xf32>
    tpu.vector_store %arg13[%c14, %c0_41], %87 {strides = array<i32>} : memref<16x16xf32, #tpu.memory_space<vmem>>, vector<2x16xf32>,
    %89 = vector.extract_strided_slice %7 {offsets = [2, 0], sizes = [2, 48], strides = [1, 1]} : vector<16x48xf32> to vector<2x48xf32>
    %cst_42 = arith.constant dense<0.000000e+00> : vector<2x48xf32>
    %90 = tpu.matmul %56, %16, %cst_42 {dimension_numbers = #tpu.dot_dimension_numbers<[1], [0], [0], [1], [0, 0, 1, 1], [], []>} : vector<2x16xf32>, vector<16x48xf32>, vector<2x48xf32> -> vector<2x48xf32>
    %91 = vector.broadcast %20 : vector<1x48xf32> to vector<2x48xf32>
    %92 = arith.addf %90, %91 : vector<2x48xf32>
    %93 = vector.extract_strided_slice %89 {offsets = [0, 0], sizes = [2, 16], strides = [1, 1]} : vector<2x48xf32> to vector<2x16xf32>
    %94 = vector.extract_strided_slice %92 {offsets = [0, 0], sizes = [2, 16], strides = [1, 1]} : vector<2x48xf32> to vector<2x16xf32>
    %95 = arith.addf %93, %94 : vector<2x16xf32>
    %96 = arith.negf %95 : vector<2x16xf32>
    %97 = math.exp %96 : vector<2x16xf32>
    %cst_43 = arith.constant 1.000000e+00 : f32
    %98 = vector.broadcast %cst_43 : f32 to vector<2x16xf32>
    %99 = arith.addf %98, %97 : vector<2x16xf32>
    %100 = arith.divf %98, %99 : vector<2x16xf32>
    %101 = vector.extract_strided_slice %89 {offsets = [0, 16], sizes = [2, 16], strides = [1, 1]} : vector<2x48xf32> to vector<2x16xf32>
    %102 = vector.extract_strided_slice %92 {offsets = [0, 16], sizes = [2, 16], strides = [1, 1]} : vector<2x48xf32> to vector<2x16xf32>
    %103 = arith.addf %101, %102 : vector<2x16xf32>
    %104 = arith.negf %103 : vector<2x16xf32>
    %105 = math.exp %104 : vector<2x16xf32>
    %cst_44 = arith.constant 1.000000e+00 : f32
    %106 = vector.broadcast %cst_44 : f32 to vector<2x16xf32>
    %107 = arith.addf %106, %105 : vector<2x16xf32>
    %108 = arith.divf %106, %107 : vector<2x16xf32>
    %109 = vector.extract_strided_slice %89 {offsets = [0, 32], sizes = [2, 16], strides = [1, 1]} : vector<2x48xf32> to vector<2x16xf32>
    %110 = vector.extract_strided_slice %92 {offsets = [0, 32], sizes = [2, 16], strides = [1, 1]} : vector<2x48xf32> to vector<2x16xf32>
    %111 = arith.mulf %100, %110 : vector<2x16xf32>
    %112 = arith.addf %109, %111 : vector<2x16xf32>
    %113 = math.tanh %112 : vector<2x16xf32>
    %cst_45 = arith.constant 1.000000e+00 : f32
    %114 = vector.broadcast %cst_45 : f32 to vector<2x16xf32>
    %115 = arith.subf %114, %108 : vector<2x16xf32>
    %116 = arith.mulf %115, %113 : vector<2x16xf32>
    %117 = arith.mulf %108, %56 : vector<2x16xf32>
    %118 = arith.addf %116, %117 : vector<2x16xf32>
    %c2 = arith.constant 2 : index
    %c0_46 = arith.constant 0 : index
    %119 = vector.load %arg12[%c2, %c0_46] : memref<16x16xf32, #tpu.memory_space<vmem>>, vector<2x16xf32>
    tpu.vector_store %arg12[%c2, %c0_46], %118 {strides = array<i32>} : memref<16x16xf32, #tpu.memory_space<vmem>>, vector<2x16xf32>,
    %120 = vector.extract_strided_slice %14 {offsets = [12, 0], sizes = [2, 48], strides = [1, 1]} : vector<16x48xf32> to vector<2x48xf32>
    %cst_47 = arith.constant dense<0.000000e+00> : vector<2x48xf32>
    %121 = tpu.matmul %87, %18, %cst_47 {dimension_numbers = #tpu.dot_dimension_numbers<[1], [0], [0], [1], [0, 0, 1, 1], [], []>} : vector<2x16xf32>, vector<16x48xf32>, vector<2x48xf32> -> vector<2x48xf32>
    %122 = vector.broadcast %22 : vector<1x48xf32> to vector<2x48xf32>
    %123 = arith.addf %121, %122 : vector<2x48xf32>
    %124 = vector.extract_strided_slice %120 {offsets = [0, 0], sizes = [2, 16], strides = [1, 1]} : vector<2x48xf32> to vector<2x16xf32>
    %125 = vector.extract_strided_slice %123 {offsets = [0, 0], sizes = [2, 16], strides = [1, 1]} : vector<2x48xf32> to vector<2x16xf32>
    %126 = arith.addf %124, %125 : vector<2x16xf32>
    %127 = arith.negf %126 : vector<2x16xf32>
    %128 = math.exp %127 : vector<2x16xf32>
    %cst_48 = arith.constant 1.000000e+00 : f32
    %129 = vector.broadcast %cst_48 : f32 to vector<2x16xf32>
    %130 = arith.addf %129, %128 : vector<2x16xf32>
    %131 = arith.divf %129, %130 : vector<2x16xf32>
    %132 = vector.extract_strided_slice %120 {offsets = [0, 16], sizes = [2, 16], strides = [1, 1]} : vector<2x48xf32> to vector<2x16xf32>
    %133 = vector.extract_strided_slice %123 {offsets = [0, 16], sizes = [2, 16], strides = [1, 1]} : vector<2x48xf32> to vector<2x16xf32>
    %134 = arith.addf %132, %133 : vector<2x16xf32>
    %135 = arith.negf %134 : vector<2x16xf32>
    %136 = math.exp %135 : vector<2x16xf32>
    %cst_49 = arith.constant 1.000000e+00 : f32
    %137 = vector.broadcast %cst_49 : f32 to vector<2x16xf32>
    %138 = arith.addf %137, %136 : vector<2x16xf32>
    %139 = arith.divf %137, %138 : vector<2x16xf32>
    %140 = vector.extract_strided_slice %120 {offsets = [0, 32], sizes = [2, 16], strides = [1, 1]} : vector<2x48xf32> to vector<2x16xf32>
    %141 = vector.extract_strided_slice %123 {offsets = [0, 32], sizes = [2, 16], strides = [1, 1]} : vector<2x48xf32> to vector<2x16xf32>
    %142 = arith.mulf %131, %141 : vector<2x16xf32>
    %143 = arith.addf %140, %142 : vector<2x16xf32>
    %144 = math.tanh %143 : vector<2x16xf32>
    %cst_50 = arith.constant 1.000000e+00 : f32
    %145 = vector.broadcast %cst_50 : f32 to vector<2x16xf32>
    %146 = arith.subf %145, %139 : vector<2x16xf32>
    %147 = arith.mulf %146, %144 : vector<2x16xf32>
    %148 = arith.mulf %139, %87 : vector<2x16xf32>
    %149 = arith.addf %147, %148 : vector<2x16xf32>
    %c12 = arith.constant 12 : index
    %c0_51 = arith.constant 0 : index
    %150 = vector.load %arg13[%c12, %c0_51] : memref<16x16xf32, #tpu.memory_space<vmem>>, vector<2x16xf32>
    tpu.vector_store %arg13[%c12, %c0_51], %149 {strides = array<i32>} : memref<16x16xf32, #tpu.memory_space<vmem>>, vector<2x16xf32>,
    %151 = vector.extract_strided_slice %7 {offsets = [4, 0], sizes = [2, 48], strides = [1, 1]} : vector<16x48xf32> to vector<2x48xf32>
    %cst_52 = arith.constant dense<0.000000e+00> : vector<2x48xf32>
    %152 = tpu.matmul %118, %16, %cst_52 {dimension_numbers = #tpu.dot_dimension_numbers<[1], [0], [0], [1], [0, 0, 1, 1], [], []>} : vector<2x16xf32>, vector<16x48xf32>, vector<2x48xf32> -> vector<2x48xf32>
    %153 = vector.broadcast %20 : vector<1x48xf32> to vector<2x48xf32>
    %154 = arith.addf %152, %153 : vector<2x48xf32>
    %155 = vector.extract_strided_slice %151 {offsets = [0, 0], sizes = [2, 16], strides = [1, 1]} : vector<2x48xf32> to vector<2x16xf32>
    %156 = vector.extract_strided_slice %154 {offsets = [0, 0], sizes = [2, 16], strides = [1, 1]} : vector<2x48xf32> to vector<2x16xf32>
    %157 = arith.addf %155, %156 : vector<2x16xf32>
    %158 = arith.negf %157 : vector<2x16xf32>
    %159 = math.exp %158 : vector<2x16xf32>
    %cst_53 = arith.constant 1.000000e+00 : f32
    %160 = vector.broadcast %cst_53 : f32 to vector<2x16xf32>
    %161 = arith.addf %160, %159 : vector<2x16xf32>
    %162 = arith.divf %160, %161 : vector<2x16xf32>
    %163 = vector.extract_strided_slice %151 {offsets = [0, 16], sizes = [2, 16], strides = [1, 1]} : vector<2x48xf32> to vector<2x16xf32>
    %164 = vector.extract_strided_slice %154 {offsets = [0, 16], sizes = [2, 16], strides = [1, 1]} : vector<2x48xf32> to vector<2x16xf32>
    %165 = arith.addf %163, %164 : vector<2x16xf32>
    %166 = arith.negf %165 : vector<2x16xf32>
    %167 = math.exp %166 : vector<2x16xf32>
    %cst_54 = arith.constant 1.000000e+00 : f32
    %168 = vector.broadcast %cst_54 : f32 to vector<2x16xf32>
    %169 = arith.addf %168, %167 : vector<2x16xf32>
    %170 = arith.divf %168, %169 : vector<2x16xf32>
    %171 = vector.extract_strided_slice %151 {offsets = [0, 32], sizes = [2, 16], strides = [1, 1]} : vector<2x48xf32> to vector<2x16xf32>
    %172 = vector.extract_strided_slice %154 {offsets = [0, 32], sizes = [2, 16], strides = [1, 1]} : vector<2x48xf32> to vector<2x16xf32>
    %173 = arith.mulf %162, %172 : vector<2x16xf32>
    %174 = arith.addf %171, %173 : vector<2x16xf32>
    %175 = math.tanh %174 : vector<2x16xf32>
    %cst_55 = arith.constant 1.000000e+00 : f32
    %176 = vector.broadcast %cst_55 : f32 to vector<2x16xf32>
    %177 = arith.subf %176, %170 : vector<2x16xf32>
    %178 = arith.mulf %177, %175 : vector<2x16xf32>
    %179 = arith.mulf %170, %118 : vector<2x16xf32>
    %180 = arith.addf %178, %179 : vector<2x16xf32>
    %c4 = arith.constant 4 : index
    %c0_56 = arith.constant 0 : index
    %181 = vector.load %arg12[%c4, %c0_56] : memref<16x16xf32, #tpu.memory_space<vmem>>, vector<2x16xf32>
    tpu.vector_store %arg12[%c4, %c0_56], %180 {strides = array<i32>} : memref<16x16xf32, #tpu.memory_space<vmem>>, vector<2x16xf32>,
    %182 = vector.extract_strided_slice %14 {offsets = [10, 0], sizes = [2, 48], strides = [1, 1]} : vector<16x48xf32> to vector<2x48xf32>
    %cst_57 = arith.constant dense<0.000000e+00> : vector<2x48xf32>
    %183 = tpu.matmul %149, %18, %cst_57 {dimension_numbers = #tpu.dot_dimension_numbers<[1], [0], [0], [1], [0, 0, 1, 1], [], []>} : vector<2x16xf32>, vector<16x48xf32>, vector<2x48xf32> -> vector<2x48xf32>
    %184 = vector.broadcast %22 : vector<1x48xf32> to vector<2x48xf32>
    %185 = arith.addf %183, %184 : vector<2x48xf32>
    %186 = vector.extract_strided_slice %182 {offsets = [0, 0], sizes = [2, 16], strides = [1, 1]} : vector<2x48xf32> to vector<2x16xf32>
    %187 = vector.extract_strided_slice %185 {offsets = [0, 0], sizes = [2, 16], strides = [1, 1]} : vector<2x48xf32> to vector<2x16xf32>
    %188 = arith.addf %186, %187 : vector<2x16xf32>
    %189 = arith.negf %188 : vector<2x16xf32>
    %190 = math.exp %189 : vector<2x16xf32>
    %cst_58 = arith.constant 1.000000e+00 : f32
    %191 = vector.broadcast %cst_58 : f32 to vector<2x16xf32>
    %192 = arith.addf %191, %190 : vector<2x16xf32>
    %193 = arith.divf %191, %192 : vector<2x16xf32>
    %194 = vector.extract_strided_slice %182 {offsets = [0, 16], sizes = [2, 16], strides = [1, 1]} : vector<2x48xf32> to vector<2x16xf32>
    %195 = vector.extract_strided_slice %185 {offsets = [0, 16], sizes = [2, 16], strides = [1, 1]} : vector<2x48xf32> to vector<2x16xf32>
    %196 = arith.addf %194, %195 : vector<2x16xf32>
    %197 = arith.negf %196 : vector<2x16xf32>
    %198 = math.exp %197 : vector<2x16xf32>
    %cst_59 = arith.constant 1.000000e+00 : f32
    %199 = vector.broadcast %cst_59 : f32 to vector<2x16xf32>
    %200 = arith.addf %199, %198 : vector<2x16xf32>
    %201 = arith.divf %199, %200 : vector<2x16xf32>
    %202 = vector.extract_strided_slice %182 {offsets = [0, 32], sizes = [2, 16], strides = [1, 1]} : vector<2x48xf32> to vector<2x16xf32>
    %203 = vector.extract_strided_slice %185 {offsets = [0, 32], sizes = [2, 16], strides = [1, 1]} : vector<2x48xf32> to vector<2x16xf32>
    %204 = arith.mulf %193, %203 : vector<2x16xf32>
    %205 = arith.addf %202, %204 : vector<2x16xf32>
    %206 = math.tanh %205 : vector<2x16xf32>
    %cst_60 = arith.constant 1.000000e+00 : f32
    %207 = vector.broadcast %cst_60 : f32 to vector<2x16xf32>
    %208 = arith.subf %207, %201 : vector<2x16xf32>
    %209 = arith.mulf %208, %206 : vector<2x16xf32>
    %210 = arith.mulf %201, %149 : vector<2x16xf32>
    %211 = arith.addf %209, %210 : vector<2x16xf32>
    %c10 = arith.constant 10 : index
    %c0_61 = arith.constant 0 : index
    %212 = vector.load %arg13[%c10, %c0_61] : memref<16x16xf32, #tpu.memory_space<vmem>>, vector<2x16xf32>
    tpu.vector_store %arg13[%c10, %c0_61], %211 {strides = array<i32>} : memref<16x16xf32, #tpu.memory_space<vmem>>, vector<2x16xf32>,
    %213 = vector.extract_strided_slice %7 {offsets = [6, 0], sizes = [2, 48], strides = [1, 1]} : vector<16x48xf32> to vector<2x48xf32>
    %cst_62 = arith.constant dense<0.000000e+00> : vector<2x48xf32>
    %214 = tpu.matmul %180, %16, %cst_62 {dimension_numbers = #tpu.dot_dimension_numbers<[1], [0], [0], [1], [0, 0, 1, 1], [], []>} : vector<2x16xf32>, vector<16x48xf32>, vector<2x48xf32> -> vector<2x48xf32>
    %215 = vector.broadcast %20 : vector<1x48xf32> to vector<2x48xf32>
    %216 = arith.addf %214, %215 : vector<2x48xf32>
    %217 = vector.extract_strided_slice %213 {offsets = [0, 0], sizes = [2, 16], strides = [1, 1]} : vector<2x48xf32> to vector<2x16xf32>
    %218 = vector.extract_strided_slice %216 {offsets = [0, 0], sizes = [2, 16], strides = [1, 1]} : vector<2x48xf32> to vector<2x16xf32>
    %219 = arith.addf %217, %218 : vector<2x16xf32>
    %220 = arith.negf %219 : vector<2x16xf32>
    %221 = math.exp %220 : vector<2x16xf32>
    %cst_63 = arith.constant 1.000000e+00 : f32
    %222 = vector.broadcast %cst_63 : f32 to vector<2x16xf32>
    %223 = arith.addf %222, %221 : vector<2x16xf32>
    %224 = arith.divf %222, %223 : vector<2x16xf32>
    %225 = vector.extract_strided_slice %213 {offsets = [0, 16], sizes = [2, 16], strides = [1, 1]} : vector<2x48xf32> to vector<2x16xf32>
    %226 = vector.extract_strided_slice %216 {offsets = [0, 16], sizes = [2, 16], strides = [1, 1]} : vector<2x48xf32> to vector<2x16xf32>
    %227 = arith.addf %225, %226 : vector<2x16xf32>
    %228 = arith.negf %227 : vector<2x16xf32>
    %229 = math.exp %228 : vector<2x16xf32>
    %cst_64 = arith.constant 1.000000e+00 : f32
    %230 = vector.broadcast %cst_64 : f32 to vector<2x16xf32>
    %231 = arith.addf %230, %229 : vector<2x16xf32>
    %232 = arith.divf %230, %231 : vector<2x16xf32>
    %233 = vector.extract_strided_slice %213 {offsets = [0, 32], sizes = [2, 16], strides = [1, 1]} : vector<2x48xf32> to vector<2x16xf32>
    %234 = vector.extract_strided_slice %216 {offsets = [0, 32], sizes = [2, 16], strides = [1, 1]} : vector<2x48xf32> to vector<2x16xf32>
    %235 = arith.mulf %224, %234 : vector<2x16xf32>
    %236 = arith.addf %233, %235 : vector<2x16xf32>
    %237 = math.tanh %236 : vector<2x16xf32>
    %cst_65 = arith.constant 1.000000e+00 : f32
    %238 = vector.broadcast %cst_65 : f32 to vector<2x16xf32>
    %239 = arith.subf %238, %232 : vector<2x16xf32>
    %240 = arith.mulf %239, %237 : vector<2x16xf32>
    %241 = arith.mulf %232, %180 : vector<2x16xf32>
    %242 = arith.addf %240, %241 : vector<2x16xf32>
    %c6 = arith.constant 6 : index
    %c0_66 = arith.constant 0 : index
    %243 = vector.load %arg12[%c6, %c0_66] : memref<16x16xf32, #tpu.memory_space<vmem>>, vector<2x16xf32>
    tpu.vector_store %arg12[%c6, %c0_66], %242 {strides = array<i32>} : memref<16x16xf32, #tpu.memory_space<vmem>>, vector<2x16xf32>,
    %244 = vector.extract_strided_slice %14 {offsets = [8, 0], sizes = [2, 48], strides = [1, 1]} : vector<16x48xf32> to vector<2x48xf32>
    %cst_67 = arith.constant dense<0.000000e+00> : vector<2x48xf32>
    %245 = tpu.matmul %211, %18, %cst_67 {dimension_numbers = #tpu.dot_dimension_numbers<[1], [0], [0], [1], [0, 0, 1, 1], [], []>} : vector<2x16xf32>, vector<16x48xf32>, vector<2x48xf32> -> vector<2x48xf32>
    %246 = vector.broadcast %22 : vector<1x48xf32> to vector<2x48xf32>
    %247 = arith.addf %245, %246 : vector<2x48xf32>
    %248 = vector.extract_strided_slice %244 {offsets = [0, 0], sizes = [2, 16], strides = [1, 1]} : vector<2x48xf32> to vector<2x16xf32>
    %249 = vector.extract_strided_slice %247 {offsets = [0, 0], sizes = [2, 16], strides = [1, 1]} : vector<2x48xf32> to vector<2x16xf32>
    %250 = arith.addf %248, %249 : vector<2x16xf32>
    %251 = arith.negf %250 : vector<2x16xf32>
    %252 = math.exp %251 : vector<2x16xf32>
    %cst_68 = arith.constant 1.000000e+00 : f32
    %253 = vector.broadcast %cst_68 : f32 to vector<2x16xf32>
    %254 = arith.addf %253, %252 : vector<2x16xf32>
    %255 = arith.divf %253, %254 : vector<2x16xf32>
    %256 = vector.extract_strided_slice %244 {offsets = [0, 16], sizes = [2, 16], strides = [1, 1]} : vector<2x48xf32> to vector<2x16xf32>
    %257 = vector.extract_strided_slice %247 {offsets = [0, 16], sizes = [2, 16], strides = [1, 1]} : vector<2x48xf32> to vector<2x16xf32>
    %258 = arith.addf %256, %257 : vector<2x16xf32>
    %259 = arith.negf %258 : vector<2x16xf32>
    %260 = math.exp %259 : vector<2x16xf32>
    %cst_69 = arith.constant 1.000000e+00 : f32
    %261 = vector.broadcast %cst_69 : f32 to vector<2x16xf32>
    %262 = arith.addf %261, %260 : vector<2x16xf32>
    %263 = arith.divf %261, %262 : vector<2x16xf32>
    %264 = vector.extract_strided_slice %244 {offsets = [0, 32], sizes = [2, 16], strides = [1, 1]} : vector<2x48xf32> to vector<2x16xf32>
    %265 = vector.extract_strided_slice %247 {offsets = [0, 32], sizes = [2, 16], strides = [1, 1]} : vector<2x48xf32> to vector<2x16xf32>
    %266 = arith.mulf %255, %265 : vector<2x16xf32>
    %267 = arith.addf %264, %266 : vector<2x16xf32>
    %268 = math.tanh %267 : vector<2x16xf32>
    %cst_70 = arith.constant 1.000000e+00 : f32
    %269 = vector.broadcast %cst_70 : f32 to vector<2x16xf32>
    %270 = arith.subf %269, %263 : vector<2x16xf32>
    %271 = arith.mulf %270, %268 : vector<2x16xf32>
    %272 = arith.mulf %263, %211 : vector<2x16xf32>
    %273 = arith.addf %271, %272 : vector<2x16xf32>
    %c8 = arith.constant 8 : index
    %c0_71 = arith.constant 0 : index
    %274 = vector.load %arg13[%c8, %c0_71] : memref<16x16xf32, #tpu.memory_space<vmem>>, vector<2x16xf32>
    tpu.vector_store %arg13[%c8, %c0_71], %273 {strides = array<i32>} : memref<16x16xf32, #tpu.memory_space<vmem>>, vector<2x16xf32>,
    %275 = vector.extract_strided_slice %7 {offsets = [8, 0], sizes = [2, 48], strides = [1, 1]} : vector<16x48xf32> to vector<2x48xf32>
    %cst_72 = arith.constant dense<0.000000e+00> : vector<2x48xf32>
    %276 = tpu.matmul %242, %16, %cst_72 {dimension_numbers = #tpu.dot_dimension_numbers<[1], [0], [0], [1], [0, 0, 1, 1], [], []>} : vector<2x16xf32>, vector<16x48xf32>, vector<2x48xf32> -> vector<2x48xf32>
    %277 = vector.broadcast %20 : vector<1x48xf32> to vector<2x48xf32>
    %278 = arith.addf %276, %277 : vector<2x48xf32>
    %279 = vector.extract_strided_slice %275 {offsets = [0, 0], sizes = [2, 16], strides = [1, 1]} : vector<2x48xf32> to vector<2x16xf32>
    %280 = vector.extract_strided_slice %278 {offsets = [0, 0], sizes = [2, 16], strides = [1, 1]} : vector<2x48xf32> to vector<2x16xf32>
    %281 = arith.addf %279, %280 : vector<2x16xf32>
    %282 = arith.negf %281 : vector<2x16xf32>
    %283 = math.exp %282 : vector<2x16xf32>
    %cst_73 = arith.constant 1.000000e+00 : f32
    %284 = vector.broadcast %cst_73 : f32 to vector<2x16xf32>
    %285 = arith.addf %284, %283 : vector<2x16xf32>
    %286 = arith.divf %284, %285 : vector<2x16xf32>
    %287 = vector.extract_strided_slice %275 {offsets = [0, 16], sizes = [2, 16], strides = [1, 1]} : vector<2x48xf32> to vector<2x16xf32>
    %288 = vector.extract_strided_slice %278 {offsets = [0, 16], sizes = [2, 16], strides = [1, 1]} : vector<2x48xf32> to vector<2x16xf32>
    %289 = arith.addf %287, %288 : vector<2x16xf32>
    %290 = arith.negf %289 : vector<2x16xf32>
    %291 = math.exp %290 : vector<2x16xf32>
    %cst_74 = arith.constant 1.000000e+00 : f32
    %292 = vector.broadcast %cst_74 : f32 to vector<2x16xf32>
    %293 = arith.addf %292, %291 : vector<2x16xf32>
    %294 = arith.divf %292, %293 : vector<2x16xf32>
    %295 = vector.extract_strided_slice %275 {offsets = [0, 32], sizes = [2, 16], strides = [1, 1]} : vector<2x48xf32> to vector<2x16xf32>
    %296 = vector.extract_strided_slice %278 {offsets = [0, 32], sizes = [2, 16], strides = [1, 1]} : vector<2x48xf32> to vector<2x16xf32>
    %297 = arith.mulf %286, %296 : vector<2x16xf32>
    %298 = arith.addf %295, %297 : vector<2x16xf32>
    %299 = math.tanh %298 : vector<2x16xf32>
    %cst_75 = arith.constant 1.000000e+00 : f32
    %300 = vector.broadcast %cst_75 : f32 to vector<2x16xf32>
    %301 = arith.subf %300, %294 : vector<2x16xf32>
    %302 = arith.mulf %301, %299 : vector<2x16xf32>
    %303 = arith.mulf %294, %242 : vector<2x16xf32>
    %304 = arith.addf %302, %303 : vector<2x16xf32>
    %c8_76 = arith.constant 8 : index
    %c0_77 = arith.constant 0 : index
    %305 = vector.load %arg12[%c8_76, %c0_77] : memref<16x16xf32, #tpu.memory_space<vmem>>, vector<2x16xf32>
    tpu.vector_store %arg12[%c8_76, %c0_77], %304 {strides = array<i32>} : memref<16x16xf32, #tpu.memory_space<vmem>>, vector<2x16xf32>,
    %306 = vector.extract_strided_slice %14 {offsets = [6, 0], sizes = [2, 48], strides = [1, 1]} : vector<16x48xf32> to vector<2x48xf32>
    %cst_78 = arith.constant dense<0.000000e+00> : vector<2x48xf32>
    %307 = tpu.matmul %273, %18, %cst_78 {dimension_numbers = #tpu.dot_dimension_numbers<[1], [0], [0], [1], [0, 0, 1, 1], [], []>} : vector<2x16xf32>, vector<16x48xf32>, vector<2x48xf32> -> vector<2x48xf32>
    %308 = vector.broadcast %22 : vector<1x48xf32> to vector<2x48xf32>
    %309 = arith.addf %307, %308 : vector<2x48xf32>
    %310 = vector.extract_strided_slice %306 {offsets = [0, 0], sizes = [2, 16], strides = [1, 1]} : vector<2x48xf32> to vector<2x16xf32>
    %311 = vector.extract_strided_slice %309 {offsets = [0, 0], sizes = [2, 16], strides = [1, 1]} : vector<2x48xf32> to vector<2x16xf32>
    %312 = arith.addf %310, %311 : vector<2x16xf32>
    %313 = arith.negf %312 : vector<2x16xf32>
    %314 = math.exp %313 : vector<2x16xf32>
    %cst_79 = arith.constant 1.000000e+00 : f32
    %315 = vector.broadcast %cst_79 : f32 to vector<2x16xf32>
    %316 = arith.addf %315, %314 : vector<2x16xf32>
    %317 = arith.divf %315, %316 : vector<2x16xf32>
    %318 = vector.extract_strided_slice %306 {offsets = [0, 16], sizes = [2, 16], strides = [1, 1]} : vector<2x48xf32> to vector<2x16xf32>
    %319 = vector.extract_strided_slice %309 {offsets = [0, 16], sizes = [2, 16], strides = [1, 1]} : vector<2x48xf32> to vector<2x16xf32>
    %320 = arith.addf %318, %319 : vector<2x16xf32>
    %321 = arith.negf %320 : vector<2x16xf32>
    %322 = math.exp %321 : vector<2x16xf32>
    %cst_80 = arith.constant 1.000000e+00 : f32
    %323 = vector.broadcast %cst_80 : f32 to vector<2x16xf32>
    %324 = arith.addf %323, %322 : vector<2x16xf32>
    %325 = arith.divf %323, %324 : vector<2x16xf32>
    %326 = vector.extract_strided_slice %306 {offsets = [0, 32], sizes = [2, 16], strides = [1, 1]} : vector<2x48xf32> to vector<2x16xf32>
    %327 = vector.extract_strided_slice %309 {offsets = [0, 32], sizes = [2, 16], strides = [1, 1]} : vector<2x48xf32> to vector<2x16xf32>
    %328 = arith.mulf %317, %327 : vector<2x16xf32>
    %329 = arith.addf %326, %328 : vector<2x16xf32>
    %330 = math.tanh %329 : vector<2x16xf32>
    %cst_81 = arith.constant 1.000000e+00 : f32
    %331 = vector.broadcast %cst_81 : f32 to vector<2x16xf32>
    %332 = arith.subf %331, %325 : vector<2x16xf32>
    %333 = arith.mulf %332, %330 : vector<2x16xf32>
    %334 = arith.mulf %325, %273 : vector<2x16xf32>
    %335 = arith.addf %333, %334 : vector<2x16xf32>
    %c6_82 = arith.constant 6 : index
    %c0_83 = arith.constant 0 : index
    %336 = vector.load %arg13[%c6_82, %c0_83] : memref<16x16xf32, #tpu.memory_space<vmem>>, vector<2x16xf32>
    tpu.vector_store %arg13[%c6_82, %c0_83], %335 {strides = array<i32>} : memref<16x16xf32, #tpu.memory_space<vmem>>, vector<2x16xf32>,
    %337 = vector.extract_strided_slice %7 {offsets = [10, 0], sizes = [2, 48], strides = [1, 1]} : vector<16x48xf32> to vector<2x48xf32>
    %cst_84 = arith.constant dense<0.000000e+00> : vector<2x48xf32>
    %338 = tpu.matmul %304, %16, %cst_84 {dimension_numbers = #tpu.dot_dimension_numbers<[1], [0], [0], [1], [0, 0, 1, 1], [], []>} : vector<2x16xf32>, vector<16x48xf32>, vector<2x48xf32> -> vector<2x48xf32>
    %339 = vector.broadcast %20 : vector<1x48xf32> to vector<2x48xf32>
    %340 = arith.addf %338, %339 : vector<2x48xf32>
    %341 = vector.extract_strided_slice %337 {offsets = [0, 0], sizes = [2, 16], strides = [1, 1]} : vector<2x48xf32> to vector<2x16xf32>
    %342 = vector.extract_strided_slice %340 {offsets = [0, 0], sizes = [2, 16], strides = [1, 1]} : vector<2x48xf32> to vector<2x16xf32>
    %343 = arith.addf %341, %342 : vector<2x16xf32>
    %344 = arith.negf %343 : vector<2x16xf32>
    %345 = math.exp %344 : vector<2x16xf32>
    %cst_85 = arith.constant 1.000000e+00 : f32
    %346 = vector.broadcast %cst_85 : f32 to vector<2x16xf32>
    %347 = arith.addf %346, %345 : vector<2x16xf32>
    %348 = arith.divf %346, %347 : vector<2x16xf32>
    %349 = vector.extract_strided_slice %337 {offsets = [0, 16], sizes = [2, 16], strides = [1, 1]} : vector<2x48xf32> to vector<2x16xf32>
    %350 = vector.extract_strided_slice %340 {offsets = [0, 16], sizes = [2, 16], strides = [1, 1]} : vector<2x48xf32> to vector<2x16xf32>
    %351 = arith.addf %349, %350 : vector<2x16xf32>
    %352 = arith.negf %351 : vector<2x16xf32>
    %353 = math.exp %352 : vector<2x16xf32>
    %cst_86 = arith.constant 1.000000e+00 : f32
    %354 = vector.broadcast %cst_86 : f32 to vector<2x16xf32>
    %355 = arith.addf %354, %353 : vector<2x16xf32>
    %356 = arith.divf %354, %355 : vector<2x16xf32>
    %357 = vector.extract_strided_slice %337 {offsets = [0, 32], sizes = [2, 16], strides = [1, 1]} : vector<2x48xf32> to vector<2x16xf32>
    %358 = vector.extract_strided_slice %340 {offsets = [0, 32], sizes = [2, 16], strides = [1, 1]} : vector<2x48xf32> to vector<2x16xf32>
    %359 = arith.mulf %348, %358 : vector<2x16xf32>
    %360 = arith.addf %357, %359 : vector<2x16xf32>
    %361 = math.tanh %360 : vector<2x16xf32>
    %cst_87 = arith.constant 1.000000e+00 : f32
    %362 = vector.broadcast %cst_87 : f32 to vector<2x16xf32>
    %363 = arith.subf %362, %356 : vector<2x16xf32>
    %364 = arith.mulf %363, %361 : vector<2x16xf32>
    %365 = arith.mulf %356, %304 : vector<2x16xf32>
    %366 = arith.addf %364, %365 : vector<2x16xf32>
    %c10_88 = arith.constant 10 : index
    %c0_89 = arith.constant 0 : index
    %367 = vector.load %arg12[%c10_88, %c0_89] : memref<16x16xf32, #tpu.memory_space<vmem>>, vector<2x16xf32>
    tpu.vector_store %arg12[%c10_88, %c0_89], %366 {strides = array<i32>} : memref<16x16xf32, #tpu.memory_space<vmem>>, vector<2x16xf32>,
    %368 = vector.extract_strided_slice %14 {offsets = [4, 0], sizes = [2, 48], strides = [1, 1]} : vector<16x48xf32> to vector<2x48xf32>
    %cst_90 = arith.constant dense<0.000000e+00> : vector<2x48xf32>
    %369 = tpu.matmul %335, %18, %cst_90 {dimension_numbers = #tpu.dot_dimension_numbers<[1], [0], [0], [1], [0, 0, 1, 1], [], []>} : vector<2x16xf32>, vector<16x48xf32>, vector<2x48xf32> -> vector<2x48xf32>
    %370 = vector.broadcast %22 : vector<1x48xf32> to vector<2x48xf32>
    %371 = arith.addf %369, %370 : vector<2x48xf32>
    %372 = vector.extract_strided_slice %368 {offsets = [0, 0], sizes = [2, 16], strides = [1, 1]} : vector<2x48xf32> to vector<2x16xf32>
    %373 = vector.extract_strided_slice %371 {offsets = [0, 0], sizes = [2, 16], strides = [1, 1]} : vector<2x48xf32> to vector<2x16xf32>
    %374 = arith.addf %372, %373 : vector<2x16xf32>
    %375 = arith.negf %374 : vector<2x16xf32>
    %376 = math.exp %375 : vector<2x16xf32>
    %cst_91 = arith.constant 1.000000e+00 : f32
    %377 = vector.broadcast %cst_91 : f32 to vector<2x16xf32>
    %378 = arith.addf %377, %376 : vector<2x16xf32>
    %379 = arith.divf %377, %378 : vector<2x16xf32>
    %380 = vector.extract_strided_slice %368 {offsets = [0, 16], sizes = [2, 16], strides = [1, 1]} : vector<2x48xf32> to vector<2x16xf32>
    %381 = vector.extract_strided_slice %371 {offsets = [0, 16], sizes = [2, 16], strides = [1, 1]} : vector<2x48xf32> to vector<2x16xf32>
    %382 = arith.addf %380, %381 : vector<2x16xf32>
    %383 = arith.negf %382 : vector<2x16xf32>
    %384 = math.exp %383 : vector<2x16xf32>
    %cst_92 = arith.constant 1.000000e+00 : f32
    %385 = vector.broadcast %cst_92 : f32 to vector<2x16xf32>
    %386 = arith.addf %385, %384 : vector<2x16xf32>
    %387 = arith.divf %385, %386 : vector<2x16xf32>
    %388 = vector.extract_strided_slice %368 {offsets = [0, 32], sizes = [2, 16], strides = [1, 1]} : vector<2x48xf32> to vector<2x16xf32>
    %389 = vector.extract_strided_slice %371 {offsets = [0, 32], sizes = [2, 16], strides = [1, 1]} : vector<2x48xf32> to vector<2x16xf32>
    %390 = arith.mulf %379, %389 : vector<2x16xf32>
    %391 = arith.addf %388, %390 : vector<2x16xf32>
    %392 = math.tanh %391 : vector<2x16xf32>
    %cst_93 = arith.constant 1.000000e+00 : f32
    %393 = vector.broadcast %cst_93 : f32 to vector<2x16xf32>
    %394 = arith.subf %393, %387 : vector<2x16xf32>
    %395 = arith.mulf %394, %392 : vector<2x16xf32>
    %396 = arith.mulf %387, %335 : vector<2x16xf32>
    %397 = arith.addf %395, %396 : vector<2x16xf32>
    %c4_94 = arith.constant 4 : index
    %c0_95 = arith.constant 0 : index
    %398 = vector.load %arg13[%c4_94, %c0_95] : memref<16x16xf32, #tpu.memory_space<vmem>>, vector<2x16xf32>
    tpu.vector_store %arg13[%c4_94, %c0_95], %397 {strides = array<i32>} : memref<16x16xf32, #tpu.memory_space<vmem>>, vector<2x16xf32>,
    %399 = vector.extract_strided_slice %7 {offsets = [12, 0], sizes = [2, 48], strides = [1, 1]} : vector<16x48xf32> to vector<2x48xf32>
    %cst_96 = arith.constant dense<0.000000e+00> : vector<2x48xf32>
    %400 = tpu.matmul %366, %16, %cst_96 {dimension_numbers = #tpu.dot_dimension_numbers<[1], [0], [0], [1], [0, 0, 1, 1], [], []>} : vector<2x16xf32>, vector<16x48xf32>, vector<2x48xf32> -> vector<2x48xf32>
    %401 = vector.broadcast %20 : vector<1x48xf32> to vector<2x48xf32>
    %402 = arith.addf %400, %401 : vector<2x48xf32>
    %403 = vector.extract_strided_slice %399 {offsets = [0, 0], sizes = [2, 16], strides = [1, 1]} : vector<2x48xf32> to vector<2x16xf32>
    %404 = vector.extract_strided_slice %402 {offsets = [0, 0], sizes = [2, 16], strides = [1, 1]} : vector<2x48xf32> to vector<2x16xf32>
    %405 = arith.addf %403, %404 : vector<2x16xf32>
    %406 = arith.negf %405 : vector<2x16xf32>
    %407 = math.exp %406 : vector<2x16xf32>
    %cst_97 = arith.constant 1.000000e+00 : f32
    %408 = vector.broadcast %cst_97 : f32 to vector<2x16xf32>
    %409 = arith.addf %408, %407 : vector<2x16xf32>
    %410 = arith.divf %408, %409 : vector<2x16xf32>
    %411 = vector.extract_strided_slice %399 {offsets = [0, 16], sizes = [2, 16], strides = [1, 1]} : vector<2x48xf32> to vector<2x16xf32>
    %412 = vector.extract_strided_slice %402 {offsets = [0, 16], sizes = [2, 16], strides = [1, 1]} : vector<2x48xf32> to vector<2x16xf32>
    %413 = arith.addf %411, %412 : vector<2x16xf32>
    %414 = arith.negf %413 : vector<2x16xf32>
    %415 = math.exp %414 : vector<2x16xf32>
    %cst_98 = arith.constant 1.000000e+00 : f32
    %416 = vector.broadcast %cst_98 : f32 to vector<2x16xf32>
    %417 = arith.addf %416, %415 : vector<2x16xf32>
    %418 = arith.divf %416, %417 : vector<2x16xf32>
    %419 = vector.extract_strided_slice %399 {offsets = [0, 32], sizes = [2, 16], strides = [1, 1]} : vector<2x48xf32> to vector<2x16xf32>
    %420 = vector.extract_strided_slice %402 {offsets = [0, 32], sizes = [2, 16], strides = [1, 1]} : vector<2x48xf32> to vector<2x16xf32>
    %421 = arith.mulf %410, %420 : vector<2x16xf32>
    %422 = arith.addf %419, %421 : vector<2x16xf32>
    %423 = math.tanh %422 : vector<2x16xf32>
    %cst_99 = arith.constant 1.000000e+00 : f32
    %424 = vector.broadcast %cst_99 : f32 to vector<2x16xf32>
    %425 = arith.subf %424, %418 : vector<2x16xf32>
    %426 = arith.mulf %425, %423 : vector<2x16xf32>
    %427 = arith.mulf %418, %366 : vector<2x16xf32>
    %428 = arith.addf %426, %427 : vector<2x16xf32>
    %c12_100 = arith.constant 12 : index
    %c0_101 = arith.constant 0 : index
    %429 = vector.load %arg12[%c12_100, %c0_101] : memref<16x16xf32, #tpu.memory_space<vmem>>, vector<2x16xf32>
    tpu.vector_store %arg12[%c12_100, %c0_101], %428 {strides = array<i32>} : memref<16x16xf32, #tpu.memory_space<vmem>>, vector<2x16xf32>,
    %430 = vector.extract_strided_slice %14 {offsets = [2, 0], sizes = [2, 48], strides = [1, 1]} : vector<16x48xf32> to vector<2x48xf32>
    %cst_102 = arith.constant dense<0.000000e+00> : vector<2x48xf32>
    %431 = tpu.matmul %397, %18, %cst_102 {dimension_numbers = #tpu.dot_dimension_numbers<[1], [0], [0], [1], [0, 0, 1, 1], [], []>} : vector<2x16xf32>, vector<16x48xf32>, vector<2x48xf32> -> vector<2x48xf32>
    %432 = vector.broadcast %22 : vector<1x48xf32> to vector<2x48xf32>
    %433 = arith.addf %431, %432 : vector<2x48xf32>
    %434 = vector.extract_strided_slice %430 {offsets = [0, 0], sizes = [2, 16], strides = [1, 1]} : vector<2x48xf32> to vector<2x16xf32>
    %435 = vector.extract_strided_slice %433 {offsets = [0, 0], sizes = [2, 16], strides = [1, 1]} : vector<2x48xf32> to vector<2x16xf32>
    %436 = arith.addf %434, %435 : vector<2x16xf32>
    %437 = arith.negf %436 : vector<2x16xf32>
    %438 = math.exp %437 : vector<2x16xf32>
    %cst_103 = arith.constant 1.000000e+00 : f32
    %439 = vector.broadcast %cst_103 : f32 to vector<2x16xf32>
    %440 = arith.addf %439, %438 : vector<2x16xf32>
    %441 = arith.divf %439, %440 : vector<2x16xf32>
    %442 = vector.extract_strided_slice %430 {offsets = [0, 16], sizes = [2, 16], strides = [1, 1]} : vector<2x48xf32> to vector<2x16xf32>
    %443 = vector.extract_strided_slice %433 {offsets = [0, 16], sizes = [2, 16], strides = [1, 1]} : vector<2x48xf32> to vector<2x16xf32>
    %444 = arith.addf %442, %443 : vector<2x16xf32>
    %445 = arith.negf %444 : vector<2x16xf32>
    %446 = math.exp %445 : vector<2x16xf32>
    %cst_104 = arith.constant 1.000000e+00 : f32
    %447 = vector.broadcast %cst_104 : f32 to vector<2x16xf32>
    %448 = arith.addf %447, %446 : vector<2x16xf32>
    %449 = arith.divf %447, %448 : vector<2x16xf32>
    %450 = vector.extract_strided_slice %430 {offsets = [0, 32], sizes = [2, 16], strides = [1, 1]} : vector<2x48xf32> to vector<2x16xf32>
    %451 = vector.extract_strided_slice %433 {offsets = [0, 32], sizes = [2, 16], strides = [1, 1]} : vector<2x48xf32> to vector<2x16xf32>
    %452 = arith.mulf %441, %451 : vector<2x16xf32>
    %453 = arith.addf %450, %452 : vector<2x16xf32>
    %454 = math.tanh %453 : vector<2x16xf32>
    %cst_105 = arith.constant 1.000000e+00 : f32
    %455 = vector.broadcast %cst_105 : f32 to vector<2x16xf32>
    %456 = arith.subf %455, %449 : vector<2x16xf32>
    %457 = arith.mulf %456, %454 : vector<2x16xf32>
    %458 = arith.mulf %449, %397 : vector<2x16xf32>
    %459 = arith.addf %457, %458 : vector<2x16xf32>
    %c2_106 = arith.constant 2 : index
    %c0_107 = arith.constant 0 : index
    %460 = vector.load %arg13[%c2_106, %c0_107] : memref<16x16xf32, #tpu.memory_space<vmem>>, vector<2x16xf32>
    tpu.vector_store %arg13[%c2_106, %c0_107], %459 {strides = array<i32>} : memref<16x16xf32, #tpu.memory_space<vmem>>, vector<2x16xf32>,
    %461 = vector.extract_strided_slice %7 {offsets = [14, 0], sizes = [2, 48], strides = [1, 1]} : vector<16x48xf32> to vector<2x48xf32>
    %cst_108 = arith.constant dense<0.000000e+00> : vector<2x48xf32>
    %462 = tpu.matmul %428, %16, %cst_108 {dimension_numbers = #tpu.dot_dimension_numbers<[1], [0], [0], [1], [0, 0, 1, 1], [], []>} : vector<2x16xf32>, vector<16x48xf32>, vector<2x48xf32> -> vector<2x48xf32>
    %463 = vector.broadcast %20 : vector<1x48xf32> to vector<2x48xf32>
    %464 = arith.addf %462, %463 : vector<2x48xf32>
    %465 = vector.extract_strided_slice %461 {offsets = [0, 0], sizes = [2, 16], strides = [1, 1]} : vector<2x48xf32> to vector<2x16xf32>
    %466 = vector.extract_strided_slice %464 {offsets = [0, 0], sizes = [2, 16], strides = [1, 1]} : vector<2x48xf32> to vector<2x16xf32>
    %467 = arith.addf %465, %466 : vector<2x16xf32>
    %468 = arith.negf %467 : vector<2x16xf32>
    %469 = math.exp %468 : vector<2x16xf32>
    %cst_109 = arith.constant 1.000000e+00 : f32
    %470 = vector.broadcast %cst_109 : f32 to vector<2x16xf32>
    %471 = arith.addf %470, %469 : vector<2x16xf32>
    %472 = arith.divf %470, %471 : vector<2x16xf32>
    %473 = vector.extract_strided_slice %461 {offsets = [0, 16], sizes = [2, 16], strides = [1, 1]} : vector<2x48xf32> to vector<2x16xf32>
    %474 = vector.extract_strided_slice %464 {offsets = [0, 16], sizes = [2, 16], strides = [1, 1]} : vector<2x48xf32> to vector<2x16xf32>
    %475 = arith.addf %473, %474 : vector<2x16xf32>
    %476 = arith.negf %475 : vector<2x16xf32>
    %477 = math.exp %476 : vector<2x16xf32>
    %cst_110 = arith.constant 1.000000e+00 : f32
    %478 = vector.broadcast %cst_110 : f32 to vector<2x16xf32>
    %479 = arith.addf %478, %477 : vector<2x16xf32>
    %480 = arith.divf %478, %479 : vector<2x16xf32>
    %481 = vector.extract_strided_slice %461 {offsets = [0, 32], sizes = [2, 16], strides = [1, 1]} : vector<2x48xf32> to vector<2x16xf32>
    %482 = vector.extract_strided_slice %464 {offsets = [0, 32], sizes = [2, 16], strides = [1, 1]} : vector<2x48xf32> to vector<2x16xf32>
    %483 = arith.mulf %472, %482 : vector<2x16xf32>
    %484 = arith.addf %481, %483 : vector<2x16xf32>
    %485 = math.tanh %484 : vector<2x16xf32>
    %cst_111 = arith.constant 1.000000e+00 : f32
    %486 = vector.broadcast %cst_111 : f32 to vector<2x16xf32>
    %487 = arith.subf %486, %480 : vector<2x16xf32>
    %488 = arith.mulf %487, %485 : vector<2x16xf32>
    %489 = arith.mulf %480, %428 : vector<2x16xf32>
    %490 = arith.addf %488, %489 : vector<2x16xf32>
    %c14_112 = arith.constant 14 : index
    %c0_113 = arith.constant 0 : index
    %491 = vector.load %arg12[%c14_112, %c0_113] : memref<16x16xf32, #tpu.memory_space<vmem>>, vector<2x16xf32>
    tpu.vector_store %arg12[%c14_112, %c0_113], %490 {strides = array<i32>} : memref<16x16xf32, #tpu.memory_space<vmem>>, vector<2x16xf32>,
    %492 = vector.extract_strided_slice %14 {offsets = [0, 0], sizes = [2, 48], strides = [1, 1]} : vector<16x48xf32> to vector<2x48xf32>
    %cst_114 = arith.constant dense<0.000000e+00> : vector<2x48xf32>
    %493 = tpu.matmul %459, %18, %cst_114 {dimension_numbers = #tpu.dot_dimension_numbers<[1], [0], [0], [1], [0, 0, 1, 1], [], []>} : vector<2x16xf32>, vector<16x48xf32>, vector<2x48xf32> -> vector<2x48xf32>
    %494 = vector.broadcast %22 : vector<1x48xf32> to vector<2x48xf32>
    %495 = arith.addf %493, %494 : vector<2x48xf32>
    %496 = vector.extract_strided_slice %492 {offsets = [0, 0], sizes = [2, 16], strides = [1, 1]} : vector<2x48xf32> to vector<2x16xf32>
    %497 = vector.extract_strided_slice %495 {offsets = [0, 0], sizes = [2, 16], strides = [1, 1]} : vector<2x48xf32> to vector<2x16xf32>
    %498 = arith.addf %496, %497 : vector<2x16xf32>
    %499 = arith.negf %498 : vector<2x16xf32>
    %500 = math.exp %499 : vector<2x16xf32>
    %cst_115 = arith.constant 1.000000e+00 : f32
    %501 = vector.broadcast %cst_115 : f32 to vector<2x16xf32>
    %502 = arith.addf %501, %500 : vector<2x16xf32>
    %503 = arith.divf %501, %502 : vector<2x16xf32>
    %504 = vector.extract_strided_slice %492 {offsets = [0, 16], sizes = [2, 16], strides = [1, 1]} : vector<2x48xf32> to vector<2x16xf32>
    %505 = vector.extract_strided_slice %495 {offsets = [0, 16], sizes = [2, 16], strides = [1, 1]} : vector<2x48xf32> to vector<2x16xf32>
    %506 = arith.addf %504, %505 : vector<2x16xf32>
    %507 = arith.negf %506 : vector<2x16xf32>
    %508 = math.exp %507 : vector<2x16xf32>
    %cst_116 = arith.constant 1.000000e+00 : f32
    %509 = vector.broadcast %cst_116 : f32 to vector<2x16xf32>
    %510 = arith.addf %509, %508 : vector<2x16xf32>
    %511 = arith.divf %509, %510 : vector<2x16xf32>
    %512 = vector.extract_strided_slice %492 {offsets = [0, 32], sizes = [2, 16], strides = [1, 1]} : vector<2x48xf32> to vector<2x16xf32>
    %513 = vector.extract_strided_slice %495 {offsets = [0, 32], sizes = [2, 16], strides = [1, 1]} : vector<2x48xf32> to vector<2x16xf32>
    %514 = arith.mulf %503, %513 : vector<2x16xf32>
    %515 = arith.addf %512, %514 : vector<2x16xf32>
    %516 = math.tanh %515 : vector<2x16xf32>
    %cst_117 = arith.constant 1.000000e+00 : f32
    %517 = vector.broadcast %cst_117 : f32 to vector<2x16xf32>
    %518 = arith.subf %517, %511 : vector<2x16xf32>
    %519 = arith.mulf %518, %516 : vector<2x16xf32>
    %520 = arith.mulf %511, %459 : vector<2x16xf32>
    %521 = arith.addf %519, %520 : vector<2x16xf32>
    %c0_118 = arith.constant 0 : index
    %c0_119 = arith.constant 0 : index
    %522 = vector.load %arg13[%c0_118, %c0_119] : memref<16x16xf32, #tpu.memory_space<vmem>>, vector<2x16xf32>
    tpu.vector_store %arg13[%c0_118, %c0_119], %521 {strides = array<i32>} : memref<16x16xf32, #tpu.memory_space<vmem>>, vector<2x16xf32>,
    %c0_120 = arith.constant 0 : index
    %c0_121 = arith.constant 0 : index
    %c0_122 = arith.constant 0 : index
    %523 = vector.load %arg11[%c0_120, %c0_121, %c0_122] : memref<4x2x16xf32, #tpu.memory_space<vmem>>, vector<1x2x16xf32>
    %524 = vector.shape_cast %523 : vector<1x2x16xf32> to vector<2x16xf32>
    %525 = vector.shape_cast %490 : vector<2x16xf32> to vector<1x2x16xf32>
    tpu.vector_store %arg11[%c0_120, %c0_121, %c0_122], %525 {strides = array<i32>} : memref<4x2x16xf32, #tpu.memory_space<vmem>>, vector<1x2x16xf32>,
    %c1_123 = arith.constant 1 : index
    %c0_124 = arith.constant 0 : index
    %c0_125 = arith.constant 0 : index
    %526 = vector.load %arg11[%c1_123, %c0_124, %c0_125] : memref<4x2x16xf32, #tpu.memory_space<vmem>>, vector<1x2x16xf32>
    %527 = vector.shape_cast %526 : vector<1x2x16xf32> to vector<2x16xf32>
    %528 = vector.shape_cast %521 : vector<2x16xf32> to vector<1x2x16xf32>
    tpu.vector_store %arg11[%c1_123, %c0_124, %c0_125], %528 {strides = array<i32>} : memref<4x2x16xf32, #tpu.memory_space<vmem>>, vector<1x2x16xf32>,
    %c0_126 = arith.constant 0 : index
    %c0_127 = arith.constant 0 : index
    %529 = vector.load %arg12[%c0_126, %c0_127] : memref<16x16xf32, #tpu.memory_space<vmem>>, vector<16x16xf32>
    %c0_128 = arith.constant 0 : index
    %c0_129 = arith.constant 0 : index
    %530 = vector.load %arg13[%c0_128, %c0_129] : memref<16x16xf32, #tpu.memory_space<vmem>>, vector<16x16xf32>
    %c0_130 = arith.constant 0 : index
    %c0_131 = arith.constant 0 : index
    %c0_132 = arith.constant 0 : index
    %531 = vector.load %arg6[%c0_130, %c0_131, %c0_132] : memref<2x32x48xf32, #tpu.memory_space<vmem>>, vector<1x32x48xf32>
    %532 = vector.shape_cast %531 : vector<1x32x48xf32> to vector<32x48xf32>
    %533 = vector.extract_strided_slice %532 {offsets = [0, 0], sizes = [16, 48], strides = [1, 1]} : vector<32x48xf32> to vector<16x48xf32>
    %cst_133 = arith.constant dense<0.000000e+00> : vector<16x48xf32>
    %534 = tpu.matmul %529, %533, %cst_133 {dimension_numbers = #tpu.dot_dimension_numbers<[1], [0], [0], [1], [0, 0, 1, 1], [], []>} : vector<16x16xf32>, vector<16x48xf32>, vector<16x48xf32> -> vector<16x48xf32>
    %535 = vector.extract_strided_slice %532 {offsets = [16, 0], sizes = [16, 48], strides = [1, 1]} : vector<32x48xf32> to vector<16x48xf32>
    %cst_134 = arith.constant dense<0.000000e+00> : vector<16x48xf32>
    %536 = tpu.matmul %530, %535, %cst_134 {dimension_numbers = #tpu.dot_dimension_numbers<[1], [0], [0], [1], [0, 0, 1, 1], [], []>} : vector<16x16xf32>, vector<16x48xf32>, vector<16x48xf32> -> vector<16x48xf32>
    %537 = arith.addf %534, %536 : vector<16x48xf32>
    %c0_135 = arith.constant 0 : index
    %c0_136 = arith.constant 0 : index
    %c0_137 = arith.constant 0 : index
    %538 = vector.load %arg8[%c0_135, %c0_136, %c0_137] : memref<2x1x48xf32, #tpu.memory_space<vmem>>, vector<1x1x48xf32>
    %539 = vector.shape_cast %538 : vector<1x1x48xf32> to vector<1x48xf32>
    %540 = vector.broadcast %539 : vector<1x48xf32> to vector<16x48xf32>
    %541 = arith.addf %537, %540 : vector<16x48xf32>
    %c1_138 = arith.constant 1 : index
    %c0_139 = arith.constant 0 : index
    %c0_140 = arith.constant 0 : index
    %542 = vector.load %arg6[%c1_138, %c0_139, %c0_140] : memref<2x32x48xf32, #tpu.memory_space<vmem>>, vector<1x32x48xf32>
    %543 = vector.shape_cast %542 : vector<1x32x48xf32> to vector<32x48xf32>
    %544 = vector.extract_strided_slice %543 {offsets = [0, 0], sizes = [16, 48], strides = [1, 1]} : vector<32x48xf32> to vector<16x48xf32>
    %cst_141 = arith.constant dense<0.000000e+00> : vector<16x48xf32>
    %545 = tpu.matmul %529, %544, %cst_141 {dimension_numbers = #tpu.dot_dimension_numbers<[1], [0], [0], [1], [0, 0, 1, 1], [], []>} : vector<16x16xf32>, vector<16x48xf32>, vector<16x48xf32> -> vector<16x48xf32>
    %546 = vector.extract_strided_slice %543 {offsets = [16, 0], sizes = [16, 48], strides = [1, 1]} : vector<32x48xf32> to vector<16x48xf32>
    %cst_142 = arith.constant dense<0.000000e+00> : vector<16x48xf32>
    %547 = tpu.matmul %530, %546, %cst_142 {dimension_numbers = #tpu.dot_dimension_numbers<[1], [0], [0], [1], [0, 0, 1, 1], [], []>} : vector<16x16xf32>, vector<16x48xf32>, vector<16x48xf32> -> vector<16x48xf32>
    %548 = arith.addf %545, %547 : vector<16x48xf32>
    %c1_143 = arith.constant 1 : index
    %c0_144 = arith.constant 0 : index
    %c0_145 = arith.constant 0 : index
    %549 = vector.load %arg8[%c1_143, %c0_144, %c0_145] : memref<2x1x48xf32, #tpu.memory_space<vmem>>, vector<1x1x48xf32>
    %550 = vector.shape_cast %549 : vector<1x1x48xf32> to vector<1x48xf32>
    %551 = vector.broadcast %550 : vector<1x48xf32> to vector<16x48xf32>
    %552 = arith.addf %548, %551 : vector<16x48xf32>
    %c0_146 = arith.constant 0 : index
    %c0_147 = arith.constant 0 : index
    %c0_148 = arith.constant 0 : index
    %553 = vector.load %arg7[%c0_146, %c0_147, %c0_148] : memref<2x16x48xf32, #tpu.memory_space<vmem>>, vector<1x16x48xf32>
    %554 = vector.shape_cast %553 : vector<1x16x48xf32> to vector<16x48xf32>
    %c1_149 = arith.constant 1 : index
    %c0_150 = arith.constant 0 : index
    %c0_151 = arith.constant 0 : index
    %555 = vector.load %arg7[%c1_149, %c0_150, %c0_151] : memref<2x16x48xf32, #tpu.memory_space<vmem>>, vector<1x16x48xf32>
    %556 = vector.shape_cast %555 : vector<1x16x48xf32> to vector<16x48xf32>
    %c0_152 = arith.constant 0 : index
    %c0_153 = arith.constant 0 : index
    %c0_154 = arith.constant 0 : index
    %557 = vector.load %arg9[%c0_152, %c0_153, %c0_154] : memref<2x1x48xf32, #tpu.memory_space<vmem>>, vector<1x1x48xf32>
    %558 = vector.shape_cast %557 : vector<1x1x48xf32> to vector<1x48xf32>
    %c1_155 = arith.constant 1 : index
    %c0_156 = arith.constant 0 : index
    %c0_157 = arith.constant 0 : index
    %559 = vector.load %arg9[%c1_155, %c0_156, %c0_157] : memref<2x1x48xf32, #tpu.memory_space<vmem>>, vector<1x1x48xf32>
    %560 = vector.shape_cast %559 : vector<1x1x48xf32> to vector<1x48xf32>
    %c2_158 = arith.constant 2 : index
    %c0_159 = arith.constant 0 : index
    %c0_160 = arith.constant 0 : index
    %561 = vector.load %arg1[%c2_158, %c0_159, %c0_160] : memref<4x2x16xf32, #tpu.memory_space<vmem>>, vector<1x2x16xf32>
    %562 = vector.shape_cast %561 : vector<1x2x16xf32> to vector<2x16xf32>
    %c3 = arith.constant 3 : index
    %c0_161 = arith.constant 0 : index
    %c0_162 = arith.constant 0 : index
    %563 = vector.load %arg1[%c3, %c0_161, %c0_162] : memref<4x2x16xf32, #tpu.memory_space<vmem>>, vector<1x2x16xf32>
    %564 = vector.shape_cast %563 : vector<1x2x16xf32> to vector<2x16xf32>
    %565 = vector.extract_strided_slice %541 {offsets = [0, 0], sizes = [2, 48], strides = [1, 1]} : vector<16x48xf32> to vector<2x48xf32>
    %cst_163 = arith.constant dense<0.000000e+00> : vector<2x48xf32>
    %566 = tpu.matmul %562, %554, %cst_163 {dimension_numbers = #tpu.dot_dimension_numbers<[1], [0], [0], [1], [0, 0, 1, 1], [], []>} : vector<2x16xf32>, vector<16x48xf32>, vector<2x48xf32> -> vector<2x48xf32>
    %567 = vector.broadcast %558 : vector<1x48xf32> to vector<2x48xf32>
    %568 = arith.addf %566, %567 : vector<2x48xf32>
    %569 = vector.extract_strided_slice %565 {offsets = [0, 0], sizes = [2, 16], strides = [1, 1]} : vector<2x48xf32> to vector<2x16xf32>
    %570 = vector.extract_strided_slice %568 {offsets = [0, 0], sizes = [2, 16], strides = [1, 1]} : vector<2x48xf32> to vector<2x16xf32>
    %571 = arith.addf %569, %570 : vector<2x16xf32>
    %572 = arith.negf %571 : vector<2x16xf32>
    %573 = math.exp %572 : vector<2x16xf32>
    %cst_164 = arith.constant 1.000000e+00 : f32
    %574 = vector.broadcast %cst_164 : f32 to vector<2x16xf32>
    %575 = arith.addf %574, %573 : vector<2x16xf32>
    %576 = arith.divf %574, %575 : vector<2x16xf32>
    %577 = vector.extract_strided_slice %565 {offsets = [0, 16], sizes = [2, 16], strides = [1, 1]} : vector<2x48xf32> to vector<2x16xf32>
    %578 = vector.extract_strided_slice %568 {offsets = [0, 16], sizes = [2, 16], strides = [1, 1]} : vector<2x48xf32> to vector<2x16xf32>
    %579 = arith.addf %577, %578 : vector<2x16xf32>
    %580 = arith.negf %579 : vector<2x16xf32>
    %581 = math.exp %580 : vector<2x16xf32>
    %cst_165 = arith.constant 1.000000e+00 : f32
    %582 = vector.broadcast %cst_165 : f32 to vector<2x16xf32>
    %583 = arith.addf %582, %581 : vector<2x16xf32>
    %584 = arith.divf %582, %583 : vector<2x16xf32>
    %585 = vector.extract_strided_slice %565 {offsets = [0, 32], sizes = [2, 16], strides = [1, 1]} : vector<2x48xf32> to vector<2x16xf32>
    %586 = vector.extract_strided_slice %568 {offsets = [0, 32], sizes = [2, 16], strides = [1, 1]} : vector<2x48xf32> to vector<2x16xf32>
    %587 = arith.mulf %576, %586 : vector<2x16xf32>
    %588 = arith.addf %585, %587 : vector<2x16xf32>
    %589 = math.tanh %588 : vector<2x16xf32>
    %cst_166 = arith.constant 1.000000e+00 : f32
    %590 = vector.broadcast %cst_166 : f32 to vector<2x16xf32>
    %591 = arith.subf %590, %584 : vector<2x16xf32>
    %592 = arith.mulf %591, %589 : vector<2x16xf32>
    %593 = arith.mulf %584, %562 : vector<2x16xf32>
    %594 = arith.addf %592, %593 : vector<2x16xf32>
    %c0_167 = arith.constant 0 : index
    %c0_168 = arith.constant 0 : index
    %595 = vector.load %arg12[%c0_167, %c0_168] : memref<16x16xf32, #tpu.memory_space<vmem>>, vector<2x16xf32>
    tpu.vector_store %arg12[%c0_167, %c0_168], %594 {strides = array<i32>} : memref<16x16xf32, #tpu.memory_space<vmem>>, vector<2x16xf32>,
    %596 = vector.extract_strided_slice %552 {offsets = [14, 0], sizes = [2, 48], strides = [1, 1]} : vector<16x48xf32> to vector<2x48xf32>
    %cst_169 = arith.constant dense<0.000000e+00> : vector<2x48xf32>
    %597 = tpu.matmul %564, %556, %cst_169 {dimension_numbers = #tpu.dot_dimension_numbers<[1], [0], [0], [1], [0, 0, 1, 1], [], []>} : vector<2x16xf32>, vector<16x48xf32>, vector<2x48xf32> -> vector<2x48xf32>
    %598 = vector.broadcast %560 : vector<1x48xf32> to vector<2x48xf32>
    %599 = arith.addf %597, %598 : vector<2x48xf32>
    %600 = vector.extract_strided_slice %596 {offsets = [0, 0], sizes = [2, 16], strides = [1, 1]} : vector<2x48xf32> to vector<2x16xf32>
    %601 = vector.extract_strided_slice %599 {offsets = [0, 0], sizes = [2, 16], strides = [1, 1]} : vector<2x48xf32> to vector<2x16xf32>
    %602 = arith.addf %600, %601 : vector<2x16xf32>
    %603 = arith.negf %602 : vector<2x16xf32>
    %604 = math.exp %603 : vector<2x16xf32>
    %cst_170 = arith.constant 1.000000e+00 : f32
    %605 = vector.broadcast %cst_170 : f32 to vector<2x16xf32>
    %606 = arith.addf %605, %604 : vector<2x16xf32>
    %607 = arith.divf %605, %606 : vector<2x16xf32>
    %608 = vector.extract_strided_slice %596 {offsets = [0, 16], sizes = [2, 16], strides = [1, 1]} : vector<2x48xf32> to vector<2x16xf32>
    %609 = vector.extract_strided_slice %599 {offsets = [0, 16], sizes = [2, 16], strides = [1, 1]} : vector<2x48xf32> to vector<2x16xf32>
    %610 = arith.addf %608, %609 : vector<2x16xf32>
    %611 = arith.negf %610 : vector<2x16xf32>
    %612 = math.exp %611 : vector<2x16xf32>
    %cst_171 = arith.constant 1.000000e+00 : f32
    %613 = vector.broadcast %cst_171 : f32 to vector<2x16xf32>
    %614 = arith.addf %613, %612 : vector<2x16xf32>
    %615 = arith.divf %613, %614 : vector<2x16xf32>
    %616 = vector.extract_strided_slice %596 {offsets = [0, 32], sizes = [2, 16], strides = [1, 1]} : vector<2x48xf32> to vector<2x16xf32>
    %617 = vector.extract_strided_slice %599 {offsets = [0, 32], sizes = [2, 16], strides = [1, 1]} : vector<2x48xf32> to vector<2x16xf32>
    %618 = arith.mulf %607, %617 : vector<2x16xf32>
    %619 = arith.addf %616, %618 : vector<2x16xf32>
    %620 = math.tanh %619 : vector<2x16xf32>
    %cst_172 = arith.constant 1.000000e+00 : f32
    %621 = vector.broadcast %cst_172 : f32 to vector<2x16xf32>
    %622 = arith.subf %621, %615 : vector<2x16xf32>
    %623 = arith.mulf %622, %620 : vector<2x16xf32>
    %624 = arith.mulf %615, %564 : vector<2x16xf32>
    %625 = arith.addf %623, %624 : vector<2x16xf32>
    %c14_173 = arith.constant 14 : index
    %c0_174 = arith.constant 0 : index
    %626 = vector.load %arg13[%c14_173, %c0_174] : memref<16x16xf32, #tpu.memory_space<vmem>>, vector<2x16xf32>
    tpu.vector_store %arg13[%c14_173, %c0_174], %625 {strides = array<i32>} : memref<16x16xf32, #tpu.memory_space<vmem>>, vector<2x16xf32>,
    %627 = vector.extract_strided_slice %541 {offsets = [2, 0], sizes = [2, 48], strides = [1, 1]} : vector<16x48xf32> to vector<2x48xf32>
    %cst_175 = arith.constant dense<0.000000e+00> : vector<2x48xf32>
    %628 = tpu.matmul %594, %554, %cst_175 {dimension_numbers = #tpu.dot_dimension_numbers<[1], [0], [0], [1], [0, 0, 1, 1], [], []>} : vector<2x16xf32>, vector<16x48xf32>, vector<2x48xf32> -> vector<2x48xf32>
    %629 = vector.broadcast %558 : vector<1x48xf32> to vector<2x48xf32>
    %630 = arith.addf %628, %629 : vector<2x48xf32>
    %631 = vector.extract_strided_slice %627 {offsets = [0, 0], sizes = [2, 16], strides = [1, 1]} : vector<2x48xf32> to vector<2x16xf32>
    %632 = vector.extract_strided_slice %630 {offsets = [0, 0], sizes = [2, 16], strides = [1, 1]} : vector<2x48xf32> to vector<2x16xf32>
    %633 = arith.addf %631, %632 : vector<2x16xf32>
    %634 = arith.negf %633 : vector<2x16xf32>
    %635 = math.exp %634 : vector<2x16xf32>
    %cst_176 = arith.constant 1.000000e+00 : f32
    %636 = vector.broadcast %cst_176 : f32 to vector<2x16xf32>
    %637 = arith.addf %636, %635 : vector<2x16xf32>
    %638 = arith.divf %636, %637 : vector<2x16xf32>
    %639 = vector.extract_strided_slice %627 {offsets = [0, 16], sizes = [2, 16], strides = [1, 1]} : vector<2x48xf32> to vector<2x16xf32>
    %640 = vector.extract_strided_slice %630 {offsets = [0, 16], sizes = [2, 16], strides = [1, 1]} : vector<2x48xf32> to vector<2x16xf32>
    %641 = arith.addf %639, %640 : vector<2x16xf32>
    %642 = arith.negf %641 : vector<2x16xf32>
    %643 = math.exp %642 : vector<2x16xf32>
    %cst_177 = arith.constant 1.000000e+00 : f32
    %644 = vector.broadcast %cst_177 : f32 to vector<2x16xf32>
    %645 = arith.addf %644, %643 : vector<2x16xf32>
    %646 = arith.divf %644, %645 : vector<2x16xf32>
    %647 = vector.extract_strided_slice %627 {offsets = [0, 32], sizes = [2, 16], strides = [1, 1]} : vector<2x48xf32> to vector<2x16xf32>
    %648 = vector.extract_strided_slice %630 {offsets = [0, 32], sizes = [2, 16], strides = [1, 1]} : vector<2x48xf32> to vector<2x16xf32>
    %649 = arith.mulf %638, %648 : vector<2x16xf32>
    %650 = arith.addf %647, %649 : vector<2x16xf32>
    %651 = math.tanh %650 : vector<2x16xf32>
    %cst_178 = arith.constant 1.000000e+00 : f32
    %652 = vector.broadcast %cst_178 : f32 to vector<2x16xf32>
    %653 = arith.subf %652, %646 : vector<2x16xf32>
    %654 = arith.mulf %653, %651 : vector<2x16xf32>
    %655 = arith.mulf %646, %594 : vector<2x16xf32>
    %656 = arith.addf %654, %655 : vector<2x16xf32>
    %c2_179 = arith.constant 2 : index
    %c0_180 = arith.constant 0 : index
    %657 = vector.load %arg12[%c2_179, %c0_180] : memref<16x16xf32, #tpu.memory_space<vmem>>, vector<2x16xf32>
    tpu.vector_store %arg12[%c2_179, %c0_180], %656 {strides = array<i32>} : memref<16x16xf32, #tpu.memory_space<vmem>>, vector<2x16xf32>,
    %658 = vector.extract_strided_slice %552 {offsets = [12, 0], sizes = [2, 48], strides = [1, 1]} : vector<16x48xf32> to vector<2x48xf32>
    %cst_181 = arith.constant dense<0.000000e+00> : vector<2x48xf32>
    %659 = tpu.matmul %625, %556, %cst_181 {dimension_numbers = #tpu.dot_dimension_numbers<[1], [0], [0], [1], [0, 0, 1, 1], [], []>} : vector<2x16xf32>, vector<16x48xf32>, vector<2x48xf32> -> vector<2x48xf32>
    %660 = vector.broadcast %560 : vector<1x48xf32> to vector<2x48xf32>
    %661 = arith.addf %659, %660 : vector<2x48xf32>
    %662 = vector.extract_strided_slice %658 {offsets = [0, 0], sizes = [2, 16], strides = [1, 1]} : vector<2x48xf32> to vector<2x16xf32>
    %663 = vector.extract_strided_slice %661 {offsets = [0, 0], sizes = [2, 16], strides = [1, 1]} : vector<2x48xf32> to vector<2x16xf32>
    %664 = arith.addf %662, %663 : vector<2x16xf32>
    %665 = arith.negf %664 : vector<2x16xf32>
    %666 = math.exp %665 : vector<2x16xf32>
    %cst_182 = arith.constant 1.000000e+00 : f32
    %667 = vector.broadcast %cst_182 : f32 to vector<2x16xf32>
    %668 = arith.addf %667, %666 : vector<2x16xf32>
    %669 = arith.divf %667, %668 : vector<2x16xf32>
    %670 = vector.extract_strided_slice %658 {offsets = [0, 16], sizes = [2, 16], strides = [1, 1]} : vector<2x48xf32> to vector<2x16xf32>
    %671 = vector.extract_strided_slice %661 {offsets = [0, 16], sizes = [2, 16], strides = [1, 1]} : vector<2x48xf32> to vector<2x16xf32>
    %672 = arith.addf %670, %671 : vector<2x16xf32>
    %673 = arith.negf %672 : vector<2x16xf32>
    %674 = math.exp %673 : vector<2x16xf32>
    %cst_183 = arith.constant 1.000000e+00 : f32
    %675 = vector.broadcast %cst_183 : f32 to vector<2x16xf32>
    %676 = arith.addf %675, %674 : vector<2x16xf32>
    %677 = arith.divf %675, %676 : vector<2x16xf32>
    %678 = vector.extract_strided_slice %658 {offsets = [0, 32], sizes = [2, 16], strides = [1, 1]} : vector<2x48xf32> to vector<2x16xf32>
    %679 = vector.extract_strided_slice %661 {offsets = [0, 32], sizes = [2, 16], strides = [1, 1]} : vector<2x48xf32> to vector<2x16xf32>
    %680 = arith.mulf %669, %679 : vector<2x16xf32>
    %681 = arith.addf %678, %680 : vector<2x16xf32>
    %682 = math.tanh %681 : vector<2x16xf32>
    %cst_184 = arith.constant 1.000000e+00 : f32
    %683 = vector.broadcast %cst_184 : f32 to vector<2x16xf32>
    %684 = arith.subf %683, %677 : vector<2x16xf32>
    %685 = arith.mulf %684, %682 : vector<2x16xf32>
    %686 = arith.mulf %677, %625 : vector<2x16xf32>
    %687 = arith.addf %685, %686 : vector<2x16xf32>
    %c12_185 = arith.constant 12 : index
    %c0_186 = arith.constant 0 : index
    %688 = vector.load %arg13[%c12_185, %c0_186] : memref<16x16xf32, #tpu.memory_space<vmem>>, vector<2x16xf32>
    tpu.vector_store %arg13[%c12_185, %c0_186], %687 {strides = array<i32>} : memref<16x16xf32, #tpu.memory_space<vmem>>, vector<2x16xf32>,
    %689 = vector.extract_strided_slice %541 {offsets = [4, 0], sizes = [2, 48], strides = [1, 1]} : vector<16x48xf32> to vector<2x48xf32>
    %cst_187 = arith.constant dense<0.000000e+00> : vector<2x48xf32>
    %690 = tpu.matmul %656, %554, %cst_187 {dimension_numbers = #tpu.dot_dimension_numbers<[1], [0], [0], [1], [0, 0, 1, 1], [], []>} : vector<2x16xf32>, vector<16x48xf32>, vector<2x48xf32> -> vector<2x48xf32>
    %691 = vector.broadcast %558 : vector<1x48xf32> to vector<2x48xf32>
    %692 = arith.addf %690, %691 : vector<2x48xf32>
    %693 = vector.extract_strided_slice %689 {offsets = [0, 0], sizes = [2, 16], strides = [1, 1]} : vector<2x48xf32> to vector<2x16xf32>
    %694 = vector.extract_strided_slice %692 {offsets = [0, 0], sizes = [2, 16], strides = [1, 1]} : vector<2x48xf32> to vector<2x16xf32>
    %695 = arith.addf %693, %694 : vector<2x16xf32>
    %696 = arith.negf %695 : vector<2x16xf32>
    %697 = math.exp %696 : vector<2x16xf32>
    %cst_188 = arith.constant 1.000000e+00 : f32
    %698 = vector.broadcast %cst_188 : f32 to vector<2x16xf32>
    %699 = arith.addf %698, %697 : vector<2x16xf32>
    %700 = arith.divf %698, %699 : vector<2x16xf32>
    %701 = vector.extract_strided_slice %689 {offsets = [0, 16], sizes = [2, 16], strides = [1, 1]} : vector<2x48xf32> to vector<2x16xf32>
    %702 = vector.extract_strided_slice %692 {offsets = [0, 16], sizes = [2, 16], strides = [1, 1]} : vector<2x48xf32> to vector<2x16xf32>
    %703 = arith.addf %701, %702 : vector<2x16xf32>
    %704 = arith.negf %703 : vector<2x16xf32>
    %705 = math.exp %704 : vector<2x16xf32>
    %cst_189 = arith.constant 1.000000e+00 : f32
    %706 = vector.broadcast %cst_189 : f32 to vector<2x16xf32>
    %707 = arith.addf %706, %705 : vector<2x16xf32>
    %708 = arith.divf %706, %707 : vector<2x16xf32>
    %709 = vector.extract_strided_slice %689 {offsets = [0, 32], sizes = [2, 16], strides = [1, 1]} : vector<2x48xf32> to vector<2x16xf32>
    %710 = vector.extract_strided_slice %692 {offsets = [0, 32], sizes = [2, 16], strides = [1, 1]} : vector<2x48xf32> to vector<2x16xf32>
    %711 = arith.mulf %700, %710 : vector<2x16xf32>
    %712 = arith.addf %709, %711 : vector<2x16xf32>
    %713 = math.tanh %712 : vector<2x16xf32>
    %cst_190 = arith.constant 1.000000e+00 : f32
    %714 = vector.broadcast %cst_190 : f32 to vector<2x16xf32>
    %715 = arith.subf %714, %708 : vector<2x16xf32>
    %716 = arith.mulf %715, %713 : vector<2x16xf32>
    %717 = arith.mulf %708, %656 : vector<2x16xf32>
    %718 = arith.addf %716, %717 : vector<2x16xf32>
    %c4_191 = arith.constant 4 : index
    %c0_192 = arith.constant 0 : index
    %719 = vector.load %arg12[%c4_191, %c0_192] : memref<16x16xf32, #tpu.memory_space<vmem>>, vector<2x16xf32>
    tpu.vector_store %arg12[%c4_191, %c0_192], %718 {strides = array<i32>} : memref<16x16xf32, #tpu.memory_space<vmem>>, vector<2x16xf32>,
    %720 = vector.extract_strided_slice %552 {offsets = [10, 0], sizes = [2, 48], strides = [1, 1]} : vector<16x48xf32> to vector<2x48xf32>
    %cst_193 = arith.constant dense<0.000000e+00> : vector<2x48xf32>
    %721 = tpu.matmul %687, %556, %cst_193 {dimension_numbers = #tpu.dot_dimension_numbers<[1], [0], [0], [1], [0, 0, 1, 1], [], []>} : vector<2x16xf32>, vector<16x48xf32>, vector<2x48xf32> -> vector<2x48xf32>
    %722 = vector.broadcast %560 : vector<1x48xf32> to vector<2x48xf32>
    %723 = arith.addf %721, %722 : vector<2x48xf32>
    %724 = vector.extract_strided_slice %720 {offsets = [0, 0], sizes = [2, 16], strides = [1, 1]} : vector<2x48xf32> to vector<2x16xf32>
    %725 = vector.extract_strided_slice %723 {offsets = [0, 0], sizes = [2, 16], strides = [1, 1]} : vector<2x48xf32> to vector<2x16xf32>
    %726 = arith.addf %724, %725 : vector<2x16xf32>
    %727 = arith.negf %726 : vector<2x16xf32>
    %728 = math.exp %727 : vector<2x16xf32>
    %cst_194 = arith.constant 1.000000e+00 : f32
    %729 = vector.broadcast %cst_194 : f32 to vector<2x16xf32>
    %730 = arith.addf %729, %728 : vector<2x16xf32>
    %731 = arith.divf %729, %730 : vector<2x16xf32>
    %732 = vector.extract_strided_slice %720 {offsets = [0, 16], sizes = [2, 16], strides = [1, 1]} : vector<2x48xf32> to vector<2x16xf32>
    %733 = vector.extract_strided_slice %723 {offsets = [0, 16], sizes = [2, 16], strides = [1, 1]} : vector<2x48xf32> to vector<2x16xf32>
    %734 = arith.addf %732, %733 : vector<2x16xf32>
    %735 = arith.negf %734 : vector<2x16xf32>
    %736 = math.exp %735 : vector<2x16xf32>
    %cst_195 = arith.constant 1.000000e+00 : f32
    %737 = vector.broadcast %cst_195 : f32 to vector<2x16xf32>
    %738 = arith.addf %737, %736 : vector<2x16xf32>
    %739 = arith.divf %737, %738 : vector<2x16xf32>
    %740 = vector.extract_strided_slice %720 {offsets = [0, 32], sizes = [2, 16], strides = [1, 1]} : vector<2x48xf32> to vector<2x16xf32>
    %741 = vector.extract_strided_slice %723 {offsets = [0, 32], sizes = [2, 16], strides = [1, 1]} : vector<2x48xf32> to vector<2x16xf32>
    %742 = arith.mulf %731, %741 : vector<2x16xf32>
    %743 = arith.addf %740, %742 : vector<2x16xf32>
    %744 = math.tanh %743 : vector<2x16xf32>
    %cst_196 = arith.constant 1.000000e+00 : f32
    %745 = vector.broadcast %cst_196 : f32 to vector<2x16xf32>
    %746 = arith.subf %745, %739 : vector<2x16xf32>
    %747 = arith.mulf %746, %744 : vector<2x16xf32>
    %748 = arith.mulf %739, %687 : vector<2x16xf32>
    %749 = arith.addf %747, %748 : vector<2x16xf32>
    %c10_197 = arith.constant 10 : index
    %c0_198 = arith.constant 0 : index
    %750 = vector.load %arg13[%c10_197, %c0_198] : memref<16x16xf32, #tpu.memory_space<vmem>>, vector<2x16xf32>
    tpu.vector_store %arg13[%c10_197, %c0_198], %749 {strides = array<i32>} : memref<16x16xf32, #tpu.memory_space<vmem>>, vector<2x16xf32>,
    %751 = vector.extract_strided_slice %541 {offsets = [6, 0], sizes = [2, 48], strides = [1, 1]} : vector<16x48xf32> to vector<2x48xf32>
    %cst_199 = arith.constant dense<0.000000e+00> : vector<2x48xf32>
    %752 = tpu.matmul %718, %554, %cst_199 {dimension_numbers = #tpu.dot_dimension_numbers<[1], [0], [0], [1], [0, 0, 1, 1], [], []>} : vector<2x16xf32>, vector<16x48xf32>, vector<2x48xf32> -> vector<2x48xf32>
    %753 = vector.broadcast %558 : vector<1x48xf32> to vector<2x48xf32>
    %754 = arith.addf %752, %753 : vector<2x48xf32>
    %755 = vector.extract_strided_slice %751 {offsets = [0, 0], sizes = [2, 16], strides = [1, 1]} : vector<2x48xf32> to vector<2x16xf32>
    %756 = vector.extract_strided_slice %754 {offsets = [0, 0], sizes = [2, 16], strides = [1, 1]} : vector<2x48xf32> to vector<2x16xf32>
    %757 = arith.addf %755, %756 : vector<2x16xf32>
    %758 = arith.negf %757 : vector<2x16xf32>
    %759 = math.exp %758 : vector<2x16xf32>
    %cst_200 = arith.constant 1.000000e+00 : f32
    %760 = vector.broadcast %cst_200 : f32 to vector<2x16xf32>
    %761 = arith.addf %760, %759 : vector<2x16xf32>
    %762 = arith.divf %760, %761 : vector<2x16xf32>
    %763 = vector.extract_strided_slice %751 {offsets = [0, 16], sizes = [2, 16], strides = [1, 1]} : vector<2x48xf32> to vector<2x16xf32>
    %764 = vector.extract_strided_slice %754 {offsets = [0, 16], sizes = [2, 16], strides = [1, 1]} : vector<2x48xf32> to vector<2x16xf32>
    %765 = arith.addf %763, %764 : vector<2x16xf32>
    %766 = arith.negf %765 : vector<2x16xf32>
    %767 = math.exp %766 : vector<2x16xf32>
    %cst_201 = arith.constant 1.000000e+00 : f32
    %768 = vector.broadcast %cst_201 : f32 to vector<2x16xf32>
    %769 = arith.addf %768, %767 : vector<2x16xf32>
    %770 = arith.divf %768, %769 : vector<2x16xf32>
    %771 = vector.extract_strided_slice %751 {offsets = [0, 32], sizes = [2, 16], strides = [1, 1]} : vector<2x48xf32> to vector<2x16xf32>
    %772 = vector.extract_strided_slice %754 {offsets = [0, 32], sizes = [2, 16], strides = [1, 1]} : vector<2x48xf32> to vector<2x16xf32>
    %773 = arith.mulf %762, %772 : vector<2x16xf32>
    %774 = arith.addf %771, %773 : vector<2x16xf32>
    %775 = math.tanh %774 : vector<2x16xf32>
    %cst_202 = arith.constant 1.000000e+00 : f32
    %776 = vector.broadcast %cst_202 : f32 to vector<2x16xf32>
    %777 = arith.subf %776, %770 : vector<2x16xf32>
    %778 = arith.mulf %777, %775 : vector<2x16xf32>
    %779 = arith.mulf %770, %718 : vector<2x16xf32>
    %780 = arith.addf %778, %779 : vector<2x16xf32>
    %c6_203 = arith.constant 6 : index
    %c0_204 = arith.constant 0 : index
    %781 = vector.load %arg12[%c6_203, %c0_204] : memref<16x16xf32, #tpu.memory_space<vmem>>, vector<2x16xf32>
    tpu.vector_store %arg12[%c6_203, %c0_204], %780 {strides = array<i32>} : memref<16x16xf32, #tpu.memory_space<vmem>>, vector<2x16xf32>,
    %782 = vector.extract_strided_slice %552 {offsets = [8, 0], sizes = [2, 48], strides = [1, 1]} : vector<16x48xf32> to vector<2x48xf32>
    %cst_205 = arith.constant dense<0.000000e+00> : vector<2x48xf32>
    %783 = tpu.matmul %749, %556, %cst_205 {dimension_numbers = #tpu.dot_dimension_numbers<[1], [0], [0], [1], [0, 0, 1, 1], [], []>} : vector<2x16xf32>, vector<16x48xf32>, vector<2x48xf32> -> vector<2x48xf32>
    %784 = vector.broadcast %560 : vector<1x48xf32> to vector<2x48xf32>
    %785 = arith.addf %783, %784 : vector<2x48xf32>
    %786 = vector.extract_strided_slice %782 {offsets = [0, 0], sizes = [2, 16], strides = [1, 1]} : vector<2x48xf32> to vector<2x16xf32>
    %787 = vector.extract_strided_slice %785 {offsets = [0, 0], sizes = [2, 16], strides = [1, 1]} : vector<2x48xf32> to vector<2x16xf32>
    %788 = arith.addf %786, %787 : vector<2x16xf32>
    %789 = arith.negf %788 : vector<2x16xf32>
    %790 = math.exp %789 : vector<2x16xf32>
    %cst_206 = arith.constant 1.000000e+00 : f32
    %791 = vector.broadcast %cst_206 : f32 to vector<2x16xf32>
    %792 = arith.addf %791, %790 : vector<2x16xf32>
    %793 = arith.divf %791, %792 : vector<2x16xf32>
    %794 = vector.extract_strided_slice %782 {offsets = [0, 16], sizes = [2, 16], strides = [1, 1]} : vector<2x48xf32> to vector<2x16xf32>
    %795 = vector.extract_strided_slice %785 {offsets = [0, 16], sizes = [2, 16], strides = [1, 1]} : vector<2x48xf32> to vector<2x16xf32>
    %796 = arith.addf %794, %795 : vector<2x16xf32>
    %797 = arith.negf %796 : vector<2x16xf32>
    %798 = math.exp %797 : vector<2x16xf32>
    %cst_207 = arith.constant 1.000000e+00 : f32
    %799 = vector.broadcast %cst_207 : f32 to vector<2x16xf32>
    %800 = arith.addf %799, %798 : vector<2x16xf32>
    %801 = arith.divf %799, %800 : vector<2x16xf32>
    %802 = vector.extract_strided_slice %782 {offsets = [0, 32], sizes = [2, 16], strides = [1, 1]} : vector<2x48xf32> to vector<2x16xf32>
    %803 = vector.extract_strided_slice %785 {offsets = [0, 32], sizes = [2, 16], strides = [1, 1]} : vector<2x48xf32> to vector<2x16xf32>
    %804 = arith.mulf %793, %803 : vector<2x16xf32>
    %805 = arith.addf %802, %804 : vector<2x16xf32>
    %806 = math.tanh %805 : vector<2x16xf32>
    %cst_208 = arith.constant 1.000000e+00 : f32
    %807 = vector.broadcast %cst_208 : f32 to vector<2x16xf32>
    %808 = arith.subf %807, %801 : vector<2x16xf32>
    %809 = arith.mulf %808, %806 : vector<2x16xf32>
    %810 = arith.mulf %801, %749 : vector<2x16xf32>
    %811 = arith.addf %809, %810 : vector<2x16xf32>
    %c8_209 = arith.constant 8 : index
    %c0_210 = arith.constant 0 : index
    %812 = vector.load %arg13[%c8_209, %c0_210] : memref<16x16xf32, #tpu.memory_space<vmem>>, vector<2x16xf32>
    tpu.vector_store %arg13[%c8_209, %c0_210], %811 {strides = array<i32>} : memref<16x16xf32, #tpu.memory_space<vmem>>, vector<2x16xf32>,
    %813 = vector.extract_strided_slice %541 {offsets = [8, 0], sizes = [2, 48], strides = [1, 1]} : vector<16x48xf32> to vector<2x48xf32>
    %cst_211 = arith.constant dense<0.000000e+00> : vector<2x48xf32>
    %814 = tpu.matmul %780, %554, %cst_211 {dimension_numbers = #tpu.dot_dimension_numbers<[1], [0], [0], [1], [0, 0, 1, 1], [], []>} : vector<2x16xf32>, vector<16x48xf32>, vector<2x48xf32> -> vector<2x48xf32>
    %815 = vector.broadcast %558 : vector<1x48xf32> to vector<2x48xf32>
    %816 = arith.addf %814, %815 : vector<2x48xf32>
    %817 = vector.extract_strided_slice %813 {offsets = [0, 0], sizes = [2, 16], strides = [1, 1]} : vector<2x48xf32> to vector<2x16xf32>
    %818 = vector.extract_strided_slice %816 {offsets = [0, 0], sizes = [2, 16], strides = [1, 1]} : vector<2x48xf32> to vector<2x16xf32>
    %819 = arith.addf %817, %818 : vector<2x16xf32>
    %820 = arith.negf %819 : vector<2x16xf32>
    %821 = math.exp %820 : vector<2x16xf32>
    %cst_212 = arith.constant 1.000000e+00 : f32
    %822 = vector.broadcast %cst_212 : f32 to vector<2x16xf32>
    %823 = arith.addf %822, %821 : vector<2x16xf32>
    %824 = arith.divf %822, %823 : vector<2x16xf32>
    %825 = vector.extract_strided_slice %813 {offsets = [0, 16], sizes = [2, 16], strides = [1, 1]} : vector<2x48xf32> to vector<2x16xf32>
    %826 = vector.extract_strided_slice %816 {offsets = [0, 16], sizes = [2, 16], strides = [1, 1]} : vector<2x48xf32> to vector<2x16xf32>
    %827 = arith.addf %825, %826 : vector<2x16xf32>
    %828 = arith.negf %827 : vector<2x16xf32>
    %829 = math.exp %828 : vector<2x16xf32>
    %cst_213 = arith.constant 1.000000e+00 : f32
    %830 = vector.broadcast %cst_213 : f32 to vector<2x16xf32>
    %831 = arith.addf %830, %829 : vector<2x16xf32>
    %832 = arith.divf %830, %831 : vector<2x16xf32>
    %833 = vector.extract_strided_slice %813 {offsets = [0, 32], sizes = [2, 16], strides = [1, 1]} : vector<2x48xf32> to vector<2x16xf32>
    %834 = vector.extract_strided_slice %816 {offsets = [0, 32], sizes = [2, 16], strides = [1, 1]} : vector<2x48xf32> to vector<2x16xf32>
    %835 = arith.mulf %824, %834 : vector<2x16xf32>
    %836 = arith.addf %833, %835 : vector<2x16xf32>
    %837 = math.tanh %836 : vector<2x16xf32>
    %cst_214 = arith.constant 1.000000e+00 : f32
    %838 = vector.broadcast %cst_214 : f32 to vector<2x16xf32>
    %839 = arith.subf %838, %832 : vector<2x16xf32>
    %840 = arith.mulf %839, %837 : vector<2x16xf32>
    %841 = arith.mulf %832, %780 : vector<2x16xf32>
    %842 = arith.addf %840, %841 : vector<2x16xf32>
    %c8_215 = arith.constant 8 : index
    %c0_216 = arith.constant 0 : index
    %843 = vector.load %arg12[%c8_215, %c0_216] : memref<16x16xf32, #tpu.memory_space<vmem>>, vector<2x16xf32>
    tpu.vector_store %arg12[%c8_215, %c0_216], %842 {strides = array<i32>} : memref<16x16xf32, #tpu.memory_space<vmem>>, vector<2x16xf32>,
    %844 = vector.extract_strided_slice %552 {offsets = [6, 0], sizes = [2, 48], strides = [1, 1]} : vector<16x48xf32> to vector<2x48xf32>
    %cst_217 = arith.constant dense<0.000000e+00> : vector<2x48xf32>
    %845 = tpu.matmul %811, %556, %cst_217 {dimension_numbers = #tpu.dot_dimension_numbers<[1], [0], [0], [1], [0, 0, 1, 1], [], []>} : vector<2x16xf32>, vector<16x48xf32>, vector<2x48xf32> -> vector<2x48xf32>
    %846 = vector.broadcast %560 : vector<1x48xf32> to vector<2x48xf32>
    %847 = arith.addf %845, %846 : vector<2x48xf32>
    %848 = vector.extract_strided_slice %844 {offsets = [0, 0], sizes = [2, 16], strides = [1, 1]} : vector<2x48xf32> to vector<2x16xf32>
    %849 = vector.extract_strided_slice %847 {offsets = [0, 0], sizes = [2, 16], strides = [1, 1]} : vector<2x48xf32> to vector<2x16xf32>
    %850 = arith.addf %848, %849 : vector<2x16xf32>
    %851 = arith.negf %850 : vector<2x16xf32>
    %852 = math.exp %851 : vector<2x16xf32>
    %cst_218 = arith.constant 1.000000e+00 : f32
    %853 = vector.broadcast %cst_218 : f32 to vector<2x16xf32>
    %854 = arith.addf %853, %852 : vector<2x16xf32>
    %855 = arith.divf %853, %854 : vector<2x16xf32>
    %856 = vector.extract_strided_slice %844 {offsets = [0, 16], sizes = [2, 16], strides = [1, 1]} : vector<2x48xf32> to vector<2x16xf32>
    %857 = vector.extract_strided_slice %847 {offsets = [0, 16], sizes = [2, 16], strides = [1, 1]} : vector<2x48xf32> to vector<2x16xf32>
    %858 = arith.addf %856, %857 : vector<2x16xf32>
    %859 = arith.negf %858 : vector<2x16xf32>
    %860 = math.exp %859 : vector<2x16xf32>
    %cst_219 = arith.constant 1.000000e+00 : f32
    %861 = vector.broadcast %cst_219 : f32 to vector<2x16xf32>
    %862 = arith.addf %861, %860 : vector<2x16xf32>
    %863 = arith.divf %861, %862 : vector<2x16xf32>
    %864 = vector.extract_strided_slice %844 {offsets = [0, 32], sizes = [2, 16], strides = [1, 1]} : vector<2x48xf32> to vector<2x16xf32>
    %865 = vector.extract_strided_slice %847 {offsets = [0, 32], sizes = [2, 16], strides = [1, 1]} : vector<2x48xf32> to vector<2x16xf32>
    %866 = arith.mulf %855, %865 : vector<2x16xf32>
    %867 = arith.addf %864, %866 : vector<2x16xf32>
    %868 = math.tanh %867 : vector<2x16xf32>
    %cst_220 = arith.constant 1.000000e+00 : f32
    %869 = vector.broadcast %cst_220 : f32 to vector<2x16xf32>
    %870 = arith.subf %869, %863 : vector<2x16xf32>
    %871 = arith.mulf %870, %868 : vector<2x16xf32>
    %872 = arith.mulf %863, %811 : vector<2x16xf32>
    %873 = arith.addf %871, %872 : vector<2x16xf32>
    %c6_221 = arith.constant 6 : index
    %c0_222 = arith.constant 0 : index
    %874 = vector.load %arg13[%c6_221, %c0_222] : memref<16x16xf32, #tpu.memory_space<vmem>>, vector<2x16xf32>
    tpu.vector_store %arg13[%c6_221, %c0_222], %873 {strides = array<i32>} : memref<16x16xf32, #tpu.memory_space<vmem>>, vector<2x16xf32>,
    %875 = vector.extract_strided_slice %541 {offsets = [10, 0], sizes = [2, 48], strides = [1, 1]} : vector<16x48xf32> to vector<2x48xf32>
    %cst_223 = arith.constant dense<0.000000e+00> : vector<2x48xf32>
    %876 = tpu.matmul %842, %554, %cst_223 {dimension_numbers = #tpu.dot_dimension_numbers<[1], [0], [0], [1], [0, 0, 1, 1], [], []>} : vector<2x16xf32>, vector<16x48xf32>, vector<2x48xf32> -> vector<2x48xf32>
    %877 = vector.broadcast %558 : vector<1x48xf32> to vector<2x48xf32>
    %878 = arith.addf %876, %877 : vector<2x48xf32>
    %879 = vector.extract_strided_slice %875 {offsets = [0, 0], sizes = [2, 16], strides = [1, 1]} : vector<2x48xf32> to vector<2x16xf32>
    %880 = vector.extract_strided_slice %878 {offsets = [0, 0], sizes = [2, 16], strides = [1, 1]} : vector<2x48xf32> to vector<2x16xf32>
    %881 = arith.addf %879, %880 : vector<2x16xf32>
    %882 = arith.negf %881 : vector<2x16xf32>
    %883 = math.exp %882 : vector<2x16xf32>
    %cst_224 = arith.constant 1.000000e+00 : f32
    %884 = vector.broadcast %cst_224 : f32 to vector<2x16xf32>
    %885 = arith.addf %884, %883 : vector<2x16xf32>
    %886 = arith.divf %884, %885 : vector<2x16xf32>
    %887 = vector.extract_strided_slice %875 {offsets = [0, 16], sizes = [2, 16], strides = [1, 1]} : vector<2x48xf32> to vector<2x16xf32>
    %888 = vector.extract_strided_slice %878 {offsets = [0, 16], sizes = [2, 16], strides = [1, 1]} : vector<2x48xf32> to vector<2x16xf32>
    %889 = arith.addf %887, %888 : vector<2x16xf32>
    %890 = arith.negf %889 : vector<2x16xf32>
    %891 = math.exp %890 : vector<2x16xf32>
    %cst_225 = arith.constant 1.000000e+00 : f32
    %892 = vector.broadcast %cst_225 : f32 to vector<2x16xf32>
    %893 = arith.addf %892, %891 : vector<2x16xf32>
    %894 = arith.divf %892, %893 : vector<2x16xf32>
    %895 = vector.extract_strided_slice %875 {offsets = [0, 32], sizes = [2, 16], strides = [1, 1]} : vector<2x48xf32> to vector<2x16xf32>
    %896 = vector.extract_strided_slice %878 {offsets = [0, 32], sizes = [2, 16], strides = [1, 1]} : vector<2x48xf32> to vector<2x16xf32>
    %897 = arith.mulf %886, %896 : vector<2x16xf32>
    %898 = arith.addf %895, %897 : vector<2x16xf32>
    %899 = math.tanh %898 : vector<2x16xf32>
    %cst_226 = arith.constant 1.000000e+00 : f32
    %900 = vector.broadcast %cst_226 : f32 to vector<2x16xf32>
    %901 = arith.subf %900, %894 : vector<2x16xf32>
    %902 = arith.mulf %901, %899 : vector<2x16xf32>
    %903 = arith.mulf %894, %842 : vector<2x16xf32>
    %904 = arith.addf %902, %903 : vector<2x16xf32>
    %c10_227 = arith.constant 10 : index
    %c0_228 = arith.constant 0 : index
    %905 = vector.load %arg12[%c10_227, %c0_228] : memref<16x16xf32, #tpu.memory_space<vmem>>, vector<2x16xf32>
    tpu.vector_store %arg12[%c10_227, %c0_228], %904 {strides = array<i32>} : memref<16x16xf32, #tpu.memory_space<vmem>>, vector<2x16xf32>,
    %906 = vector.extract_strided_slice %552 {offsets = [4, 0], sizes = [2, 48], strides = [1, 1]} : vector<16x48xf32> to vector<2x48xf32>
    %cst_229 = arith.constant dense<0.000000e+00> : vector<2x48xf32>
    %907 = tpu.matmul %873, %556, %cst_229 {dimension_numbers = #tpu.dot_dimension_numbers<[1], [0], [0], [1], [0, 0, 1, 1], [], []>} : vector<2x16xf32>, vector<16x48xf32>, vector<2x48xf32> -> vector<2x48xf32>
    %908 = vector.broadcast %560 : vector<1x48xf32> to vector<2x48xf32>
    %909 = arith.addf %907, %908 : vector<2x48xf32>
    %910 = vector.extract_strided_slice %906 {offsets = [0, 0], sizes = [2, 16], strides = [1, 1]} : vector<2x48xf32> to vector<2x16xf32>
    %911 = vector.extract_strided_slice %909 {offsets = [0, 0], sizes = [2, 16], strides = [1, 1]} : vector<2x48xf32> to vector<2x16xf32>
    %912 = arith.addf %910, %911 : vector<2x16xf32>
    %913 = arith.negf %912 : vector<2x16xf32>
    %914 = math.exp %913 : vector<2x16xf32>
    %cst_230 = arith.constant 1.000000e+00 : f32
    %915 = vector.broadcast %cst_230 : f32 to vector<2x16xf32>
    %916 = arith.addf %915, %914 : vector<2x16xf32>
    %917 = arith.divf %915, %916 : vector<2x16xf32>
    %918 = vector.extract_strided_slice %906 {offsets = [0, 16], sizes = [2, 16], strides = [1, 1]} : vector<2x48xf32> to vector<2x16xf32>
    %919 = vector.extract_strided_slice %909 {offsets = [0, 16], sizes = [2, 16], strides = [1, 1]} : vector<2x48xf32> to vector<2x16xf32>
    %920 = arith.addf %918, %919 : vector<2x16xf32>
    %921 = arith.negf %920 : vector<2x16xf32>
    %922 = math.exp %921 : vector<2x16xf32>
    %cst_231 = arith.constant 1.000000e+00 : f32
    %923 = vector.broadcast %cst_231 : f32 to vector<2x16xf32>
    %924 = arith.addf %923, %922 : vector<2x16xf32>
    %925 = arith.divf %923, %924 : vector<2x16xf32>
    %926 = vector.extract_strided_slice %906 {offsets = [0, 32], sizes = [2, 16], strides = [1, 1]} : vector<2x48xf32> to vector<2x16xf32>
    %927 = vector.extract_strided_slice %909 {offsets = [0, 32], sizes = [2, 16], strides = [1, 1]} : vector<2x48xf32> to vector<2x16xf32>
    %928 = arith.mulf %917, %927 : vector<2x16xf32>
    %929 = arith.addf %926, %928 : vector<2x16xf32>
    %930 = math.tanh %929 : vector<2x16xf32>
    %cst_232 = arith.constant 1.000000e+00 : f32
    %931 = vector.broadcast %cst_232 : f32 to vector<2x16xf32>
    %932 = arith.subf %931, %925 : vector<2x16xf32>
    %933 = arith.mulf %932, %930 : vector<2x16xf32>
    %934 = arith.mulf %925, %873 : vector<2x16xf32>
    %935 = arith.addf %933, %934 : vector<2x16xf32>
    %c4_233 = arith.constant 4 : index
    %c0_234 = arith.constant 0 : index
    %936 = vector.load %arg13[%c4_233, %c0_234] : memref<16x16xf32, #tpu.memory_space<vmem>>, vector<2x16xf32>
    tpu.vector_store %arg13[%c4_233, %c0_234], %935 {strides = array<i32>} : memref<16x16xf32, #tpu.memory_space<vmem>>, vector<2x16xf32>,
    %937 = vector.extract_strided_slice %541 {offsets = [12, 0], sizes = [2, 48], strides = [1, 1]} : vector<16x48xf32> to vector<2x48xf32>
    %cst_235 = arith.constant dense<0.000000e+00> : vector<2x48xf32>
    %938 = tpu.matmul %904, %554, %cst_235 {dimension_numbers = #tpu.dot_dimension_numbers<[1], [0], [0], [1], [0, 0, 1, 1], [], []>} : vector<2x16xf32>, vector<16x48xf32>, vector<2x48xf32> -> vector<2x48xf32>
    %939 = vector.broadcast %558 : vector<1x48xf32> to vector<2x48xf32>
    %940 = arith.addf %938, %939 : vector<2x48xf32>
    %941 = vector.extract_strided_slice %937 {offsets = [0, 0], sizes = [2, 16], strides = [1, 1]} : vector<2x48xf32> to vector<2x16xf32>
    %942 = vector.extract_strided_slice %940 {offsets = [0, 0], sizes = [2, 16], strides = [1, 1]} : vector<2x48xf32> to vector<2x16xf32>
    %943 = arith.addf %941, %942 : vector<2x16xf32>
    %944 = arith.negf %943 : vector<2x16xf32>
    %945 = math.exp %944 : vector<2x16xf32>
    %cst_236 = arith.constant 1.000000e+00 : f32
    %946 = vector.broadcast %cst_236 : f32 to vector<2x16xf32>
    %947 = arith.addf %946, %945 : vector<2x16xf32>
    %948 = arith.divf %946, %947 : vector<2x16xf32>
    %949 = vector.extract_strided_slice %937 {offsets = [0, 16], sizes = [2, 16], strides = [1, 1]} : vector<2x48xf32> to vector<2x16xf32>
    %950 = vector.extract_strided_slice %940 {offsets = [0, 16], sizes = [2, 16], strides = [1, 1]} : vector<2x48xf32> to vector<2x16xf32>
    %951 = arith.addf %949, %950 : vector<2x16xf32>
    %952 = arith.negf %951 : vector<2x16xf32>
    %953 = math.exp %952 : vector<2x16xf32>
    %cst_237 = arith.constant 1.000000e+00 : f32
    %954 = vector.broadcast %cst_237 : f32 to vector<2x16xf32>
    %955 = arith.addf %954, %953 : vector<2x16xf32>
    %956 = arith.divf %954, %955 : vector<2x16xf32>
    %957 = vector.extract_strided_slice %937 {offsets = [0, 32], sizes = [2, 16], strides = [1, 1]} : vector<2x48xf32> to vector<2x16xf32>
    %958 = vector.extract_strided_slice %940 {offsets = [0, 32], sizes = [2, 16], strides = [1, 1]} : vector<2x48xf32> to vector<2x16xf32>
    %959 = arith.mulf %948, %958 : vector<2x16xf32>
    %960 = arith.addf %957, %959 : vector<2x16xf32>
    %961 = math.tanh %960 : vector<2x16xf32>
    %cst_238 = arith.constant 1.000000e+00 : f32
    %962 = vector.broadcast %cst_238 : f32 to vector<2x16xf32>
    %963 = arith.subf %962, %956 : vector<2x16xf32>
    %964 = arith.mulf %963, %961 : vector<2x16xf32>
    %965 = arith.mulf %956, %904 : vector<2x16xf32>
    %966 = arith.addf %964, %965 : vector<2x16xf32>
    %c12_239 = arith.constant 12 : index
    %c0_240 = arith.constant 0 : index
    %967 = vector.load %arg12[%c12_239, %c0_240] : memref<16x16xf32, #tpu.memory_space<vmem>>, vector<2x16xf32>
    tpu.vector_store %arg12[%c12_239, %c0_240], %966 {strides = array<i32>} : memref<16x16xf32, #tpu.memory_space<vmem>>, vector<2x16xf32>,
    %968 = vector.extract_strided_slice %552 {offsets = [2, 0], sizes = [2, 48], strides = [1, 1]} : vector<16x48xf32> to vector<2x48xf32>
    %cst_241 = arith.constant dense<0.000000e+00> : vector<2x48xf32>
    %969 = tpu.matmul %935, %556, %cst_241 {dimension_numbers = #tpu.dot_dimension_numbers<[1], [0], [0], [1], [0, 0, 1, 1], [], []>} : vector<2x16xf32>, vector<16x48xf32>, vector<2x48xf32> -> vector<2x48xf32>
    %970 = vector.broadcast %560 : vector<1x48xf32> to vector<2x48xf32>
    %971 = arith.addf %969, %970 : vector<2x48xf32>
    %972 = vector.extract_strided_slice %968 {offsets = [0, 0], sizes = [2, 16], strides = [1, 1]} : vector<2x48xf32> to vector<2x16xf32>
    %973 = vector.extract_strided_slice %971 {offsets = [0, 0], sizes = [2, 16], strides = [1, 1]} : vector<2x48xf32> to vector<2x16xf32>
    %974 = arith.addf %972, %973 : vector<2x16xf32>
    %975 = arith.negf %974 : vector<2x16xf32>
    %976 = math.exp %975 : vector<2x16xf32>
    %cst_242 = arith.constant 1.000000e+00 : f32
    %977 = vector.broadcast %cst_242 : f32 to vector<2x16xf32>
    %978 = arith.addf %977, %976 : vector<2x16xf32>
    %979 = arith.divf %977, %978 : vector<2x16xf32>
    %980 = vector.extract_strided_slice %968 {offsets = [0, 16], sizes = [2, 16], strides = [1, 1]} : vector<2x48xf32> to vector<2x16xf32>
    %981 = vector.extract_strided_slice %971 {offsets = [0, 16], sizes = [2, 16], strides = [1, 1]} : vector<2x48xf32> to vector<2x16xf32>
    %982 = arith.addf %980, %981 : vector<2x16xf32>
    %983 = arith.negf %982 : vector<2x16xf32>
    %984 = math.exp %983 : vector<2x16xf32>
    %cst_243 = arith.constant 1.000000e+00 : f32
    %985 = vector.broadcast %cst_243 : f32 to vector<2x16xf32>
    %986 = arith.addf %985, %984 : vector<2x16xf32>
    %987 = arith.divf %985, %986 : vector<2x16xf32>
    %988 = vector.extract_strided_slice %968 {offsets = [0, 32], sizes = [2, 16], strides = [1, 1]} : vector<2x48xf32> to vector<2x16xf32>
    %989 = vector.extract_strided_slice %971 {offsets = [0, 32], sizes = [2, 16], strides = [1, 1]} : vector<2x48xf32> to vector<2x16xf32>
    %990 = arith.mulf %979, %989 : vector<2x16xf32>
    %991 = arith.addf %988, %990 : vector<2x16xf32>
    %992 = math.tanh %991 : vector<2x16xf32>
    %cst_244 = arith.constant 1.000000e+00 : f32
    %993 = vector.broadcast %cst_244 : f32 to vector<2x16xf32>
    %994 = arith.subf %993, %987 : vector<2x16xf32>
    %995 = arith.mulf %994, %992 : vector<2x16xf32>
    %996 = arith.mulf %987, %935 : vector<2x16xf32>
    %997 = arith.addf %995, %996 : vector<2x16xf32>
    %c2_245 = arith.constant 2 : index
    %c0_246 = arith.constant 0 : index
    %998 = vector.load %arg13[%c2_245, %c0_246] : memref<16x16xf32, #tpu.memory_space<vmem>>, vector<2x16xf32>
    tpu.vector_store %arg13[%c2_245, %c0_246], %997 {strides = array<i32>} : memref<16x16xf32, #tpu.memory_space<vmem>>, vector<2x16xf32>,
    %999 = vector.extract_strided_slice %541 {offsets = [14, 0], sizes = [2, 48], strides = [1, 1]} : vector<16x48xf32> to vector<2x48xf32>
    %cst_247 = arith.constant dense<0.000000e+00> : vector<2x48xf32>
    %1000 = tpu.matmul %966, %554, %cst_247 {dimension_numbers = #tpu.dot_dimension_numbers<[1], [0], [0], [1], [0, 0, 1, 1], [], []>} : vector<2x16xf32>, vector<16x48xf32>, vector<2x48xf32> -> vector<2x48xf32>
    %1001 = vector.broadcast %558 : vector<1x48xf32> to vector<2x48xf32>
    %1002 = arith.addf %1000, %1001 : vector<2x48xf32>
    %1003 = vector.extract_strided_slice %999 {offsets = [0, 0], sizes = [2, 16], strides = [1, 1]} : vector<2x48xf32> to vector<2x16xf32>
    %1004 = vector.extract_strided_slice %1002 {offsets = [0, 0], sizes = [2, 16], strides = [1, 1]} : vector<2x48xf32> to vector<2x16xf32>
    %1005 = arith.addf %1003, %1004 : vector<2x16xf32>
    %1006 = arith.negf %1005 : vector<2x16xf32>
    %1007 = math.exp %1006 : vector<2x16xf32>
    %cst_248 = arith.constant 1.000000e+00 : f32
    %1008 = vector.broadcast %cst_248 : f32 to vector<2x16xf32>
    %1009 = arith.addf %1008, %1007 : vector<2x16xf32>
    %1010 = arith.divf %1008, %1009 : vector<2x16xf32>
    %1011 = vector.extract_strided_slice %999 {offsets = [0, 16], sizes = [2, 16], strides = [1, 1]} : vector<2x48xf32> to vector<2x16xf32>
    %1012 = vector.extract_strided_slice %1002 {offsets = [0, 16], sizes = [2, 16], strides = [1, 1]} : vector<2x48xf32> to vector<2x16xf32>
    %1013 = arith.addf %1011, %1012 : vector<2x16xf32>
    %1014 = arith.negf %1013 : vector<2x16xf32>
    %1015 = math.exp %1014 : vector<2x16xf32>
    %cst_249 = arith.constant 1.000000e+00 : f32
    %1016 = vector.broadcast %cst_249 : f32 to vector<2x16xf32>
    %1017 = arith.addf %1016, %1015 : vector<2x16xf32>
    %1018 = arith.divf %1016, %1017 : vector<2x16xf32>
    %1019 = vector.extract_strided_slice %999 {offsets = [0, 32], sizes = [2, 16], strides = [1, 1]} : vector<2x48xf32> to vector<2x16xf32>
    %1020 = vector.extract_strided_slice %1002 {offsets = [0, 32], sizes = [2, 16], strides = [1, 1]} : vector<2x48xf32> to vector<2x16xf32>
    %1021 = arith.mulf %1010, %1020 : vector<2x16xf32>
    %1022 = arith.addf %1019, %1021 : vector<2x16xf32>
    %1023 = math.tanh %1022 : vector<2x16xf32>
    %cst_250 = arith.constant 1.000000e+00 : f32
    %1024 = vector.broadcast %cst_250 : f32 to vector<2x16xf32>
    %1025 = arith.subf %1024, %1018 : vector<2x16xf32>
    %1026 = arith.mulf %1025, %1023 : vector<2x16xf32>
    %1027 = arith.mulf %1018, %966 : vector<2x16xf32>
    %1028 = arith.addf %1026, %1027 : vector<2x16xf32>
    %c14_251 = arith.constant 14 : index
    %c0_252 = arith.constant 0 : index
    %1029 = vector.load %arg12[%c14_251, %c0_252] : memref<16x16xf32, #tpu.memory_space<vmem>>, vector<2x16xf32>
    tpu.vector_store %arg12[%c14_251, %c0_252], %1028 {strides = array<i32>} : memref<16x16xf32, #tpu.memory_space<vmem>>, vector<2x16xf32>,
    %1030 = vector.extract_strided_slice %552 {offsets = [0, 0], sizes = [2, 48], strides = [1, 1]} : vector<16x48xf32> to vector<2x48xf32>
    %cst_253 = arith.constant dense<0.000000e+00> : vector<2x48xf32>
    %1031 = tpu.matmul %997, %556, %cst_253 {dimension_numbers = #tpu.dot_dimension_numbers<[1], [0], [0], [1], [0, 0, 1, 1], [], []>} : vector<2x16xf32>, vector<16x48xf32>, vector<2x48xf32> -> vector<2x48xf32>
    %1032 = vector.broadcast %560 : vector<1x48xf32> to vector<2x48xf32>
    %1033 = arith.addf %1031, %1032 : vector<2x48xf32>
    %1034 = vector.extract_strided_slice %1030 {offsets = [0, 0], sizes = [2, 16], strides = [1, 1]} : vector<2x48xf32> to vector<2x16xf32>
    %1035 = vector.extract_strided_slice %1033 {offsets = [0, 0], sizes = [2, 16], strides = [1, 1]} : vector<2x48xf32> to vector<2x16xf32>
    %1036 = arith.addf %1034, %1035 : vector<2x16xf32>
    %1037 = arith.negf %1036 : vector<2x16xf32>
    %1038 = math.exp %1037 : vector<2x16xf32>
    %cst_254 = arith.constant 1.000000e+00 : f32
    %1039 = vector.broadcast %cst_254 : f32 to vector<2x16xf32>
    %1040 = arith.addf %1039, %1038 : vector<2x16xf32>
    %1041 = arith.divf %1039, %1040 : vector<2x16xf32>
    %1042 = vector.extract_strided_slice %1030 {offsets = [0, 16], sizes = [2, 16], strides = [1, 1]} : vector<2x48xf32> to vector<2x16xf32>
    %1043 = vector.extract_strided_slice %1033 {offsets = [0, 16], sizes = [2, 16], strides = [1, 1]} : vector<2x48xf32> to vector<2x16xf32>
    %1044 = arith.addf %1042, %1043 : vector<2x16xf32>
    %1045 = arith.negf %1044 : vector<2x16xf32>
    %1046 = math.exp %1045 : vector<2x16xf32>
    %cst_255 = arith.constant 1.000000e+00 : f32
    %1047 = vector.broadcast %cst_255 : f32 to vector<2x16xf32>
    %1048 = arith.addf %1047, %1046 : vector<2x16xf32>
    %1049 = arith.divf %1047, %1048 : vector<2x16xf32>
    %1050 = vector.extract_strided_slice %1030 {offsets = [0, 32], sizes = [2, 16], strides = [1, 1]} : vector<2x48xf32> to vector<2x16xf32>
    %1051 = vector.extract_strided_slice %1033 {offsets = [0, 32], sizes = [2, 16], strides = [1, 1]} : vector<2x48xf32> to vector<2x16xf32>
    %1052 = arith.mulf %1041, %1051 : vector<2x16xf32>
    %1053 = arith.addf %1050, %1052 : vector<2x16xf32>
    %1054 = math.tanh %1053 : vector<2x16xf32>
    %cst_256 = arith.constant 1.000000e+00 : f32
    %1055 = vector.broadcast %cst_256 : f32 to vector<2x16xf32>
    %1056 = arith.subf %1055, %1049 : vector<2x16xf32>
    %1057 = arith.mulf %1056, %1054 : vector<2x16xf32>
    %1058 = arith.mulf %1049, %997 : vector<2x16xf32>
    %1059 = arith.addf %1057, %1058 : vector<2x16xf32>
    %c0_257 = arith.constant 0 : index
    %c0_258 = arith.constant 0 : index
    %1060 = vector.load %arg13[%c0_257, %c0_258] : memref<16x16xf32, #tpu.memory_space<vmem>>, vector<2x16xf32>
    tpu.vector_store %arg13[%c0_257, %c0_258], %1059 {strides = array<i32>} : memref<16x16xf32, #tpu.memory_space<vmem>>, vector<2x16xf32>,
    %c2_259 = arith.constant 2 : index
    %c0_260 = arith.constant 0 : index
    %c0_261 = arith.constant 0 : index
    %1061 = vector.load %arg11[%c2_259, %c0_260, %c0_261] : memref<4x2x16xf32, #tpu.memory_space<vmem>>, vector<1x2x16xf32>
    %1062 = vector.shape_cast %1061 : vector<1x2x16xf32> to vector<2x16xf32>
    %1063 = vector.shape_cast %1028 : vector<2x16xf32> to vector<1x2x16xf32>
    tpu.vector_store %arg11[%c2_259, %c0_260, %c0_261], %1063 {strides = array<i32>} : memref<4x2x16xf32, #tpu.memory_space<vmem>>, vector<1x2x16xf32>,
    %c3_262 = arith.constant 3 : index
    %c0_263 = arith.constant 0 : index
    %c0_264 = arith.constant 0 : index
    %1064 = vector.load %arg11[%c3_262, %c0_263, %c0_264] : memref<4x2x16xf32, #tpu.memory_space<vmem>>, vector<1x2x16xf32>
    %1065 = vector.shape_cast %1064 : vector<1x2x16xf32> to vector<2x16xf32>
    %1066 = vector.shape_cast %1059 : vector<2x16xf32> to vector<1x2x16xf32>
    tpu.vector_store %arg11[%c3_262, %c0_263, %c0_264], %1066 {strides = array<i32>} : memref<4x2x16xf32, #tpu.memory_space<vmem>>, vector<1x2x16xf32>,
    %c0_265 = arith.constant 0 : index
    %c0_266 = arith.constant 0 : index
    %1067 = vector.load %arg12[%c0_265, %c0_266] : memref<16x16xf32, #tpu.memory_space<vmem>>, vector<16x16xf32>
    %c0_267 = arith.constant 0 : index
    %c0_268 = arith.constant 0 : index
    %1068 = vector.load %arg13[%c0_267, %c0_268] : memref<16x16xf32, #tpu.memory_space<vmem>>, vector<16x16xf32>
    %1069 = tpu.concatenate %1067, %1068 in 1 : vector<16x16xf32>, vector<16x16xf32> -> vector<16x32xf32>
    %c0_269 = arith.constant 0 : index
    %c0_270 = arith.constant 0 : index
    %1070 = vector.load %arg10[%c0_269, %c0_270] : memref<16x32xf32, #tpu.memory_space<vmem>>, vector<16x32xf32>
    tpu.vector_store %arg10[%c0_269, %c0_270], %1069 {strides = array<i32>} : memref<16x32xf32, #tpu.memory_space<vmem>>, vector<16x32xf32>,
    return
  }
}

</mosaic_0001>

<bundles_post_ra>
// kernel: tpu_custom_call.1
= control target key start
LH: loop header
LB: loop body
LE: loop exit
PB: predicated region body
PF: predicated region fallthrough
CT: control target
= control target key end

     0   :  { %17 = vsyncpa [#allocation5], 0  ;;  %s5985_s0 = inlined_call_operand.vmem [shape: f32[16,8], index: 0, kind: input, shape index: {}]   ;;  %s5986_s1 = inlined_call_operand.hbm [shape: f32[4,2,16], index: 1, kind: input, shape index: {}]   ;;  %s5987_s2 = inlined_call_operand.hbm [shape: f32[2,8,48], index: 2, kind: input, shape index: {}]   ;;  %s5988_s3 = inlined_call_operand.vmem [shape: f32[2,16,48], index: 3, kind: input, shape index: {}]   ;;  %s5989_s4 = inlined_call_operand.vmem [shape: f32[2,1,48], index: 4, kind: input, shape index: {}]   ;;  %s5990_s5 = inlined_call_operand.vmem [shape: f32[2,1,48], index: 5, kind: input, shape index: {}]   ;;  %s5991_s6 = inlined_call_operand.hbm [shape: f32[2,32,48], index: 6, kind: input, shape index: {}]   ;;  %s5992_s7 = inlined_call_operand.hbm [shape: f32[2,16,48], index: 7, kind: input, shape index: {}]   ;;  %s5993_s8 = inlined_call_operand.vmem [shape: f32[2,1,48], index: 8, kind: input, shape index: {}]   ;;  %s5994_s9 = inlined_call_operand.vmem [shape: f32[2,1,48], index: 9, kind: input, shape index: {}]   ;;  %s5995_s10 = inlined_call_operand.hbm [shape: f32[16,32], index: 10, kind: output, shape index: {0}]   ;;  %s5996_s11 = inlined_call_operand.hbm [shape: f32[4,2,16], index: 11, kind: output, shape index: {1}]  }
   0x1   :  { %18 = vsyncpa [#allocation8], 0 }
   0x2   :  { %19 = vsyncpa [#allocation11], 0 }
   0x3   :  { %20 = vsyncpa [#allocation6], 0 }
   0x4   :  { %21 = vsyncpa [#allocation14], 0  ;;  %s5140_s17 = smov [#allocation7]   ;;  %s4998_s21 = scalar_lea.hbm %s5987_s2, 256 }
   0x5   :  { %s41_s18 = sshll.u32 %s5140_s17, 4  ;;  %p4999_p0 = scmp.ne.s32.totalorder %s5987_s2, %s4998_s21  ;;  %s42_s18 = int_to_ptr.vmem [resolvable:$true] %s41_s18 }
   0x6   :  { %p5002_p1 = scmp.lt.u32.totalorder %s4998_s21, %s5987_s2 }
   0x8   :  { %p5004_p2 = pnand %p5002_p1, %p4999_p0 }
   0xa   :  { %5007 = shalt.err (!%p5004_p2)
}
   0xb   :  { %s5008_s26 = scalar_lea.vmem %s42_s18, 256  ;;  %p5013_p4 = scmp.lt.s32.totalorder %s42_s18, %s42_s18 }
   0xc   :  { %p5009_p3 = scmp.ne.s32.totalorder %s42_s18, %s5008_s26  ;;  %p5014_p5 = scmp.lt.s32.totalorder %s5008_s26, %s5008_s26 }
   0xe   :  { %p5015_p6 = por %p5014_p5, %p5013_p4 }
  0x10   :  { %p5016_p7 = pnand %p5015_p6, %p5009_p3 }
  0x12   :  { %5019 = shalt.err (!%p5016_p7)
}
  0x13   :  { %s5141_s27 = smov 128   ;;  %s5142_s28 = smov 8  }
  0x14   :  { %47 = dma.hbm_to_vmem [thread:$0]  %s5987_s2, 256, %s42_s18, [#allocation8], %s5141_s27, %s5141_s27, %s5142_s28  }
  0x15   :  { %s5143_s12 = smov [#allocation4]   ;;  %s5020_s16 = scalar_lea.hbm %s5986_s1, 128 }
  0x16   :  { %s29_s13 = sshll.u32 %s5143_s12, 4  ;;  %p5021_p8 = scmp.ne.s32.totalorder %s5986_s1, %s5020_s16  ;;  %s30_s13 = int_to_ptr.vmem [resolvable:$true] %s29_s13 }
  0x17   :  { %p5024_p9 = scmp.lt.u32.totalorder %s5020_s16, %s5986_s1 }
  0x19   :  { %p5026_p10 = pnand %p5024_p9, %p5021_p8 }
  0x1b   :  { %5029 = shalt.err (!%p5026_p10)
}
  0x1c   :  { %s5030_s22 = scalar_lea.vmem %s30_s13, 128  ;;  %p5035_p12 = scmp.lt.s32.totalorder %s30_s13, %s30_s13 }
  0x1d   :  { %p5031_p11 = scmp.ne.s32.totalorder %s30_s13, %s5030_s22  ;;  %p5036_p13 = scmp.lt.s32.totalorder %s5030_s22, %s5030_s22 }
  0x1f   :  { %p5037_p0 = por %p5036_p13, %p5035_p12 }
  0x21   :  { %p5038_p1 = pnand %p5037_p0, %p5031_p11 }
  0x23   :  { %5041 = shalt.err (!%p5038_p1)
}
  0x24   :  { %s5144_s2 = smov 32   ;;  %s5145_s18 = smov 2  }
  0x25   :  { %35 = dma.hbm_to_vmem [thread:$0]  %s5986_s1, 128, %s30_s13, [#allocation5], %s5144_s2, %s5144_s2, %s5145_s18  }
  0x26   :  { %s5146_s25 = smov [#allocation9]   ;;  %s5147_s29 = smov [#allocation10]  }
  0x27   :  { %s59_s26 = sshll.u32 %s5146_s25, 4  ;;  %s71_s30 = sshll.u32 %s5147_s29, 4  ;;  %s60_s26 = int_to_ptr.vmem [resolvable:$true] %s59_s26  ;;  %s5246_s30 = int_to_ptr.vmem [resolvable:$true] %s71_s30 }
  0x28   :  { %s5042_s15 = scalar_lea.hbm %s5991_s6, 1024 }
  0x29   :  { %p5043_p2 = scmp.ne.s32.totalorder %s5991_s6, %s5042_s15  ;;  %p5046_p3 = scmp.lt.u32.totalorder %s5042_s15, %s5991_s6 }
  0x2b   :  { %p5048_p4 = pnand %p5046_p3, %p5043_p2 }
  0x2d   :  { %5051 = shalt.err (!%p5048_p4)
}
  0x2e   :  { %s5052_s1 = scalar_lea.vmem %s60_s26, 1024  ;;  %p5057_p6 = scmp.lt.s32.totalorder %s60_s26, %s60_s26 }
  0x2f   :  { %p5053_p5 = scmp.ne.s32.totalorder %s60_s26, %s5052_s1  ;;  %p5058_p7 = scmp.lt.s32.totalorder %s5052_s1, %s5052_s1 }
  0x31   :  { %p5059_p8 = por %p5058_p7, %p5057_p6 }
  0x33   :  { %p5060_p9 = pnand %p5059_p8, %p5053_p5 }
  0x35   :  { %5063 = shalt.err (!%p5060_p9)
}
  0x36   :  { %65 = dma.hbm_to_vmem [thread:$0]  %s5991_s6, 1024, %s60_s26, [#allocation8], %s5141_s27, %s5141_s27, %s5142_s28  }
  0x37   :  { %s5064_s24 = scalar_lea.hbm %s5992_s7, 512 }
  0x38   :  { %p5065_p10 = scmp.ne.s32.totalorder %s5992_s7, %s5064_s24  ;;  %p5068_p11 = scmp.lt.u32.totalorder %s5064_s24, %s5992_s7 }
  0x3a   :  { %p5070_p12 = pnand %p5068_p11, %p5065_p10 }
  0x3c   :  { %5073 = shalt.err (!%p5070_p12)
}
  0x3d   :  { %s5074_s15 = scalar_lea.vmem %s5246_s30, 512  ;;  %p5079_p0 = scmp.lt.s32.totalorder %s5246_s30, %s5246_s30 }
  0x3e   :  { %p5075_p13 = scmp.ne.s32.totalorder %s5246_s30, %s5074_s15  ;;  %p5080_p1 = scmp.lt.s32.totalorder %s5074_s15, %s5074_s15 }
  0x40   :  { %p5081_p2 = por %p5080_p1, %p5079_p0 }
  0x42   :  { %p5082_p3 = pnand %p5081_p2, %p5075_p13 }
  0x44   :  { %5085 = shalt.err (!%p5082_p3)
}
  0x45   :  { %77 = dma.hbm_to_vmem [thread:$0]  %s5992_s7, 512, %s5246_s30, [#allocation11], %s5141_s27, %s5141_s27, %s5142_s28  }
  0x46   :  { %5130 = dma.done.wait [#allocation5], 128  }
  0x47   :  { %5131 = vsyncadd [#allocation5], 4294967168 }
  0x48   :  { %5132 = dma.done.wait [#allocation8], 1280  }
  0x49   :  { %5133 = vsyncadd [#allocation8], 4294966016 }
  0x4a   :  { %5134 = dma.done.wait [#allocation11], 512  }
  0x4b   :  { %5135 = vsyncadd [#allocation11], 4294966784  ;;  %vm104_vm0 = vcmask 64512   ;;  %v187_v0 = vld [vmem:[#allocation7 + $0x8] sm:$0xff]  ;;  %v95_v2 = vld [vmem:[%s5985_s0 + $0x8] sm:$0xff]  ;;  %v5148_v9 = vmov 0.0|0.0  }
  0x4c   :  { %v94_v1 = vld [vmem:[%s5985_s0] sm:$0xff]  ;;  %4417 = vmatprep.subr.mxu1 %v187_v0  ;;  %v4211_v3 = vld [vmem:[%s5988_s3 + $0x10] sm:$0xff]  ;;  %v4212_v4 = vld [vmem:[%s5988_s3 + $0x18] sm:$0xff]  ;;  %vm5149_vm1 = vmmov 0   ;;  %v5150_v11 = vmov 0.0   ;;  %vm288_vm2 = vcmask 130048  }
  0x4d   :  { %4419 = vmatprep.mubr.msk.f32.mxu1 %vm104_vm0, %v94_v1  ;;  %v96_v5 = vld [vmem:[#allocation7] sm:$0xff]  ;;  %4418 = vmatpush3.msra.mxu1 %v187_v0  ;;  %v5296_v6 = vpack.c.bf16 %v4212_v4, %v4211_v3  ;;  %v271_v7 = vld [vmem:[%s5988_s3] sm:$0xff]  ;;  %v272_v8 = vld [vmem:[%s5988_s3 + $0x8] sm:$0xff]  ;;  %s5153_s26 = smov 112   ;;  %vm395_vm3 = vcmask 123904   ;;  %vm512_vm4 = vcmask 130054  }
  0x4e   :  { %4412 = vmatprep.subr.mxu0 %v96_v5  ;;  %4420 = vmatmul.mubr.msk.f32.vlgmr.msra.gmra.mrb[0].mxu1 %vm104_vm0, %v95_v2  ;;  %v5306_v10 = vpack.c.bf16 %v272_v8, %v271_v7  ;;  %v5311_v12 = vld [vmem:[#allocation4 + $0x2] sm:$0x3]  ;;  %v279_v13 = vld [vmem:[#allocation4] sm:$0x3]  ;;  %v4208_v14 = vld [vmem:[%s5989_s4 + $0x1] ss:$0 sm:$0xff] }
  0x4f   :  { %4677 = vmatprep.subr.bf16.mxu1 %v5148_v9  ;;  %4433 = vmatprep.mubr.msk.f32.mxu1 %vm5149_vm1, %v5150_v11  ;;  %v4204_v17 = vld [vmem:[%s5989_s4] ss:$0 sm:$0xff]  ;;  %v5343_v19 = vld [vmem:[%s5990_s5 + $0x1] ss:$0 sm:$0xff]  ;;  %s5151_s4 = smov 96   ;;  %v502_v47 = vrot.slane %v5311_v12, 2 }
  0x50   :  { %4679 = vmatpush3.bf16.msra.mxu1 %v5296_v6  ;;  %4413 = vmatpush3.msra.mxu0 %v96_v5  ;;  %v5351_v26 = vld [vmem:[%s5990_s5] ss:$0 sm:$0xff]  ;;  %s5152_s5 = smov 16   ;;  %vm620_vm5 = vcmask 125954   ;;  %vm731_vm6 = vcmask 128004  }
  0x51   :  { %4414 = vmatprep.mubr.msk.f32.mxu0 %vm104_vm0, %v94_v1  ;;  %4674 = vmatprep.subr.bf16.mxu0 %v5148_v9 }
  0x52   :  { %4415 = vmatmul.mubr.msk.f32.vlgmr.msra.gmra.mrb[0].mxu0 %vm104_vm0, %v95_v2  ;;  %4683 = vmatprep.subr.bf16.mxu1 %v5148_v9 }
  0x53   :  { %4434 = vmatmul.mubr.msk.f32.vlgmr.msra.gmra.mrb[2].mxu1 %vm288_vm2, %v5311_v12  ;;  %4676 = vmatpush3.bf16.msra.mxu0 %v5306_v10 }
  0x54   :  { %4426 = vmatprep.mubr.msk.f32.mxu0 %vm5149_vm1, %v5150_v11  ;;  %4685 = vmatpush3.bf16.msra.mxu1 %v5296_v6 }
  0x55   :  { %4680 = vmatprep.subr.bf16.mxu0 %v5148_v9  ;;  %4447 = vmatprep.mubr.msk.f32.mxu1 %vm5149_vm1, %v5150_v11 }
  0x56   :  { %4427 = vmatmul.mubr.msk.f32.vlgmr.msra.gmra.mrb[2].mxu0 %vm288_vm2, %v279_v13  ;;  %4689 = vmatprep.subr.bf16.mxu1 %v5148_v9 }
  0x57   :  { %4682 = vmatpush3.bf16.msra.mxu0 %v5306_v10  ;;  %4440 = vmatprep.mubr.msk.f32.mxu0 %vm5149_vm1, %v5150_v11 }
  0x58   :  { %4686 = vmatprep.subr.bf16.mxu0 %v5148_v9 }
 0x121   :  { %v4421_v15 = vpop.f32.mrb[0].mxu1 }
 0x122   :  { %v262_v16 = vpop.f32.mrb[1].mxu1  ;;  %v5356_v31 = vadd.f32 %v4421_v15, %v4208_v14 }
 0x123   :  { %v5338_v18 = vadd.f32 %v4208_v14, %v262_v16 }
 0x125   :  { %v4416_v20 = vpop.f32.mrb[0].mxu0 }
 0x126   :  { %v472_v21 = vpop.f32.mrb[2].mxu1  ;;  %v5345_v22 = vadd.f32 %v4416_v20, %v4204_v17  ;;  %v177_v23 = vpop.f32.mrb[1].mxu0 }
 0x127   :  { %v473_v24 = vadd.f32 %v5343_v19, %v472_v21  ;;  %v4435_v25 = vpop.f32.mrb[3].mxu1  ;;  %v5359_v33 = vadd.f32 %v4204_v17, %v177_v23 }
 0x129   :  { %v477_v27 = vrot.slane %v473_v24, 2  ;;  %v358_v28 = vpop.f32.mrb[2].mxu0 }
 0x12a   :  { %v4428_v29 = vpop.f32.mrb[3].mxu0  ;;  %v359_v30 = vadd.f32 %v5351_v26, %v358_v28 }
 0x12b   :  { %486 = vrot.lane.b32.xlu0 %v477_v27, %s5151_s4  ;;  %v479_v32 = vadd.f32 %v477_v27, %v5356_v31 }
 0x12c   :  { %v362_v35 = vadd.f32 %v359_v30, %v5359_v33 }
 0x12d   :  { %v4219_v34 = vmul.f32 -1.442695, %v479_v32 }
 0x12e   :  { %v4216_v36 = vmul.f32 -1.442695, %v362_v35 }
 0x12f   :  { %370 = vrot.lane.b32.xlu0 %v359_v30, %s5151_s4  ;;  %4806 = vpow2.f32 %v4219_v34 }
 0x130   :  { %4808 = vpow2.f32 %v4216_v36 }
 0x139   :  { %v4807_v37 = vpop.eup %4806 }
 0x13a   :  { %v483_v38 = vadd.f32 1.0, %v4807_v37  ;;  %v4809_v39 = vpop.eup %4808 }
 0x13b   :  { %v366_v40 = vadd.f32 1.0, %v4809_v39 }
 0x13c   :  { %4810 = vrcp.f32 %v483_v38 }
 0x13d   :  { %4812 = vrcp.f32 %v366_v40 }
 0x146   :  { %v4811_v41 = vpop.eup %4810 }
 0x147   :  { %v4813_v44 = vpop.eup %4812  ;;  %v496_v55 = vsub.f32 1.0, %v4811_v41 }
 0x148   :  { %v380_v61 = vsub.f32 1.0, %v4813_v44 }
 0x19d   :  { %v487_v42 = vpop.permute.xlu0 %486 }
 0x19e   :  { %v489_v43 = vmul.f32 %v4811_v41, %v487_v42 }
 0x1a0   :  { %491 = vrot.lane.b32.xlu1 %v489_v43, %s5144_s2 }
 0x1a1   :  { %v371_v45 = vpop.permute.xlu0 %370 }
 0x1a2   :  { %v373_v46 = vmul.f32 %v4813_v44, %v371_v45 }
 0x1a4   :  { %375 = vrot.lane.b32.xlu1 %v373_v46, %s5144_s2 }
 0x1a8   :  { %503 = vrot.lane.b32.xlu1 %v502_v47, %s5152_s5 }
 0x1ac   :  { %386 = vrot.lane.b32.xlu1 %v279_v13, %s5152_s5 }
 0x212   :  { %v492_v48 = vpop.permute.xlu1 %491 }
 0x213   :  { %v494_v49 = vadd.f32 %v492_v48, %v5356_v31 }
 0x215   :  { %4814 = vtanh.f32 %v494_v49 }
 0x216   :  { %v376_v50 = vpop.permute.xlu1 %375 }
 0x217   :  { %v378_v51 = vadd.f32 %v376_v50, %v5359_v33 }
 0x219   :  { %4816 = vtanh.f32 %v378_v51 }
 0x21a   :  { %v504_v54 = vpop.permute.xlu1 %503 }
 0x21b   :  { %v506_v57 = vmul.f32 %v4811_v41, %v504_v54 }
 0x21e   :  { %v387_v59 = vpop.permute.xlu1 %386 }
 0x21f   :  { %v4815_v52 = vpop.eup %4814  ;;  %v389_v63 = vmul.f32 %v4813_v44, %v387_v59 }
 0x220   :  { %498 = vrot.lane.b32.xlu0 %v4815_v52, %s5153_s26 }
 0x223   :  { %v4817_v53 = vpop.eup %4816 }
 0x224   :  { %382 = vrot.lane.b32.xlu0 %v4817_v53, %s5153_s26 }
 0x292   :  { %v499_v56 = vpop.permute.xlu0 %498 }
 0x293   :  { %v501_v58 = vmul.f32 %v499_v56, %v496_v55 }
 0x295   :  { %v5371_v60 = vadd.f32 %v506_v57, %v501_v58 }
 0x296   :  { %v383_v62 = vpop.permute.xlu0 %382 }
 0x297   :  { %v385_v0 = vmul.f32 %v383_v62, %v380_v61  ;;  %v622_v1 = vrot.slane %v5371_v60, 6  ;;  %v723_v44 = vrot.slane %v5371_v60, 2 }
 0x299   :  { %v5374_v2 = vadd.f32 %v389_v63, %v385_v0  ;;  %623 = vrot.lane.b32.xlu0 %v622_v1, %s5153_s26 }
 0x29b   :  { %392 = vrot.lane.b32.xlu1 %v5374_v2, %s5153_s26  ;;  %v612_v46 = vrot.slane %v5374_v2, 6 }
 0x30b   :  { %v624_v3 = vpop.permute.xlu0 %623 }
 0x30c   :  { %4448 = vmatmul.mubr.msk.f32.vlgmr.msra.gmra.mrb[4].mxu1 %vm288_vm2, %v624_v3 }
 0x30d   :  { %v393_v4 = vpop.permute.xlu1 %392  ;;  %4691 = vmatpush3.bf16.msra.mxu1 %v5296_v6  ;;  %4461 = vmatprep.mubr.msk.f32.mxu1 %vm5149_vm1, %v5150_v11 }
 0x30e   :  { %396 = vst.msk [vmem:[#allocation2] sm:$0x3] %vm395_vm3, %v393_v4  ;;  %4441 = vmatmul.mubr.msk.f32.vlgmr.msra.gmra.mrb[4].mxu0 %vm288_vm2, %v393_v4  ;;  %4695 = vmatprep.subr.bf16.mxu1 %v5148_v9 }
 0x30f   :  { %4688 = vmatpush3.bf16.msra.mxu0 %v5306_v10  ;;  %4454 = vmatprep.mubr.msk.f32.mxu0 %vm5149_vm1, %v5150_v11 }
 0x310   :  { %4692 = vmatprep.subr.bf16.mxu0 %v5148_v9 }
 0x3df   :  { %v693_v5 = vpop.f32.mrb[4].mxu1 }
 0x3e0   :  { %v694_v7 = vadd.f32 %v5343_v19, %v693_v5  ;;  %v4449_v8 = vpop.f32.mrb[5].mxu1 }
 0x3e1   :  { %v582_v12 = vpop.f32.mrb[4].mxu0 }
 0x3e2   :  { %v698_v13 = vrot.slane %v694_v7, 4  ;;  %v583_v14 = vadd.f32 %v5351_v26, %v582_v12  ;;  %v4442_v15 = vpop.f32.mrb[5].mxu0 }
 0x3e4   :  { %v587_v16 = vrot.slane %v583_v14, 6  ;;  %707 = vrot.lane.b32.xlu0 %v698_v13, %s5151_s4  ;;  %v700_v17 = vadd.f32 %v698_v13, %v5356_v31 }
 0x3e6   :  { %596 = vrot.lane.b32.xlu1 %v587_v16, %s5151_s4  ;;  %v589_v20 = vadd.f32 %v587_v16, %v5359_v33  ;;  %v4223_v21 = vmul.f32 -1.442695, %v700_v17 }
 0x3e8   :  { %v4221_v23 = vmul.f32 -1.442695, %v589_v20  ;;  %4818 = vpow2.f32 %v4223_v21 }
 0x3ea   :  { %4820 = vpow2.f32 %v4221_v23 }
 0x3f2   :  { %v4819_v24 = vpop.eup %4818 }
 0x3f3   :  { %v704_v27 = vadd.f32 1.0, %v4819_v24 }
 0x3f4   :  { %v4821_v25 = vpop.eup %4820 }
 0x3f5   :  { %v593_v28 = vadd.f32 1.0, %v4821_v25  ;;  %4822 = vrcp.f32 %v704_v27 }
 0x3f7   :  { %4824 = vrcp.f32 %v593_v28 }
 0x3ff   :  { %v4823_v29 = vpop.eup %4822 }
 0x400   :  { %v717_v43 = vsub.f32 1.0, %v4823_v29  ;;  %v725_v47 = vmul.f32 %v4823_v29, %v723_v44 }
 0x401   :  { %v4825_v34 = vpop.eup %4824 }
 0x402   :  { %v606_v49 = vsub.f32 1.0, %v4825_v34  ;;  %v614_v53 = vmul.f32 %v4825_v34, %v612_v46 }
 0x456   :  { %v708_v30 = vpop.permute.xlu0 %707 }
 0x457   :  { %v710_v32 = vmul.f32 %v4823_v29, %v708_v30 }
 0x458   :  { %v597_v35 = vpop.permute.xlu1 %596 }
 0x459   :  { %712 = vrot.lane.b32.xlu0 %v710_v32, %s5144_s2  ;;  %v599_v36 = vmul.f32 %v4825_v34, %v597_v35 }
 0x45b   :  { %601 = vrot.lane.b32.xlu1 %v599_v36, %s5144_s2 }
 0x4cb   :  { %v713_v37 = vpop.permute.xlu0 %712 }
 0x4cc   :  { %v715_v38 = vadd.f32 %v713_v37, %v5356_v31 }
 0x4cd   :  { %v602_v39 = vpop.permute.xlu1 %601 }
 0x4ce   :  { %4826 = vtanh.f32 %v715_v38  ;;  %v604_v40 = vadd.f32 %v602_v39, %v5359_v33 }
 0x4d0   :  { %4828 = vtanh.f32 %v604_v40 }
 0x4d8   :  { %v4827_v41 = vpop.eup %4826 }
 0x4d9   :  { %719 = vrot.lane.b32.xlu0 %v4827_v41, %s5153_s26 }
 0x4da   :  { %v4829_v42 = vpop.eup %4828 }
 0x4db   :  { %608 = vrot.lane.b32.xlu1 %v4829_v42, %s5153_s26 }
 0x54b   :  { %v720_v45 = vpop.permute.xlu0 %719 }
 0x54c   :  { %v722_v48 = vmul.f32 %v720_v45, %v717_v43 }
 0x54d   :  { %v609_v50 = vpop.permute.xlu1 %608 }
 0x54e   :  { %v5404_v51 = vadd.f32 %v725_v47, %v722_v48  ;;  %v611_v52 = vmul.f32 %v609_v50, %v606_v49 }
 0x550   :  { %v5406_v54 = vadd.f32 %v614_v53, %v611_v52  ;;  %v843_v55 = vrot.slane %v5404_v51, 4  ;;  %v944_v35 = vrot.slane %v5404_v51, 2 }
 0x552   :  { %844 = vrot.lane.b32.xlu0 %v843_v55, %s5153_s26  ;;  %v733_v56 = vrot.slane %v5406_v54, 2  ;;  %v834_v40 = vrot.slane %v5406_v54, 6 }
 0x554   :  { %734 = vrot.lane.b32.xlu1 %v733_v56, %s5153_s26 }
 0x5c4   :  { %v845_v57 = vpop.permute.xlu0 %844 }
 0x5c5   :  { %4462 = vmatmul.mubr.msk.f32.vlgmr.msra.gmra.mrb[6].mxu1 %vm288_vm2, %v845_v57 }
 0x5c6   :  { %v735_v58 = vpop.permute.xlu1 %734  ;;  %4697 = vmatpush3.bf16.msra.mxu1 %v5296_v6  ;;  %4475 = vmatprep.mubr.msk.f32.mxu1 %vm5149_vm1, %v5150_v11 }
 0x5c7   :  { %4455 = vmatmul.mubr.msk.f32.vlgmr.msra.gmra.mrb[6].mxu0 %vm288_vm2, %v735_v58  ;;  %4701 = vmatprep.subr.bf16.mxu1 %v5148_v9 }
 0x5c8   :  { %4694 = vmatpush3.bf16.msra.mxu0 %v5306_v10  ;;  %4468 = vmatprep.mubr.msk.f32.mxu0 %vm5149_vm1, %v5150_v11 }
 0x5c9   :  { %4698 = vmatprep.subr.bf16.mxu0 %v5148_v9 }
 0x698   :  { %v914_v59 = vpop.f32.mrb[6].mxu1 }
 0x699   :  { %v915_v61 = vadd.f32 %v5343_v19, %v914_v59  ;;  %v4463_v62 = vpop.f32.mrb[7].mxu1 }
 0x69a   :  { %v804_v63 = vpop.f32.mrb[6].mxu0 }
 0x69b   :  { %v919_v0 = vrot.slane %v915_v61, 6  ;;  %v805_v1 = vadd.f32 %v5351_v26, %v804_v63  ;;  %v4456_v2 = vpop.f32.mrb[7].mxu0 }
 0x69d   :  { %v809_v3 = vrot.slane %v805_v1, 4  ;;  %928 = vrot.lane.b32.xlu0 %v919_v0, %s5151_s4  ;;  %v921_v4 = vadd.f32 %v919_v0, %v5356_v31 }
 0x69f   :  { %818 = vrot.lane.b32.xlu1 %v809_v3, %s5151_s4  ;;  %v811_v5 = vadd.f32 %v809_v3, %v5359_v33  ;;  %v4227_v7 = vmul.f32 -1.442695, %v921_v4 }
 0x6a1   :  { %v4225_v8 = vmul.f32 -1.442695, %v811_v5  ;;  %4830 = vpow2.f32 %v4227_v7 }
 0x6a3   :  { %4832 = vpow2.f32 %v4225_v8 }
 0x6ab   :  { %v4831_v12 = vpop.eup %4830 }
 0x6ac   :  { %v925_v14 = vadd.f32 1.0, %v4831_v12 }
 0x6ad   :  { %v4833_v13 = vpop.eup %4832 }
 0x6ae   :  { %v815_v15 = vadd.f32 1.0, %v4833_v13  ;;  %4834 = vrcp.f32 %v925_v14 }
 0x6b0   :  { %4836 = vrcp.f32 %v815_v15 }
 0x6b8   :  { %v4835_v16 = vpop.eup %4834 }
 0x6b9   :  { %v938_v34 = vsub.f32 1.0, %v4835_v16  ;;  %v946_v37 = vmul.f32 %v4835_v16, %v944_v35 }
 0x6ba   :  { %v4837_v21 = vpop.eup %4836 }
 0x6bb   :  { %v828_v39 = vsub.f32 1.0, %v4837_v21  ;;  %v836_v43 = vmul.f32 %v4837_v21, %v834_v40 }
 0x70f   :  { %v929_v17 = vpop.permute.xlu0 %928 }
 0x710   :  { %v931_v20 = vmul.f32 %v4835_v16, %v929_v17 }
 0x711   :  { %v819_v23 = vpop.permute.xlu1 %818 }
 0x712   :  { %933 = vrot.lane.b32.xlu0 %v931_v20, %s5144_s2  ;;  %v821_v24 = vmul.f32 %v4837_v21, %v819_v23 }
 0x714   :  { %823 = vrot.lane.b32.xlu1 %v821_v24, %s5144_s2 }
 0x784   :  { %v934_v25 = vpop.permute.xlu0 %933 }
 0x785   :  { %v936_v27 = vadd.f32 %v934_v25, %v5356_v31 }
 0x786   :  { %v824_v28 = vpop.permute.xlu1 %823 }
 0x787   :  { %4838 = vtanh.f32 %v936_v27  ;;  %v826_v29 = vadd.f32 %v824_v28, %v5359_v33 }
 0x789   :  { %4840 = vtanh.f32 %v826_v29 }
 0x791   :  { %v4839_v30 = vpop.eup %4838 }
 0x792   :  { %940 = vrot.lane.b32.xlu0 %v4839_v30, %s5153_s26 }
 0x793   :  { %v4841_v32 = vpop.eup %4840 }
 0x794   :  { %830 = vrot.lane.b32.xlu1 %v4841_v32, %s5153_s26 }
 0x804   :  { %v941_v36 = vpop.permute.xlu0 %940 }
 0x805   :  { %v943_v38 = vmul.f32 %v941_v36, %v938_v34 }
 0x806   :  { %v831_v41 = vpop.permute.xlu1 %830 }
 0x807   :  { %v5436_v42 = vadd.f32 %v946_v37, %v943_v38  ;;  %v833_v44 = vmul.f32 %v831_v41, %v828_v39 }
 0x809   :  { %v5438_v45 = vadd.f32 %v836_v43, %v833_v44  ;;  %v1063_v46 = vrot.slane %v5436_v42, 2 }
 0x80b   :  { %1064 = vrot.lane.b32.xlu0 %v1063_v46, %s5153_s26  ;;  %v953_v47 = vrot.slane %v5438_v45, 4 }
 0x80d   :  { %954 = vrot.lane.b32.xlu1 %v953_v47, %s5153_s26 }
 0x87d   :  { %v1065_v48 = vpop.permute.xlu0 %1064 }
 0x87e   :  { %4476 = vmatmul.mubr.msk.f32.vlgmr.msra.gmra.mrb[8].mxu1 %vm288_vm2, %v1065_v48 }
 0x87f   :  { %v955_v49 = vpop.permute.xlu1 %954  ;;  %4703 = vmatpush3.bf16.msra.mxu1 %v5296_v6  ;;  %4489 = vmatprep.mubr.msk.f32.mxu1 %vm5149_vm1, %v5150_v11 }
 0x880   :  { %4469 = vmatmul.mubr.msk.f32.vlgmr.msra.gmra.mrb[8].mxu0 %vm288_vm2, %v955_v49  ;;  %4707 = vmatprep.subr.bf16.mxu1 %v5148_v9 }
 0x881   :  { %4700 = vmatpush3.bf16.msra.mxu0 %v5306_v10  ;;  %4482 = vmatprep.mubr.msk.f32.mxu0 %vm5149_vm1, %v5150_v11 }
 0x882   :  { %4704 = vmatprep.subr.bf16.mxu0 %v5148_v9 }
 0x951   :  { %v1134_v50 = vpop.f32.mrb[8].mxu1 }
 0x952   :  { %v1135_v52 = vadd.f32 %v5343_v19, %v1134_v50  ;;  %v4477_v53 = vpop.f32.mrb[9].mxu1 }
 0x953   :  { %v1024_v55 = vpop.f32.mrb[8].mxu0 }
 0x954   :  { %v1025_v56 = vadd.f32 %v5351_v26, %v1024_v55  ;;  %1146 = vrot.lane.b32.xlu0 %v1135_v52, %s5151_s4  ;;  %v4470_v57 = vpop.f32.mrb[9].mxu0  ;;  %v1138_v59 = vadd.f32 %v1135_v52, %v5356_v31 }
 0x956   :  { %v1029_v58 = vrot.slane %v1025_v56, 2  ;;  %v4231_v61 = vmul.f32 -1.442695, %v1138_v59 }
 0x958   :  { %1038 = vrot.lane.b32.xlu1 %v1029_v58, %s5151_s4  ;;  %v1031_v62 = vadd.f32 %v1029_v58, %v5359_v33  ;;  %4842 = vpow2.f32 %v4231_v61 }
 0x95a   :  { %v4229_v63 = vmul.f32 -1.442695, %v1031_v62 }
 0x95c   :  { %4844 = vpow2.f32 %v4229_v63 }
 0x962   :  { %v4843_v0 = vpop.eup %4842 }
 0x963   :  { %v1142_v1 = vadd.f32 1.0, %v4843_v0 }
 0x965   :  { %4846 = vrcp.f32 %v1142_v1 }
 0x966   :  { %v4845_v2 = vpop.eup %4844 }
 0x967   :  { %v1035_v3 = vadd.f32 1.0, %v4845_v2 }
 0x969   :  { %4848 = vrcp.f32 %v1035_v3 }
 0x96f   :  { %v4847_v4 = vpop.eup %4846 }
 0x970   :  { %v1156_v23 = vsub.f32 1.0, %v4847_v4  ;;  %v1163_v25 = vmul.f32 %v4847_v4, %v1063_v46 }
 0x973   :  { %v4849_v8 = vpop.eup %4848 }
 0x974   :  { %v1048_v29 = vsub.f32 1.0, %v4849_v8 }
 0x9c6   :  { %v1147_v5 = vpop.permute.xlu0 %1146 }
 0x9c7   :  { %v1149_v7 = vmul.f32 %v4847_v4, %v1147_v5 }
 0x9c9   :  { %1151 = vrot.lane.b32.xlu0 %v1149_v7, %s5144_s2 }
 0x9ca   :  { %v1039_v12 = vpop.permute.xlu1 %1038 }
 0x9cb   :  { %v1041_v13 = vmul.f32 %v4849_v8, %v1039_v12 }
 0x9cd   :  { %1043 = vrot.lane.b32.xlu1 %v1041_v13, %s5144_s2 }
 0xa3b   :  { %v1152_v14 = vpop.permute.xlu0 %1151 }
 0xa3c   :  { %v1154_v15 = vadd.f32 %v1152_v14, %v5356_v31  ;;  %v1054_v31 = vrot.slane %v5438_v45, 6 }
 0xa3e   :  { %4850 = vtanh.f32 %v1154_v15  ;;  %v1056_v32 = vmul.f32 %v4849_v8, %v1054_v31 }
 0xa3f   :  { %v1044_v16 = vpop.permute.xlu1 %1043 }
 0xa40   :  { %v1046_v17 = vadd.f32 %v1044_v16, %v5359_v33 }
 0xa42   :  { %4852 = vtanh.f32 %v1046_v17 }
 0xa48   :  { %v4851_v20 = vpop.eup %4850 }
 0xa49   :  { %1158 = vrot.lane.b32.xlu0 %v4851_v20, %s5153_s26 }
 0xa4c   :  { %v4853_v21 = vpop.eup %4852 }
 0xa4d   :  { %1050 = vrot.lane.b32.xlu1 %v4853_v21, %s5153_s26 }
 0xabb   :  { %v1159_v24 = vpop.permute.xlu0 %1158 }
 0xabc   :  { %v1161_v27 = vmul.f32 %v1159_v24, %v1156_v23 }
 0xabe   :  { %v5466_v28 = vadd.f32 %v1163_v25, %v1161_v27 }
 0xabf   :  { %v1051_v30 = vpop.permute.xlu1 %1050 }
 0xac0   :  { %v1053_v34 = vmul.f32 %v1051_v30, %v1048_v29  ;;  %1166 = vrot.lane.b32.xlu0 %v5466_v28, %s5153_s26  ;;  %v1375_v7 = vrot.slane %v5466_v28, 2 }
 0xac2   :  { %v5471_v33 = vadd.f32 %v1056_v32, %v1053_v34 }
 0xac4   :  { %v1170_v35 = vrot.slane %v5471_v33, 6 }
 0xac6   :  { %1171 = vrot.lane.b32.xlu1 %v1170_v35, %s5153_s26 }
 0xb32   :  { %v1167_v36 = vpop.permute.xlu0 %1166 }
 0xb33   :  { %1169 = vst.msk [vmem:[#allocation3 + $0x8] sm:$0x3] %vm395_vm3, %v1167_v36  ;;  %4490 = vmatmul.mubr.msk.f32.vlgmr.msra.gmra.mrb[10].mxu1 %vm288_vm2, %v1167_v36 }
 0xb34   :  { %4709 = vmatpush3.bf16.msra.mxu1 %v5296_v6  ;;  %4503 = vmatprep.mubr.msk.f32.mxu1 %vm5149_vm1, %v5150_v11 }
 0xb35   :  { %4713 = vmatprep.subr.bf16.mxu1 %v5148_v9 }
 0xb38   :  { %v1172_v37 = vpop.permute.xlu1 %1171 }
 0xb39   :  { %4483 = vmatmul.mubr.msk.f32.vlgmr.msra.gmra.mrb[10].mxu0 %vm288_vm2, %v1172_v37 }
 0xb3a   :  { %4706 = vmatpush3.bf16.msra.mxu0 %v5306_v10  ;;  %4496 = vmatprep.mubr.msk.f32.mxu0 %vm5149_vm1, %v5150_v11 }
 0xb3b   :  { %4710 = vmatprep.subr.bf16.mxu0 %v5148_v9 }
 0xc06   :  { %v1345_v38 = vpop.f32.mrb[10].mxu1 }
 0xc07   :  { %v1346_v39 = vadd.f32 %v5343_v19, %v1345_v38  ;;  %v4491_v40 = vpop.f32.mrb[11].mxu1 }
 0xc09   :  { %v1350_v41 = vrot.slane %v1346_v39, 2 }
 0xc0b   :  { %1359 = vrot.lane.b32.xlu0 %v1350_v41, %s5151_s4  ;;  %v1352_v47 = vadd.f32 %v1350_v41, %v5338_v18 }
 0xc0c   :  { %v1241_v43 = vpop.f32.mrb[10].mxu0 }
 0xc0d   :  { %v1242_v44 = vadd.f32 %v5351_v26, %v1241_v43  ;;  %v4484_v46 = vpop.f32.mrb[11].mxu0  ;;  %v4235_v48 = vmul.f32 -1.442695, %v1352_v47 }
 0xc0f   :  { %1253 = vrot.lane.b32.xlu1 %v1242_v44, %s5151_s4  ;;  %v1245_v49 = vadd.f32 %v1242_v44, %v5345_v22  ;;  %4854 = vpow2.f32 %v4235_v48 }
 0xc11   :  { %v4233_v50 = vmul.f32 -1.442695, %v1245_v49 }
 0xc13   :  { %4856 = vpow2.f32 %v4233_v50 }
 0xc19   :  { %v4855_v52 = vpop.eup %4854 }
 0xc1a   :  { %v1356_v53 = vadd.f32 1.0, %v4855_v52 }
 0xc1c   :  { %4858 = vrcp.f32 %v1356_v53 }
 0xc1d   :  { %v4857_v55 = vpop.eup %4856 }
 0xc1e   :  { %v1249_v56 = vadd.f32 1.0, %v4857_v55 }
 0xc20   :  { %4860 = vrcp.f32 %v1249_v56 }
 0xc26   :  { %v4859_v57 = vpop.eup %4858 }
 0xc27   :  { %v1369_v8 = vsub.f32 1.0, %v4859_v57  ;;  %v1377_v13 = vmul.f32 %v4859_v57, %v1375_v7 }
 0xc2a   :  { %v4861_v61 = vpop.eup %4860 }
 0xc2b   :  { %v1263_v16 = vsub.f32 1.0, %v4861_v61  ;;  %v1270_v20 = vmul.f32 %v4861_v61, %v1170_v35 }
 0xc7d   :  { %v1360_v58 = vpop.permute.xlu0 %1359 }
 0xc7e   :  { %v1362_v59 = vmul.f32 %v4859_v57, %v1360_v58 }
 0xc80   :  { %1364 = vrot.lane.b32.xlu0 %v1362_v59, %s5144_s2 }
 0xc81   :  { %v1254_v62 = vpop.permute.xlu1 %1253 }
 0xc82   :  { %v1256_v63 = vmul.f32 %v4861_v61, %v1254_v62 }
 0xc84   :  { %1258 = vrot.lane.b32.xlu1 %v1256_v63, %s5144_s2 }
 0xcf2   :  { %v1365_v0 = vpop.permute.xlu0 %1364 }
 0xcf3   :  { %v1367_v1 = vadd.f32 %v1365_v0, %v5338_v18 }
 0xcf5   :  { %4862 = vtanh.f32 %v1367_v1 }
 0xcf6   :  { %v1259_v2 = vpop.permute.xlu1 %1258 }
 0xcf7   :  { %v1261_v3 = vadd.f32 %v1259_v2, %v5345_v22 }
 0xcf9   :  { %4864 = vtanh.f32 %v1261_v3 }
 0xcff   :  { %v4863_v4 = vpop.eup %4862 }
 0xd00   :  { %1371 = vrot.lane.b32.xlu0 %v4863_v4, %s5153_s26 }
 0xd03   :  { %v4865_v5 = vpop.eup %4864 }
 0xd04   :  { %1265 = vrot.lane.b32.xlu1 %v4865_v5, %s5153_s26 }
 0xd72   :  { %v1372_v12 = vpop.permute.xlu0 %1371 }
 0xd73   :  { %v1374_v14 = vmul.f32 %v1372_v12, %v1369_v8 }
 0xd75   :  { %v5499_v15 = vadd.f32 %v1377_v13, %v1374_v14 }
 0xd76   :  { %v1266_v17 = vpop.permute.xlu1 %1265 }
 0xd77   :  { %v1268_v21 = vmul.f32 %v1266_v17, %v1263_v16  ;;  %v1491_v23 = vrot.slane %v5499_v15, 6  ;;  %v1592_v63 = vrot.slane %v5499_v15, 2 }
 0xd79   :  { %v5502_v24 = vadd.f32 %v1270_v20, %v1268_v21  ;;  %1492 = vrot.lane.b32.xlu0 %v1491_v23, %s5153_s26 }
 0xd7b   :  { %1273 = vrot.lane.b32.xlu1 %v5502_v24, %s5153_s26  ;;  %v1482_v1 = vrot.slane %v5502_v24, 6 }
 0xdeb   :  { %v1493_v25 = vpop.permute.xlu0 %1492 }
 0xdec   :  { %4504 = vmatmul.mubr.msk.f32.vlgmr.msra.gmra.mrb[12].mxu1 %vm288_vm2, %v1493_v25 }
 0xded   :  { %v1274_v27 = vpop.permute.xlu1 %1273  ;;  %4715 = vmatpush3.bf16.msra.mxu1 %v5296_v6  ;;  %4517 = vmatprep.mubr.msk.f32.mxu1 %vm5149_vm1, %v5150_v11 }
 0xdee   :  { %1276 = vst.msk [vmem:[#allocation2 + $0x8] sm:$0x3] %vm395_vm3, %v1274_v27  ;;  %4497 = vmatmul.mubr.msk.f32.vlgmr.msra.gmra.mrb[12].mxu0 %vm288_vm2, %v1274_v27  ;;  %4719 = vmatprep.subr.bf16.mxu1 %v5148_v9 }
 0xdef   :  { %4712 = vmatpush3.bf16.msra.mxu0 %v5306_v10  ;;  %4510 = vmatprep.mubr.msk.f32.mxu0 %vm5149_vm1, %v5150_v11 }
 0xdf0   :  { %4716 = vmatprep.subr.bf16.mxu0 %v5148_v9 }
 0xebf   :  { %v1562_v28 = vpop.f32.mrb[12].mxu1 }
 0xec0   :  { %v1563_v29 = vadd.f32 %v5343_v19, %v1562_v28  ;;  %v4505_v31 = vpop.f32.mrb[13].mxu1 }
 0xec1   :  { %v1452_v30 = vpop.f32.mrb[12].mxu0 }
 0xec2   :  { %v1567_v32 = vrot.slane %v1563_v29, 4  ;;  %v1453_v34 = vadd.f32 %v5351_v26, %v1452_v30  ;;  %v4498_v35 = vpop.f32.mrb[13].mxu0 }
 0xec4   :  { %v1457_v36 = vrot.slane %v1453_v34, 6  ;;  %1576 = vrot.lane.b32.xlu0 %v1567_v32, %s5151_s4  ;;  %v1569_v37 = vadd.f32 %v1567_v32, %v5338_v18 }
 0xec6   :  { %1466 = vrot.lane.b32.xlu1 %v1457_v36, %s5151_s4  ;;  %v1459_v38 = vadd.f32 %v1457_v36, %v5345_v22  ;;  %v4239_v39 = vmul.f32 -1.442695, %v1569_v37 }
 0xec8   :  { %v4237_v40 = vmul.f32 -1.442695, %v1459_v38  ;;  %4866 = vpow2.f32 %v4239_v39 }
 0xeca   :  { %4868 = vpow2.f32 %v4237_v40 }
 0xed2   :  { %v4867_v41 = vpop.eup %4866 }
 0xed3   :  { %v1573_v44 = vadd.f32 1.0, %v4867_v41 }
 0xed4   :  { %v4869_v43 = vpop.eup %4868 }
 0xed5   :  { %v1463_v46 = vadd.f32 1.0, %v4869_v43  ;;  %4870 = vrcp.f32 %v1573_v44 }
 0xed7   :  { %4872 = vrcp.f32 %v1463_v46 }
 0xedf   :  { %v4871_v47 = vpop.eup %4870 }
 0xee0   :  { %v1586_v62 = vsub.f32 1.0, %v4871_v47  ;;  %v1594_v2 = vmul.f32 %v4871_v47, %v1592_v63 }
 0xee1   :  { %v4873_v50 = vpop.eup %4872 }
 0xee2   :  { %v1476_v4 = vsub.f32 1.0, %v4873_v50  ;;  %v1484_v8 = vmul.f32 %v4873_v50, %v1482_v1 }
 0xf36   :  { %v1577_v48 = vpop.permute.xlu0 %1576 }
 0xf37   :  { %v1579_v49 = vmul.f32 %v4871_v47, %v1577_v48 }
 0xf38   :  { %v1467_v52 = vpop.permute.xlu1 %1466 }
 0xf39   :  { %1581 = vrot.lane.b32.xlu0 %v1579_v49, %s5144_s2  ;;  %v1469_v53 = vmul.f32 %v4873_v50, %v1467_v52 }
 0xf3b   :  { %1471 = vrot.lane.b32.xlu1 %v1469_v53, %s5144_s2 }
 0xfab   :  { %v1582_v55 = vpop.permute.xlu0 %1581 }
 0xfac   :  { %v1584_v56 = vadd.f32 %v1582_v55, %v5338_v18 }
 0xfad   :  { %v1472_v57 = vpop.permute.xlu1 %1471 }
 0xfae   :  { %4874 = vtanh.f32 %v1584_v56  ;;  %v1474_v58 = vadd.f32 %v1472_v57, %v5345_v22 }
 0xfb0   :  { %4876 = vtanh.f32 %v1474_v58 }
 0xfb8   :  { %v4875_v59 = vpop.eup %4874 }
 0xfb9   :  { %1588 = vrot.lane.b32.xlu0 %v4875_v59, %s5153_s26 }
 0xfba   :  { %v4877_v61 = vpop.eup %4876 }
 0xfbb   :  { %1478 = vrot.lane.b32.xlu1 %v4877_v61, %s5153_s26 }
0x102b   :  { %v1589_v0 = vpop.permute.xlu0 %1588 }
0x102c   :  { %v1591_v3 = vmul.f32 %v1589_v0, %v1586_v62 }
0x102d   :  { %v1479_v5 = vpop.permute.xlu1 %1478 }
0x102e   :  { %v5532_v7 = vadd.f32 %v1594_v2, %v1591_v3  ;;  %v1481_v12 = vmul.f32 %v1479_v5, %v1476_v4 }
0x1030   :  { %v5534_v13 = vadd.f32 %v1484_v8, %v1481_v12  ;;  %v1711_v14 = vrot.slane %v5532_v7, 4  ;;  %v1812_v55 = vrot.slane %v5532_v7, 2 }
0x1032   :  { %1712 = vrot.lane.b32.xlu0 %v1711_v14, %s5153_s26  ;;  %v1601_v16 = vrot.slane %v5534_v13, 2  ;;  %v1702_v61 = vrot.slane %v5534_v13, 6 }
0x1034   :  { %1602 = vrot.lane.b32.xlu1 %v1601_v16, %s5153_s26 }
0x10a4   :  { %v1713_v17 = vpop.permute.xlu0 %1712 }
0x10a5   :  { %4518 = vmatmul.mubr.msk.f32.vlgmr.msra.gmra.mrb[14].mxu1 %vm288_vm2, %v1713_v17 }
0x10a6   :  { %v1603_v20 = vpop.permute.xlu1 %1602  ;;  %4721 = vmatpush3.bf16.msra.mxu1 %v5296_v6  ;;  %4531 = vmatprep.mubr.msk.f32.mxu1 %vm5149_vm1, %v5150_v11 }
0x10a7   :  { %4511 = vmatmul.mubr.msk.f32.vlgmr.msra.gmra.mrb[14].mxu0 %vm288_vm2, %v1603_v20 }
0x10a8   :  { %4718 = vmatpush3.bf16.msra.mxu0 %v5306_v10  ;;  %4524 = vmatprep.mubr.msk.f32.mxu0 %vm5149_vm1, %v5150_v11 }
0x1178   :  { %v1782_v21 = vpop.f32.mrb[14].mxu1 }
0x1179   :  { %v1783_v23 = vadd.f32 %v5343_v19, %v1782_v21  ;;  %v4519_v24 = vpop.f32.mrb[15].mxu1 }
0x117a   :  { %v1672_v25 = vpop.f32.mrb[14].mxu0 }
0x117b   :  { %v1787_v27 = vrot.slane %v1783_v23, 6  ;;  %v1673_v28 = vadd.f32 %v5351_v26, %v1672_v25  ;;  %v4512_v29 = vpop.f32.mrb[15].mxu0 }
0x117d   :  { %v1677_v6 = vrot.slane %v1673_v28, 4  ;;  %1796 = vrot.lane.b32.xlu0 %v1787_v27, %s5151_s4  ;;  %v1789_v31 = vadd.f32 %v1787_v27, %v5338_v18 }
0x117f   :  { %1686 = vrot.lane.b32.xlu1 %v1677_v6, %s5151_s4  ;;  %v1679_v10 = vadd.f32 %v1677_v6, %v5345_v22  ;;  %v4243_v30 = vmul.f32 -1.442695, %v1789_v31 }
0x1181   :  { %v4241_v32 = vmul.f32 -1.442695, %v1679_v10  ;;  %4878 = vpow2.f32 %v4243_v30 }
0x1183   :  { %4880 = vpow2.f32 %v4241_v32 }
0x118b   :  { %v4879_v34 = vpop.eup %4878 }
0x118c   :  { %v1793_v36 = vadd.f32 1.0, %v4879_v34 }
0x118d   :  { %v4881_v35 = vpop.eup %4880 }
0x118e   :  { %v1683_v37 = vadd.f32 1.0, %v4881_v35  ;;  %4882 = vrcp.f32 %v1793_v36 }
0x1190   :  { %4884 = vrcp.f32 %v1683_v37 }
0x1198   :  { %v4883_v38 = vpop.eup %4882 }
0x1199   :  { %v1806_v53 = vsub.f32 1.0, %v4883_v38  ;;  %v1814_v57 = vmul.f32 %v4883_v38, %v1812_v55 }
0x119a   :  { %v4885_v41 = vpop.eup %4884 }
0x119b   :  { %v1696_v59 = vsub.f32 1.0, %v4885_v41  ;;  %v1704_v0 = vmul.f32 %v4885_v41, %v1702_v61 }
0x11ef   :  { %v1797_v39 = vpop.permute.xlu0 %1796 }
0x11f0   :  { %v1799_v40 = vmul.f32 %v4883_v38, %v1797_v39 }
0x11f1   :  { %v1687_v43 = vpop.permute.xlu1 %1686 }
0x11f2   :  { %1801 = vrot.lane.b32.xlu0 %v1799_v40, %s5144_s2  ;;  %v1689_v44 = vmul.f32 %v4885_v41, %v1687_v43 }
0x11f4   :  { %1691 = vrot.lane.b32.xlu1 %v1689_v44, %s5144_s2 }
0x1264   :  { %v1802_v46 = vpop.permute.xlu0 %1801 }
0x1265   :  { %v1804_v47 = vadd.f32 %v1802_v46, %v5338_v18 }
0x1266   :  { %v1692_v48 = vpop.permute.xlu1 %1691 }
0x1267   :  { %4886 = vtanh.f32 %v1804_v47  ;;  %v1694_v49 = vadd.f32 %v1692_v48, %v5345_v22 }
0x1269   :  { %4888 = vtanh.f32 %v1694_v49 }
0x1271   :  { %v4887_v50 = vpop.eup %4886 }
0x1272   :  { %1808 = vrot.lane.b32.xlu0 %v4887_v50, %s5153_s26  ;;  %v2221_v50 = vld [vmem:[#allocation9 + $0x20] sm:$0xff] }
0x1273   :  { %v4889_v52 = vpop.eup %4888 }
0x1274   :  { %1698 = vrot.lane.b32.xlu1 %v4889_v52, %s5153_s26  ;;  %v2222_v52 = vld [vmem:[#allocation9 + $0x28] sm:$0xff] }
0x12e4   :  { %v1809_v56 = vpop.permute.xlu0 %1808 }
0x12e5   :  { %v1811_v58 = vmul.f32 %v1809_v56, %v1806_v53  ;;  %v2045_v53 = vld [vmem:[#allocation9] sm:$0xff] }
0x12e6   :  { %v1699_v62 = vpop.permute.xlu1 %1698 }
0x12e7   :  { %v5562_v63 = vadd.f32 %v1814_v57, %v1811_v58  ;;  %v1701_v1 = vmul.f32 %v1699_v62, %v1696_v59  ;;  %v4734_v57 = vpack.c.bf16 %v2222_v52, %v2221_v50  ;;  %v2046_v58 = vld [vmem:[#allocation9 + $0x8] sm:$0xff] }
0x12e8   :  { %v4726_v59 = vpack.c.bf16 %v2046_v58, %v2045_v53 }
0x12e9   :  { %v5564_v2 = vadd.f32 %v1704_v0, %v1701_v1  ;;  %v1931_v3 = vrot.slane %v5562_v63, 2 }
0x12eb   :  { %1932 = vrot.lane.b32.xlu0 %v1931_v3, %s5153_s26  ;;  %v1821_v4 = vrot.slane %v5564_v2, 4 }
0x12ed   :  { %1822 = vrot.lane.b32.xlu1 %v1821_v4, %s5153_s26 }
0x135d   :  { %v1933_v5 = vpop.permute.xlu0 %1932 }
0x135e   :  { %4532 = vmatmul.mubr.msk.f32.vlgmr.msra.gmra.mrb[16].mxu1 %vm288_vm2, %v1933_v5 }
0x135f   :  { %v1823_v8 = vpop.permute.xlu1 %1822 }
0x1360   :  { %4525 = vmatmul.mubr.msk.f32.vlgmr.msra.gmra.mrb[16].mxu0 %vm288_vm2, %v1823_v8 }
0x1431   :  { %v2002_v12 = vpop.f32.mrb[16].mxu1 }
0x1432   :  { %v2003_v14 = vadd.f32 %v5343_v19, %v2002_v12  ;;  %v4533_v16 = vpop.f32.mrb[17].mxu1 }
0x1433   :  { %v1892_v17 = vpop.f32.mrb[16].mxu0 }
0x1434   :  { %v1893_v20 = vadd.f32 %v5351_v26, %v1892_v17  ;;  %2014 = vrot.lane.b32.xlu0 %v2003_v14, %s5151_s4  ;;  %v4526_v21 = vpop.f32.mrb[17].mxu0  ;;  %v2006_v24 = vadd.f32 %v2003_v14, %v5338_v18  ;;  %v2385_v17 = vld [vmem:[#allocation10] sm:$0xff] }
0x1435   :  { %v2388_v21 = vld [vmem:[#allocation10 + $0x10] sm:$0xff] }
0x1436   :  { %v1897_v23 = vrot.slane %v1893_v20, 2  ;;  %v4247_v25 = vmul.f32 -1.442695, %v2006_v24  ;;  %v2386_v20 = vld [vmem:[#allocation10 + $0x8] sm:$0xff] }
0x1438   :  { %1906 = vrot.lane.b32.xlu1 %v1897_v23, %s5151_s4  ;;  %v1899_v27 = vadd.f32 %v1897_v23, %v5345_v22  ;;  %4890 = vpow2.f32 %v4247_v25  ;;  %v2389_v23 = vld [vmem:[#allocation10 + $0x18] sm:$0xff]  ;;  %v5636_v25 = vpack.c.bf16 %v2386_v20, %v2385_v17 }
0x143a   :  { %v4245_v28 = vmul.f32 -1.442695, %v1899_v27  ;;  %v5638_v27 = vpack.c.bf16 %v2389_v23, %v2388_v21 }
0x143c   :  { %4892 = vpow2.f32 %v4245_v28 }
0x1442   :  { %v4891_v29 = vpop.eup %4890 }
0x1443   :  { %v2010_v19 = vadd.f32 1.0, %v4891_v29  ;;  %v2394_v29 = vld [vmem:[#allocation4 + $0x4] sm:$0x3] }
0x1445   :  { %4894 = vrcp.f32 %v2010_v19  ;;  %v2396_v19 = vld [vmem:[#allocation4 + $0x6] sm:$0x3] }
0x1446   :  { %v4893_v6 = vpop.eup %4892 }
0x1447   :  { %v1903_v31 = vadd.f32 1.0, %v4893_v6  ;;  %v4252_v6 = vld [vmem:[%s5993_s8] ss:$0 sm:$0xff] }
0x1449   :  { %4896 = vrcp.f32 %v1903_v31  ;;  %v4258_v31 = vld [vmem:[%s5993_s8 + $0x1] ss:$0 sm:$0xff]  ;;  %s5154_s8 = smov [#allocation13]  }
0x144f   :  { %v4895_v26 = vpop.eup %4894 }
0x1453   :  { %v4897_v32 = vpop.eup %4896 }
0x1454   :  { %v1916_v47 = vsub.f32 1.0, %v4897_v32 }
0x14a6   :  { %v2015_v10 = vpop.permute.xlu0 %2014 }
0x14a7   :  { %v2017_v30 = vmul.f32 %v4895_v26, %v2015_v10 }
0x14a9   :  { %2019 = vrot.lane.b32.xlu0 %v2017_v30, %s5144_s2 }
0x14aa   :  { %v1907_v34 = vpop.permute.xlu1 %1906 }
0x14ab   :  { %v1909_v35 = vmul.f32 %v4897_v32, %v1907_v34 }
0x14ad   :  { %1911 = vrot.lane.b32.xlu1 %v1909_v35, %s5144_s2 }
0x151b   :  { %v2020_v36 = vpop.permute.xlu0 %2019 }
0x151c   :  { %v2022_v37 = vadd.f32 %v2020_v36, %v5338_v18  ;;  %v2047_v18 = vld [vmem:[#allocation9 + $0x10] sm:$0xff]  ;;  %v5673_v36 = vld [vmem:[%s5994_s9] ss:$0 sm:$0xff] }
0x151e   :  { %4898 = vtanh.f32 %v2022_v37  ;;  %v5678_v37 = vld [vmem:[%s5994_s9 + $0x1] ss:$0 sm:$0xff]  ;;  %s4186_s9 = sshll.u32 %s5154_s8, 4  ;;  %s4187_s9 = int_to_ptr.vmem [resolvable:$true] %s4186_s9 }
0x151f   :  { %v1912_v38 = vpop.permute.xlu1 %1911  ;;  %s5086_s21 = scalar_lea.vmem %s4187_s9, 128  ;;  %p5091_p5 = scmp.lt.s32.totalorder %s4187_s9, %s4187_s9 }
0x1520   :  { %v1914_v39 = vadd.f32 %v1912_v38, %v5345_v22  ;;  %v2048_v22 = vld [vmem:[#allocation9 + $0x18] sm:$0xff]  ;;  %p5087_p4 = scmp.ne.s32.totalorder %s4187_s9, %s5086_s21  ;;  %p5092_p6 = scmp.lt.s32.totalorder %s5086_s21, %s5086_s21 }
0x1521   :  { %v4722_v43 = vpack.c.bf16 %v2048_v22, %v2047_v18 }
0x1522   :  { %4900 = vtanh.f32 %v1914_v39  ;;  %p5093_p7 = por %p5092_p6, %p5091_p5 }
0x1523   :  { %4723 = vmatprep.subr.bf16.mxu0 %v4722_v43 }
0x1524   :  { %4725 = vmatpush3.bf16.msra.mxu0 %v4722_v43  ;;  %p5094_p8 = pnand %p5093_p7, %p5087_p4 }
0x1525   :  { %4727 = vmatprep.subr.bf16.mxu0 %v4726_v59 }
0x1528   :  { %v4899_v40 = vpop.eup %4898 }
0x1529   :  { %2026 = vrot.lane.b32.xlu0 %v4899_v40, %s5153_s26 }
0x152c   :  { %v4901_v41 = vpop.eup %4900 }
0x152d   :  { %1380 = vrot.lane.b32.xlu0 %v5499_v15, %s5153_s26  ;;  %1918 = vrot.lane.b32.xlu1 %v4901_v41, %s5153_s26  ;;  %v2223_v15 = vld [vmem:[#allocation9 + $0x30] sm:$0xff] }
0x1531   :  { %1817 = vrot.lane.b32.xlu0 %v5562_v63, %s5153_s26  ;;  %1597 = vrot.lane.b32.xlu1 %v5532_v7, %s5153_s26  ;;  %v2224_v7 = vld [vmem:[#allocation9 + $0x38] sm:$0xff] }
0x1532   :  { %v4730_v44 = vpack.c.bf16 %v2224_v7, %v2223_v15 }
0x1534   :  { %4731 = vmatprep.subr.bf16.mxu1 %v4730_v44 }
0x1535   :  { %509 = vrot.lane.b32.xlu0 %v5371_v60, %s5153_s26  ;;  %728 = vrot.lane.b32.xlu1 %v5404_v51, %s5153_s26  ;;  %v2024_v60 = vsub.f32 1.0, %v4895_v26 }
0x1536   :  { %4733 = vmatpush3.bf16.msra.mxu1 %v4730_v44 }
0x1537   :  { %4735 = vmatprep.subr.bf16.mxu1 %v4734_v57 }
0x1539   :  { %949 = vrot.lane.b32.xlu0 %v5436_v42, %s5153_s26  ;;  %v2031_v42 = vmul.f32 %v4895_v26, %v1931_v3 }
0x153d   :  { %839 = vrot.lane.b32.xlu0 %v5438_v45, %s5153_s26 }
0x1541   :  { %1487 = vrot.lane.b32.xlu0 %v5534_v13, %s5153_s26  ;;  %v1922_v13 = vrot.slane %v5564_v2, 6 }
0x1543   :  { %v1924_v55 = vmul.f32 %v4897_v32, %v1922_v13 }
0x159b   :  { %v2027_v51 = vpop.permute.xlu0 %2026 }
0x159c   :  { %v2029_v46 = vmul.f32 %v2027_v51, %v2024_v60 }
0x159e   :  { %v2032_v45 = vadd.f32 %v2031_v42, %v2029_v46 }
0x159f   :  { %v1381_v48 = vpop.permute.xlu0 %1380  ;;  %v1919_v49 = vpop.permute.xlu1 %1918 }
0x15a0   :  { %1383 = vst.msk [vmem:[#allocation3] sm:$0xc0] %vm512_vm4, %v1381_v48  ;;  %v1921_v56 = vmul.f32 %v1919_v49, %v1916_v47  ;;  %2034 = vrot.lane.b32.xlu1 %v2032_v45, %s5153_s26 }
0x15a2   :  { %v1925_v61 = vadd.f32 %v1924_v55, %v1921_v56  ;;  %v2615_v56 = vrot.slane %v2396_v19, 2 }
0x15a3   :  { %v1818_v62 = vpop.permute.xlu0 %1817  ;;  %v1598_v63 = vpop.permute.xlu1 %1597 }
0x15a4   :  { %1820 = vst.msk [vmem:[#allocation3] sm:$0xc] %vm620_vm5, %v1818_v62  ;;  %617 = vrot.lane.b32.xlu1 %v5406_v54, %s5153_s26  ;;  %1927 = vrot.lane.b32.xlu0 %v1925_v61, %s5153_s26 }
0x15a5   :  { %1600 = vst.msk [vmem:[#allocation3] sm:$0x30] %vm731_vm6, %v1598_v63 }
0x15a7   :  { %v510_v0 = vpop.permute.xlu0 %509  ;;  %v729_v1 = vpop.permute.xlu1 %728 }
0x15a8   :  { %513 = vst.msk [vmem:[#allocation3 + $0x8] sm:$0xc0] %vm512_vm4, %v510_v0  ;;  %1059 = vrot.lane.b32.xlu1 %v5471_v33, %s5153_s26 }
0x15a9   :  { %732 = vst.msk [vmem:[#allocation3 + $0x8] sm:$0x30] %vm731_vm6, %v729_v1 }
0x15ab   :  { %v950_v3 = vpop.permute.xlu0 %949 }
0x15ac   :  { %952 = vst.msk [vmem:[#allocation3 + $0x8] sm:$0xc] %vm620_vm5, %v950_v3  ;;  %1707 = vrot.lane.b32.xlu1 %v5564_v2, %s5153_s26 }
0x15af   :  { %v840_v4 = vpop.permute.xlu0 %839 }
0x15b0   :  { %842 = vst.msk [vmem:[#allocation2] sm:$0x30] %vm731_vm6, %v840_v4 }
0x15b3   :  { %v1488_v54 = vpop.permute.xlu0 %1487  ;;  %v2044_v14 = vld [vmem:[#allocation3 + $0x8] sm:$0xff] }
0x15b4   :  { %1490 = vst.msk [vmem:[#allocation2 + $0x8] sm:$0xc] %vm620_vm5, %v1488_v54 }
0x1612   :  { %v2035_v5 = vpop.permute.xlu1 %2034 }
0x1613   :  { %2037 = vst.msk [vmem:[#allocation3] sm:$0x3] %vm395_vm3, %v2035_v5  ;;  %2040 = vst.msk [vmem:[#allocation13 + $0x2] sm:$0x3] %vm395_vm3, %v2035_v5 }
0x1616   :  { %v1928_v8 = vpop.permute.xlu0 %1927  ;;  %v618_v12 = vpop.permute.xlu1 %617 }
0x1617   :  { %1930 = vst.msk [vmem:[#allocation2 + $0x8] sm:$0xc0] %vm512_vm4, %v1928_v8  ;;  %2038 = vst.msk [vmem:[#allocation13 - $0x6] sm:$0xc0] %vm512_vm4, %v1928_v8 }
0x1618   :  { %621 = vst.msk [vmem:[#allocation2] sm:$0xc] %vm620_vm5, %v618_v12 }
0x161a   :  { %v1060_v33 = vpop.permute.xlu1 %1059  ;;  %v2043_v2 = vld [vmem:[#allocation3] sm:$0xff] }
0x161b   :  { %1062 = vst.msk [vmem:[#allocation2] sm:$0xc0] %vm512_vm4, %v1060_v33  ;;  %4538 = vmatprep.mubr.msk.f32.mxu0 %vm288_vm2, %v2043_v2  ;;  %4552 = vmatprep.mubr.msk.f32.mxu1 %vm288_vm2, %v2043_v2 }
0x161c   :  { %4539 = vmatmul.mubr.msk.f32.vlgmr.msra.gmra.mrb[18].mxu0 %vm288_vm2, %v2044_v14  ;;  %4553 = vmatmul.mubr.msk.f32.vlgmr.msra.gmra.mrb[18].mxu1 %vm288_vm2, %v2044_v14 }
0x161d   :  { %4737 = vmatpush3.bf16.msra.mxu1 %v4734_v57  ;;  %4729 = vmatpush3.bf16.msra.mxu0 %v4726_v59 }
0x161e   :  { %v1708_v16 = vpop.permute.xlu1 %1707  ;;  %4738 = vmatprep.subr.bf16.mxu0 %v5148_v9  ;;  %4741 = vmatprep.subr.bf16.mxu1 %v5148_v9 }
0x161f   :  { %1710 = vst.msk [vmem:[#allocation2 + $0x8] sm:$0x30] %vm731_vm6, %v1708_v16 }
0x1622   :  { %v2041_v24 = vld [vmem:[#allocation2] sm:$0xff] }
0x1623   :  { %4545 = vmatprep.mubr.msk.f32.mxu0 %vm288_vm2, %v2041_v24  ;;  %4559 = vmatprep.mubr.msk.f32.mxu1 %vm288_vm2, %v2041_v24 }
0x1626   :  { %v2042_v28 = vld [vmem:[#allocation2 + $0x8] sm:$0xff] }
0x1627   :  { %4546 = vmatmul.mubr.msk.f32.vlgmr.msra.gmra.mrb[18].mxu0 %vm288_vm2, %v2042_v28  ;;  %4560 = vmatmul.mubr.msk.f32.vlgmr.msra.gmra.mrb[18].mxu1 %vm288_vm2, %v2042_v28 }
0x1628   :  { %4740 = vmatpush3.bf16.msra.mxu0 %v5636_v25  ;;  %4743 = vmatpush3.bf16.msra.mxu1 %v5638_v27 }
0x1629   :  { %4566 = vmatprep.mubr.msk.f32.mxu0 %vm5149_vm1, %v5150_v11  ;;  %4573 = vmatprep.mubr.msk.f32.mxu1 %vm5149_vm1, %v5150_v11 }
0x162a   :  { %4747 = vmatprep.subr.bf16.mxu1 %v5148_v9  ;;  %4744 = vmatprep.subr.bf16.mxu0 %v5148_v9 }
0x162b   :  { %4567 = vmatmul.mubr.msk.f32.vlgmr.msra.gmra.mrb[20].mxu0 %vm288_vm2, %v2394_v29  ;;  %4574 = vmatmul.mubr.msk.f32.vlgmr.msra.gmra.mrb[20].mxu1 %vm288_vm2, %v2396_v19 }
0x162c   :  { %4749 = vmatpush3.bf16.msra.mxu1 %v5638_v27  ;;  %4746 = vmatpush3.bf16.msra.mxu0 %v5636_v25 }
0x162d   :  { %4587 = vmatprep.mubr.msk.f32.mxu1 %vm5149_vm1, %v5150_v11  ;;  %4580 = vmatprep.mubr.msk.f32.mxu0 %vm5149_vm1, %v5150_v11 }
0x162e   :  { %4753 = vmatprep.subr.bf16.mxu1 %v5148_v9  ;;  %4750 = vmatprep.subr.bf16.mxu0 %v5148_v9 }
0x16fa   :  { %v4547_v26 = vpop.f32.mrb[18].mxu0  ;;  %v4561_v10 = vpop.f32.mrb[18].mxu1 }
0x16fb   :  { %v5666_v30 = vadd.f32 %v4547_v26, %v4252_v6  ;;  %v2202_v32 = vpop.f32.mrb[19].mxu0  ;;  %v2366_v34 = vpop.f32.mrb[19].mxu1  ;;  %v5686_v7 = vadd.f32 %v4561_v10, %v4258_v31 }
0x16fc   :  { %v5668_v35 = vadd.f32 %v4258_v31, %v2366_v34  ;;  %v5684_v43 = vadd.f32 %v4252_v6, %v2202_v32 }
0x16fe   :  { %v2472_v38 = vpop.f32.mrb[20].mxu0  ;;  %v2585_v39 = vpop.f32.mrb[20].mxu1 }
0x16ff   :  { %v2473_v40 = vadd.f32 %v5673_v36, %v2472_v38  ;;  %v2586_v41 = vadd.f32 %v5678_v37, %v2585_v39  ;;  %v4575_v18 = vpop.f32.mrb[21].mxu1  ;;  %v4568_v22 = vpop.f32.mrb[21].mxu0 }
0x1701   :  { %v2590_v15 = vrot.slane %v2586_v41, 2  ;;  %2484 = vrot.lane.b32.xlu0 %v2473_v40, %s5151_s4  ;;  %v2476_v44 = vadd.f32 %v2473_v40, %v5684_v43 }
0x1703   :  { %2599 = vrot.lane.b32.xlu1 %v2590_v15, %s5151_s4  ;;  %v2592_v60 = vadd.f32 %v2590_v15, %v5686_v7  ;;  %v4262_v51 = vmul.f32 -1.442695, %v2476_v44 }
0x1705   :  { %v4265_v42 = vmul.f32 -1.442695, %v2592_v60  ;;  %4902 = vpow2.f32 %v4262_v51 }
0x1707   :  { %4904 = vpow2.f32 %v4265_v42 }
0x170f   :  { %v4903_v46 = vpop.eup %4902 }
0x1710   :  { %v2480_v47 = vadd.f32 1.0, %v4903_v46 }
0x1711   :  { %v4905_v45 = vpop.eup %4904 }
0x1712   :  { %v2596_v13 = vadd.f32 1.0, %v4905_v45  ;;  %4906 = vrcp.f32 %v2480_v47 }
0x1714   :  { %4908 = vrcp.f32 %v2596_v13 }
0x171c   :  { %v4907_v48 = vpop.eup %4906 }
0x171d   :  { %v2494_v12 = vsub.f32 1.0, %v4907_v48 }
0x171e   :  { %v4909_v52 = vpop.eup %4908 }
0x171f   :  { %v2609_v1 = vsub.f32 1.0, %v4909_v52 }
0x1773   :  { %v2485_v49 = vpop.permute.xlu0 %2484 }
0x1774   :  { %v2487_v50 = vmul.f32 %v4907_v48, %v2485_v49 }
0x1775   :  { %v2600_v53 = vpop.permute.xlu1 %2599 }
0x1776   :  { %v2602_v55 = vmul.f32 %v4909_v52, %v2600_v53  ;;  %2489 = vrot.lane.b32.xlu0 %v2487_v50, %s5144_s2 }
0x1778   :  { %2604 = vrot.lane.b32.xlu1 %v2602_v55, %s5144_s2 }
0x177a   :  { %2616 = vrot.lane.b32.xlu0 %v2615_v56, %s5152_s5 }
0x177e   :  { %2500 = vrot.lane.b32.xlu0 %v2394_v29, %s5152_s5 }
0x17e8   :  { %v2490_v57 = vpop.permute.xlu0 %2489 }
0x17e9   :  { %v2492_v61 = vadd.f32 %v2490_v57, %v5684_v43 }
0x17ea   :  { %v2605_v58 = vpop.permute.xlu1 %2604 }
0x17eb   :  { %v2607_v59 = vadd.f32 %v2605_v58, %v5686_v7 }
0x17ec   :  { %v2617_v0 = vpop.permute.xlu0 %2616 }
0x17ed   :  { %4910 = vtanh.f32 %v2607_v59  ;;  %v2619_v4 = vmul.f32 %v4909_v52, %v2617_v0 }
0x17ee   :  { %4912 = vtanh.f32 %v2492_v61 }
0x17f0   :  { %v2501_v5 = vpop.permute.xlu0 %2500 }
0x17f1   :  { %v2503_v2 = vmul.f32 %v4907_v48, %v2501_v5 }
0x17f7   :  { %v4911_v62 = vpop.eup %4910 }
0x17f8   :  { %2611 = vrot.lane.b32.xlu1 %v4911_v62, %s5153_s26  ;;  %v4913_v63 = vpop.eup %4912 }
0x17fc   :  { %2496 = vrot.lane.b32.xlu1 %v4913_v63, %s5153_s26 }
0x186a   :  { %v2612_v3 = vpop.permute.xlu1 %2611 }
0x186b   :  { %v2614_v54 = vmul.f32 %v2612_v3, %v2609_v1 }
0x186d   :  { %v5698_v8 = vadd.f32 %v2619_v4, %v2614_v54 }
0x186e   :  { %v2497_v33 = vpop.permute.xlu1 %2496 }
0x186f   :  { %v2499_v14 = vmul.f32 %v2497_v33, %v2494_v12  ;;  %v2733_v16 = vrot.slane %v5698_v8, 6  ;;  %v2834_v52 = vrot.slane %v5698_v8, 2 }
0x1871   :  { %v5701_v17 = vadd.f32 %v2503_v2, %v2499_v14  ;;  %2734 = vrot.lane.b32.xlu1 %v2733_v16, %s5153_s26 }
0x1873   :  { %2506 = vrot.lane.b32.xlu0 %v5701_v17, %s5153_s26  ;;  %v2724_v55 = vrot.slane %v5701_v17, 6 }
0x18e3   :  { %v2735_v20 = vpop.permute.xlu1 %2734 }
0x18e4   :  { %4588 = vmatmul.mubr.msk.f32.vlgmr.msra.gmra.mrb[22].mxu1 %vm288_vm2, %v2735_v20 }
0x18e5   :  { %v2507_v21 = vpop.permute.xlu0 %2506  ;;  %4755 = vmatpush3.bf16.msra.mxu1 %v5638_v27  ;;  %4601 = vmatprep.mubr.msk.f32.mxu1 %vm5149_vm1, %v5150_v11 }
0x18e6   :  { %2509 = vst.msk [vmem:[#allocation2] sm:$0x3] %vm395_vm3, %v2507_v21  ;;  %4581 = vmatmul.mubr.msk.f32.vlgmr.msra.gmra.mrb[22].mxu0 %vm288_vm2, %v2507_v21  ;;  %4759 = vmatprep.subr.bf16.mxu1 %v5148_v9 }
0x18e7   :  { %4752 = vmatpush3.bf16.msra.mxu0 %v5636_v25  ;;  %4594 = vmatprep.mubr.msk.f32.mxu0 %vm5149_vm1, %v5150_v11 }
0x18e8   :  { %4756 = vmatprep.subr.bf16.mxu0 %v5148_v9 }
0x19b7   :  { %v2804_v23 = vpop.f32.mrb[22].mxu1 }
0x19b8   :  { %v2805_v24 = vadd.f32 %v5678_v37, %v2804_v23  ;;  %v4589_v28 = vpop.f32.mrb[23].mxu1 }
0x19b9   :  { %v2694_v29 = vpop.f32.mrb[22].mxu0 }
0x19ba   :  { %v2809_v19 = vrot.slane %v2805_v24, 4  ;;  %v2695_v6 = vadd.f32 %v5673_v36, %v2694_v29  ;;  %v4582_v31 = vpop.f32.mrb[23].mxu0 }
0x19bc   :  { %v2699_v26 = vrot.slane %v2695_v6, 6  ;;  %2818 = vrot.lane.b32.xlu1 %v2809_v19, %s5151_s4  ;;  %v2811_v10 = vadd.f32 %v2809_v19, %v5686_v7 }
0x19be   :  { %2708 = vrot.lane.b32.xlu0 %v2699_v26, %s5151_s4  ;;  %v2701_v32 = vadd.f32 %v2699_v26, %v5684_v43  ;;  %v4269_v34 = vmul.f32 -1.442695, %v2811_v10 }
0x19c0   :  { %v4267_v38 = vmul.f32 -1.442695, %v2701_v32  ;;  %4914 = vpow2.f32 %v4269_v34 }
0x19c2   :  { %4916 = vpow2.f32 %v4267_v38 }
0x19ca   :  { %v4915_v39 = vpop.eup %4914 }
0x19cb   :  { %v2815_v41 = vadd.f32 1.0, %v4915_v39 }
0x19cc   :  { %v4917_v40 = vpop.eup %4916 }
0x19cd   :  { %v2705_v18 = vadd.f32 1.0, %v4917_v40  ;;  %4918 = vrcp.f32 %v2815_v41 }
0x19cf   :  { %4920 = vrcp.f32 %v2705_v18 }
0x19d7   :  { %v4919_v22 = vpop.eup %4918 }
0x19d8   :  { %v2828_v50 = vsub.f32 1.0, %v4919_v22  ;;  %v2836_v56 = vmul.f32 %v4919_v22, %v2834_v52 }
0x19d9   :  { %v4921_v60 = vpop.eup %4920 }
0x19da   :  { %v2718_v58 = vsub.f32 1.0, %v4921_v60  ;;  %v2726_v63 = vmul.f32 %v4921_v60, %v2724_v55 }
0x1a2e   :  { %v2819_v15 = vpop.permute.xlu1 %2818 }
0x1a2f   :  { %v2821_v44 = vmul.f32 %v4919_v22, %v2819_v15 }
0x1a30   :  { %v2709_v51 = vpop.permute.xlu0 %2708 }
0x1a31   :  { %v2711_v42 = vmul.f32 %v4921_v60, %v2709_v51  ;;  %2823 = vrot.lane.b32.xlu1 %v2821_v44, %s5144_s2 }
0x1a33   :  { %2713 = vrot.lane.b32.xlu0 %v2711_v42, %s5144_s2 }
0x1aa3   :  { %v2824_v46 = vpop.permute.xlu1 %2823 }
0x1aa4   :  { %v2826_v45 = vadd.f32 %v2824_v46, %v5686_v7 }
0x1aa5   :  { %v2714_v47 = vpop.permute.xlu0 %2713 }
0x1aa6   :  { %4922 = vtanh.f32 %v2826_v45  ;;  %v2716_v13 = vadd.f32 %v2714_v47, %v5684_v43 }
0x1aa8   :  { %4924 = vtanh.f32 %v2716_v13 }
0x1ab0   :  { %v4923_v48 = vpop.eup %4922 }
0x1ab1   :  { %2830 = vrot.lane.b32.xlu1 %v4923_v48, %s5153_s26 }
0x1ab2   :  { %v4925_v49 = vpop.eup %4924 }
0x1ab3   :  { %2720 = vrot.lane.b32.xlu0 %v4925_v49, %s5153_s26 }
0x1b23   :  { %v2831_v53 = vpop.permute.xlu1 %2830 }
0x1b24   :  { %v2833_v57 = vmul.f32 %v2831_v53, %v2828_v50 }
0x1b25   :  { %v2721_v59 = vpop.permute.xlu0 %2720 }
0x1b26   :  { %v5731_v61 = vadd.f32 %v2836_v56, %v2833_v57  ;;  %v2723_v62 = vmul.f32 %v2721_v59, %v2718_v58 }
0x1b28   :  { %v5733_v0 = vadd.f32 %v2726_v63, %v2723_v62  ;;  %v2953_v1 = vrot.slane %v5731_v61, 4  ;;  %v3054_v51 = vrot.slane %v5731_v61, 2 }
0x1b2a   :  { %2954 = vrot.lane.b32.xlu1 %v2953_v1, %s5153_s26  ;;  %v2843_v3 = vrot.slane %v5733_v0, 2  ;;  %v2944_v13 = vrot.slane %v5733_v0, 6 }
0x1b2c   :  { %2844 = vrot.lane.b32.xlu0 %v2843_v3, %s5153_s26 }
0x1b9c   :  { %v2955_v4 = vpop.permute.xlu1 %2954 }
0x1b9d   :  { %4602 = vmatmul.mubr.msk.f32.vlgmr.msra.gmra.mrb[24].mxu1 %vm288_vm2, %v2955_v4 }
0x1b9e   :  { %v2845_v54 = vpop.permute.xlu0 %2844  ;;  %4761 = vmatpush3.bf16.msra.mxu1 %v5638_v27  ;;  %4615 = vmatprep.mubr.msk.f32.mxu1 %vm5149_vm1, %v5150_v11 }
0x1b9f   :  { %4595 = vmatmul.mubr.msk.f32.vlgmr.msra.gmra.mrb[24].mxu0 %vm288_vm2, %v2845_v54  ;;  %4765 = vmatprep.subr.bf16.mxu1 %v5148_v9 }
0x1ba0   :  { %4758 = vmatpush3.bf16.msra.mxu0 %v5636_v25  ;;  %4608 = vmatprep.mubr.msk.f32.mxu0 %vm5149_vm1, %v5150_v11 }
0x1ba1   :  { %4762 = vmatprep.subr.bf16.mxu0 %v5148_v9 }
0x1c70   :  { %v3024_v5 = vpop.f32.mrb[24].mxu1 }
0x1c71   :  { %v3025_v12 = vadd.f32 %v5678_v37, %v3024_v5  ;;  %v4603_v33 = vpop.f32.mrb[25].mxu1 }
0x1c72   :  { %v2914_v2 = vpop.f32.mrb[24].mxu0 }
0x1c73   :  { %v3029_v14 = vrot.slane %v3025_v12, 6  ;;  %v2915_v16 = vadd.f32 %v5673_v36, %v2914_v2  ;;  %v4596_v17 = vpop.f32.mrb[25].mxu0 }
0x1c75   :  { %v2919_v20 = vrot.slane %v2915_v16, 4  ;;  %3038 = vrot.lane.b32.xlu1 %v3029_v14, %s5151_s4  ;;  %v3031_v21 = vadd.f32 %v3029_v14, %v5686_v7 }
0x1c77   :  { %2928 = vrot.lane.b32.xlu0 %v2919_v20, %s5151_s4  ;;  %v2921_v23 = vadd.f32 %v2919_v20, %v5684_v43  ;;  %v4273_v24 = vmul.f32 -1.442695, %v3031_v21 }
0x1c79   :  { %v4271_v28 = vmul.f32 -1.442695, %v2921_v23  ;;  %4926 = vpow2.f32 %v4273_v24 }
0x1c7b   :  { %4928 = vpow2.f32 %v4271_v28 }
0x1c83   :  { %v4927_v29 = vpop.eup %4926 }
0x1c84   :  { %v3035_v6 = vadd.f32 1.0, %v4927_v29 }
0x1c85   :  { %v4929_v19 = vpop.eup %4928 }
0x1c86   :  { %v2925_v31 = vadd.f32 1.0, %v4929_v19  ;;  %4930 = vrcp.f32 %v3035_v6 }
0x1c88   :  { %4932 = vrcp.f32 %v2925_v31 }
0x1c90   :  { %v4931_v26 = vpop.eup %4930 }
0x1c91   :  { %v3048_v60 = vsub.f32 1.0, %v4931_v26  ;;  %v3056_v46 = vmul.f32 %v4931_v26, %v3054_v51 }
0x1c92   :  { %v4933_v34 = vpop.eup %4932 }
0x1c93   :  { %v2938_v47 = vsub.f32 1.0, %v4933_v34  ;;  %v2946_v50 = vmul.f32 %v4933_v34, %v2944_v13 }
0x1ce7   :  { %v3039_v10 = vpop.permute.xlu1 %3038 }
0x1ce8   :  { %v3041_v32 = vmul.f32 %v4931_v26, %v3039_v10 }
0x1ce9   :  { %v2929_v38 = vpop.permute.xlu0 %2928 }
0x1cea   :  { %v2931_v39 = vmul.f32 %v4933_v34, %v2929_v38  ;;  %3043 = vrot.lane.b32.xlu1 %v3041_v32, %s5144_s2 }
0x1cec   :  { %2933 = vrot.lane.b32.xlu0 %v2931_v39, %s5144_s2 }
0x1d5c   :  { %v3044_v40 = vpop.permute.xlu1 %3043 }
0x1d5d   :  { %v3046_v41 = vadd.f32 %v3044_v40, %v5686_v7 }
0x1d5e   :  { %v2934_v18 = vpop.permute.xlu0 %2933 }
0x1d5f   :  { %4934 = vtanh.f32 %v3046_v41  ;;  %v2936_v22 = vadd.f32 %v2934_v18, %v5684_v43 }
0x1d61   :  { %4936 = vtanh.f32 %v2936_v22 }
0x1d69   :  { %v4935_v15 = vpop.eup %4934 }
0x1d6a   :  { %3050 = vrot.lane.b32.xlu1 %v4935_v15, %s5153_s26 }
0x1d6b   :  { %v4937_v44 = vpop.eup %4936 }
0x1d6c   :  { %2940 = vrot.lane.b32.xlu0 %v4937_v44, %s5153_s26 }
0x1ddc   :  { %v3051_v42 = vpop.permute.xlu1 %3050 }
0x1ddd   :  { %v3053_v45 = vmul.f32 %v3051_v42, %v3048_v60 }
0x1dde   :  { %v2941_v48 = vpop.permute.xlu0 %2940 }
0x1ddf   :  { %v5763_v49 = vadd.f32 %v3056_v46, %v3053_v45  ;;  %v2943_v52 = vmul.f32 %v2941_v48, %v2938_v47 }
0x1de1   :  { %v3173_v53 = vrot.slane %v5763_v49, 2  ;;  %v5766_v55 = vadd.f32 %v2946_v50, %v2943_v52 }
0x1de3   :  { %v3063_v56 = vrot.slane %v5766_v55, 4  ;;  %3174 = vrot.lane.b32.xlu1 %v3173_v53, %s5153_s26 }
0x1de5   :  { %3064 = vrot.lane.b32.xlu0 %v3063_v56, %s5153_s26 }
0x1e55   :  { %v3175_v57 = vpop.permute.xlu1 %3174 }
0x1e56   :  { %4616 = vmatmul.mubr.msk.f32.vlgmr.msra.gmra.mrb[26].mxu1 %vm288_vm2, %v3175_v57 }
0x1e57   :  { %v3065_v58 = vpop.permute.xlu0 %3064  ;;  %4767 = vmatpush3.bf16.msra.mxu1 %v5638_v27  ;;  %4629 = vmatprep.mubr.msk.f32.mxu1 %vm5149_vm1, %v5150_v11 }
0x1e58   :  { %4609 = vmatmul.mubr.msk.f32.vlgmr.msra.gmra.mrb[26].mxu0 %vm288_vm2, %v3065_v58  ;;  %4771 = vmatprep.subr.bf16.mxu1 %v5148_v9 }
0x1e59   :  { %4764 = vmatpush3.bf16.msra.mxu0 %v5636_v25  ;;  %4622 = vmatprep.mubr.msk.f32.mxu0 %vm5149_vm1, %v5150_v11 }
0x1e5a   :  { %4768 = vmatprep.subr.bf16.mxu0 %v5148_v9 }
0x1f29   :  { %v3244_v59 = vpop.f32.mrb[26].mxu1 }
0x1f2a   :  { %v3245_v62 = vadd.f32 %v5678_v37, %v3244_v59  ;;  %v4617_v63 = vpop.f32.mrb[27].mxu1 }
0x1f2b   :  { %v3134_v1 = vpop.f32.mrb[26].mxu0 }
0x1f2c   :  { %v3135_v3 = vadd.f32 %v5673_v36, %v3134_v1  ;;  %3256 = vrot.lane.b32.xlu1 %v3245_v62, %s5151_s4  ;;  %v4610_v4 = vpop.f32.mrb[27].mxu0  ;;  %v3248_v5 = vadd.f32 %v3245_v62, %v5686_v7 }
0x1f2e   :  { %v3139_v54 = vrot.slane %v3135_v3, 2  ;;  %v4277_v12 = vmul.f32 -1.442695, %v3248_v5 }
0x1f30   :  { %3148 = vrot.lane.b32.xlu0 %v3139_v54, %s5151_s4  ;;  %v3141_v33 = vadd.f32 %v3139_v54, %v5684_v43  ;;  %4938 = vpow2.f32 %v4277_v12 }
0x1f32   :  { %v4275_v2 = vmul.f32 -1.442695, %v3141_v33 }
0x1f34   :  { %4940 = vpow2.f32 %v4275_v2 }
0x1f3a   :  { %v4939_v14 = vpop.eup %4938 }
0x1f3b   :  { %v3252_v16 = vadd.f32 1.0, %v4939_v14 }
0x1f3d   :  { %4942 = vrcp.f32 %v3252_v16 }
0x1f3e   :  { %v4941_v17 = vpop.eup %4940 }
0x1f3f   :  { %v3145_v20 = vadd.f32 1.0, %v4941_v17 }
0x1f41   :  { %4944 = vrcp.f32 %v3145_v20 }
0x1f47   :  { %v4943_v21 = vpop.eup %4942 }
0x1f48   :  { %v3266_v38 = vsub.f32 1.0, %v4943_v21  ;;  %v3273_v40 = vmul.f32 %v4943_v21, %v3173_v53 }
0x1f4b   :  { %v4945_v28 = vpop.eup %4944 }
0x1f4c   :  { %v3158_v22 = vsub.f32 1.0, %v4945_v28 }
0x1f9e   :  { %v3257_v23 = vpop.permute.xlu1 %3256 }
0x1f9f   :  { %v3259_v24 = vmul.f32 %v4943_v21, %v3257_v23 }
0x1fa1   :  { %3261 = vrot.lane.b32.xlu1 %v3259_v24, %s5144_s2 }
0x1fa2   :  { %v3149_v29 = vpop.permute.xlu0 %3148 }
0x1fa3   :  { %v3151_v19 = vmul.f32 %v4945_v28, %v3149_v29 }
0x1fa5   :  { %3153 = vrot.lane.b32.xlu0 %v3151_v19, %s5144_s2 }
0x2013   :  { %v3262_v6 = vpop.permute.xlu1 %3261 }
0x2014   :  { %v3264_v31 = vadd.f32 %v3262_v6, %v5686_v7  ;;  %v3164_v7 = vrot.slane %v5766_v55, 6 }
0x2016   :  { %4946 = vtanh.f32 %v3264_v31  ;;  %v3166_v44 = vmul.f32 %v4945_v28, %v3164_v7 }
0x2017   :  { %v3154_v26 = vpop.permute.xlu0 %3153 }
0x2018   :  { %v3156_v10 = vadd.f32 %v3154_v26, %v5684_v43 }
0x201a   :  { %4948 = vtanh.f32 %v3156_v10 }
0x2020   :  { %v4947_v32 = vpop.eup %4946 }
0x2021   :  { %3268 = vrot.lane.b32.xlu1 %v4947_v32, %s5153_s26 }
0x2024   :  { %v4949_v34 = vpop.eup %4948 }
0x2025   :  { %3160 = vrot.lane.b32.xlu0 %v4949_v34, %s5153_s26 }
0x2093   :  { %v3269_v39 = vpop.permute.xlu1 %3268 }
0x2094   :  { %v3271_v41 = vmul.f32 %v3269_v39, %v3266_v38 }
0x2096   :  { %v5793_v18 = vadd.f32 %v3273_v40, %v3271_v41 }
0x2097   :  { %v3161_v15 = vpop.permute.xlu0 %3160 }
0x2098   :  { %v3163_v60 = vmul.f32 %v3161_v15, %v3158_v22  ;;  %3276 = vrot.lane.b32.xlu1 %v5793_v18, %s5153_s26  ;;  %v3485_v24 = vrot.slane %v5793_v18, 2 }
0x209a   :  { %v5798_v43 = vadd.f32 %v3166_v44, %v3163_v60 }
0x209c   :  { %v3280_v51 = vrot.slane %v5798_v43, 6 }
0x209e   :  { %3281 = vrot.lane.b32.xlu0 %v3280_v51, %s5153_s26 }
0x210a   :  { %v3277_v42 = vpop.permute.xlu1 %3276 }
0x210b   :  { %3279 = vst.msk [vmem:[#allocation3 + $0x8] sm:$0x3] %vm395_vm3, %v3277_v42  ;;  %4630 = vmatmul.mubr.msk.f32.vlgmr.msra.gmra.mrb[28].mxu1 %vm288_vm2, %v3277_v42 }
0x210c   :  { %4773 = vmatpush3.bf16.msra.mxu1 %v5638_v27  ;;  %4643 = vmatprep.mubr.msk.f32.mxu1 %vm5149_vm1, %v5150_v11 }
0x210d   :  { %4777 = vmatprep.subr.bf16.mxu1 %v5148_v9 }
0x2110   :  { %v3282_v46 = vpop.permute.xlu0 %3281 }
0x2111   :  { %4623 = vmatmul.mubr.msk.f32.vlgmr.msra.gmra.mrb[28].mxu0 %vm288_vm2, %v3282_v46 }
0x2112   :  { %4770 = vmatpush3.bf16.msra.mxu0 %v5636_v25  ;;  %4636 = vmatprep.mubr.msk.f32.mxu0 %vm5149_vm1, %v5150_v11 }
0x2113   :  { %4774 = vmatprep.subr.bf16.mxu0 %v5148_v9 }
0x21de   :  { %v3455_v45 = vpop.f32.mrb[28].mxu1 }
0x21df   :  { %v3456_v47 = vadd.f32 %v5678_v37, %v3455_v45  ;;  %v4631_v13 = vpop.f32.mrb[29].mxu1 }
0x21e1   :  { %v3460_v48 = vrot.slane %v3456_v47, 2 }
0x21e3   :  { %3469 = vrot.lane.b32.xlu1 %v3460_v48, %s5151_s4  ;;  %v3462_v56 = vadd.f32 %v3460_v48, %v5668_v35 }
0x21e4   :  { %v3351_v50 = vpop.f32.mrb[28].mxu0 }
0x21e5   :  { %v3352_v52 = vadd.f32 %v5673_v36, %v3351_v50  ;;  %v4624_v53 = vpop.f32.mrb[29].mxu0  ;;  %v4281_v57 = vmul.f32 -1.442695, %v3462_v56 }
0x21e7   :  { %3363 = vrot.lane.b32.xlu0 %v3352_v52, %s5151_s4  ;;  %v3355_v58 = vadd.f32 %v3352_v52, %v5666_v30  ;;  %4950 = vpow2.f32 %v4281_v57 }
0x21e9   :  { %v4279_v59 = vmul.f32 -1.442695, %v3355_v58 }
0x21eb   :  { %4952 = vpow2.f32 %v4279_v59 }
0x21f1   :  { %v4951_v62 = vpop.eup %4950 }
0x21f2   :  { %v3466_v63 = vadd.f32 1.0, %v4951_v62 }
0x21f4   :  { %4954 = vrcp.f32 %v3466_v63 }
0x21f5   :  { %v4953_v1 = vpop.eup %4952 }
0x21f6   :  { %v3359_v3 = vadd.f32 1.0, %v4953_v1 }
0x21f8   :  { %4956 = vrcp.f32 %v3359_v3 }
0x21fe   :  { %v4955_v4 = vpop.eup %4954 }
0x21ff   :  { %v3479_v28 = vsub.f32 1.0, %v4955_v4  ;;  %v3487_v19 = vmul.f32 %v4955_v4, %v3485_v24 }
0x2202   :  { %v4957_v12 = vpop.eup %4956 }
0x2203   :  { %v3373_v26 = vsub.f32 1.0, %v4957_v12  ;;  %v3380_v34 = vmul.f32 %v4957_v12, %v3280_v51 }
0x2255   :  { %v3470_v54 = vpop.permute.xlu1 %3469 }
0x2256   :  { %v3472_v5 = vmul.f32 %v4955_v4, %v3470_v54 }
0x2258   :  { %3474 = vrot.lane.b32.xlu1 %v3472_v5, %s5144_s2 }
0x2259   :  { %v3364_v33 = vpop.permute.xlu0 %3363 }
0x225a   :  { %v3366_v2 = vmul.f32 %v4957_v12, %v3364_v33 }
0x225c   :  { %3368 = vrot.lane.b32.xlu0 %v3366_v2, %s5144_s2 }
0x22ca   :  { %v3475_v14 = vpop.permute.xlu1 %3474 }
0x22cb   :  { %v3477_v16 = vadd.f32 %v3475_v14, %v5668_v35 }
0x22cd   :  { %4958 = vtanh.f32 %v3477_v16 }
0x22ce   :  { %v3369_v17 = vpop.permute.xlu0 %3368 }
0x22cf   :  { %v3371_v20 = vadd.f32 %v3369_v17, %v5666_v30 }
0x22d1   :  { %4960 = vtanh.f32 %v3371_v20 }
0x22d7   :  { %v4959_v21 = vpop.eup %4958 }
0x22d8   :  { %3481 = vrot.lane.b32.xlu1 %v4959_v21, %s5153_s26 }
0x22db   :  { %v4961_v23 = vpop.eup %4960 }
0x22dc   :  { %3375 = vrot.lane.b32.xlu0 %v4961_v23, %s5153_s26 }
0x234a   :  { %v3482_v29 = vpop.permute.xlu1 %3481 }
0x234b   :  { %v3484_v6 = vmul.f32 %v3482_v29, %v3479_v28 }
0x234d   :  { %v5826_v31 = vadd.f32 %v3487_v19, %v3484_v6 }
0x234e   :  { %v3376_v10 = vpop.permute.xlu0 %3375 }
0x234f   :  { %v3601_v32 = vrot.slane %v5826_v31, 6  ;;  %v3378_v38 = vmul.f32 %v3376_v10, %v3373_v26  ;;  %v3702_v33 = vrot.slane %v5826_v31, 2 }
0x2351   :  { %v5829_v39 = vadd.f32 %v3380_v34, %v3378_v38  ;;  %3602 = vrot.lane.b32.xlu1 %v3601_v32, %s5153_s26 }
0x2353   :  { %3383 = vrot.lane.b32.xlu0 %v5829_v39, %s5153_s26  ;;  %v3592_v14 = vrot.slane %v5829_v39, 6 }
0x23c3   :  { %v3603_v40 = vpop.permute.xlu1 %3602 }
0x23c4   :  { %4644 = vmatmul.mubr.msk.f32.vlgmr.msra.gmra.mrb[30].mxu1 %vm288_vm2, %v3603_v40 }
0x23c5   :  { %v3384_v41 = vpop.permute.xlu0 %3383  ;;  %4779 = vmatpush3.bf16.msra.mxu1 %v5638_v27  ;;  %4657 = vmatprep.mubr.msk.f32.mxu1 %vm5149_vm1, %v5150_v11 }
0x23c6   :  { %3386 = vst.msk [vmem:[#allocation2 + $0x8] sm:$0x3] %vm395_vm3, %v3384_v41  ;;  %4637 = vmatmul.mubr.msk.f32.vlgmr.msra.gmra.mrb[30].mxu0 %vm288_vm2, %v3384_v41  ;;  %4783 = vmatprep.subr.bf16.mxu1 %v5148_v9 }
0x23c7   :  { %4776 = vmatpush3.bf16.msra.mxu0 %v5636_v25  ;;  %4650 = vmatprep.mubr.msk.f32.mxu0 %vm5149_vm1, %v5150_v11 }
0x23c8   :  { %4780 = vmatprep.subr.bf16.mxu0 %v5148_v9 }
0x2497   :  { %v3672_v18 = vpop.f32.mrb[30].mxu1 }
0x2498   :  { %v3673_v22 = vadd.f32 %v5678_v37, %v3672_v18  ;;  %v4645_v7 = vpop.f32.mrb[31].mxu1 }
0x2499   :  { %v3562_v15 = vpop.f32.mrb[30].mxu0 }
0x249a   :  { %v3677_v44 = vrot.slane %v3673_v22, 4  ;;  %v3563_v60 = vadd.f32 %v5673_v36, %v3562_v15  ;;  %v4638_v51 = vpop.f32.mrb[31].mxu0 }
0x249c   :  { %v3567_v42 = vrot.slane %v3563_v60, 6  ;;  %3686 = vrot.lane.b32.xlu1 %v3677_v44, %s5151_s4  ;;  %v3679_v46 = vadd.f32 %v3677_v44, %v5668_v35 }
0x249e   :  { %3576 = vrot.lane.b32.xlu0 %v3567_v42, %s5151_s4  ;;  %v3569_v45 = vadd.f32 %v3567_v42, %v5666_v30  ;;  %v4285_v47 = vmul.f32 -1.442695, %v3679_v46 }
0x24a0   :  { %v4283_v9 = vmul.f32 -1.442695, %v3569_v45  ;;  %4962 = vpow2.f32 %v4285_v47 }
0x24a2   :  { %4964 = vpow2.f32 %v4283_v9 }
0x24aa   :  { %v4963_v13 = vpop.eup %4962 }
0x24ab   :  { %v3683_v50 = vadd.f32 1.0, %v4963_v13 }
0x24ac   :  { %v4965_v48 = vpop.eup %4964 }
0x24ad   :  { %v3573_v52 = vadd.f32 1.0, %v4965_v48  ;;  %4966 = vrcp.f32 %v3683_v50 }
0x24af   :  { %4968 = vrcp.f32 %v3573_v52 }
0x24b7   :  { %v4967_v53 = vpop.eup %4966 }
0x24b8   :  { %v3696_v12 = vsub.f32 1.0, %v4967_v53  ;;  %v3704_v16 = vmul.f32 %v4967_v53, %v3702_v33 }
0x24b9   :  { %v4969_v58 = vpop.eup %4968 }
0x24ba   :  { %v3586_v20 = vsub.f32 1.0, %v4969_v58  ;;  %v3594_v24 = vmul.f32 %v4969_v58, %v3592_v14 }
0x250e   :  { %v3687_v56 = vpop.permute.xlu1 %3686 }
0x250f   :  { %v3689_v57 = vmul.f32 %v4967_v53, %v3687_v56 }
0x2510   :  { %v3577_v59 = vpop.permute.xlu0 %3576 }
0x2511   :  { %v3579_v62 = vmul.f32 %v4969_v58, %v3577_v59  ;;  %3691 = vrot.lane.b32.xlu1 %v3689_v57, %s5144_s2 }
0x2513   :  { %3581 = vrot.lane.b32.xlu0 %v3579_v62, %s5144_s2 }
0x2583   :  { %v3692_v63 = vpop.permute.xlu1 %3691 }
0x2584   :  { %v3694_v1 = vadd.f32 %v3692_v63, %v5668_v35 }
0x2585   :  { %v3582_v3 = vpop.permute.xlu0 %3581 }
0x2586   :  { %4970 = vtanh.f32 %v3694_v1  ;;  %v3584_v4 = vadd.f32 %v3582_v3, %v5666_v30 }
0x2588   :  { %4972 = vtanh.f32 %v3584_v4 }
0x2590   :  { %v4971_v54 = vpop.eup %4970 }
0x2591   :  { %3698 = vrot.lane.b32.xlu1 %v4971_v54, %s5153_s26 }
0x2592   :  { %v4973_v5 = vpop.eup %4972 }
0x2593   :  { %3588 = vrot.lane.b32.xlu0 %v4973_v5, %s5153_s26 }
0x2603   :  { %v3699_v2 = vpop.permute.xlu1 %3698 }
0x2604   :  { %v3701_v17 = vmul.f32 %v3699_v2, %v3696_v12 }
0x2605   :  { %v3589_v21 = vpop.permute.xlu0 %3588 }
0x2606   :  { %v5859_v23 = vadd.f32 %v3704_v16, %v3701_v17  ;;  %v3591_v28 = vmul.f32 %v3589_v21, %v3586_v20 }
0x2608   :  { %v3821_v29 = vrot.slane %v5859_v23, 4  ;;  %v5862_v19 = vadd.f32 %v3594_v24, %v3591_v28  ;;  %v3922_v59 = vrot.slane %v5859_v23, 2 }
0x260a   :  { %v3711_v6 = vrot.slane %v5862_v19, 2  ;;  %3822 = vrot.lane.b32.xlu1 %v3821_v29, %s5153_s26  ;;  %v3812_v4 = vrot.slane %v5862_v19, 6 }
0x260c   :  { %3712 = vrot.lane.b32.xlu0 %v3711_v6, %s5153_s26 }
0x267c   :  { %v3823_v26 = vpop.permute.xlu1 %3822 }
0x267d   :  { %4658 = vmatmul.mubr.msk.f32.vlgmr.msra.gmra.mrb[32].mxu1 %vm288_vm2, %v3823_v26 }
0x267e   :  { %v3713_v10 = vpop.permute.xlu0 %3712  ;;  %4785 = vmatpush3.bf16.msra.mxu1 %v5638_v27  ;;  %4671 = vmatprep.mubr.msk.f32.mxu1 %vm5149_vm1, %v5150_v11 }
0x267f   :  { %4651 = vmatmul.mubr.msk.f32.vlgmr.msra.gmra.mrb[32].mxu0 %vm288_vm2, %v3713_v10 }
0x2680   :  { %4782 = vmatpush3.bf16.msra.mxu0 %v5636_v25  ;;  %4664 = vmatprep.mubr.msk.f32.mxu0 %vm5149_vm1, %v5150_v11 }
0x2750   :  { %v3892_v32 = vpop.f32.mrb[32].mxu1 }
0x2751   :  { %v3893_v34 = vadd.f32 %v5678_v37, %v3892_v32  ;;  %v4659_v38 = vpop.f32.mrb[33].mxu1 }
0x2752   :  { %v3782_v39 = vpop.f32.mrb[32].mxu0 }
0x2753   :  { %v3897_v40 = vrot.slane %v3893_v34, 6  ;;  %v3783_v41 = vadd.f32 %v5673_v36, %v3782_v39  ;;  %v4652_v18 = vpop.f32.mrb[33].mxu0 }
0x2755   :  { %v3787_v27 = vrot.slane %v3783_v41, 4  ;;  %3906 = vrot.lane.b32.xlu1 %v3897_v40, %s5151_s4  ;;  %v3899_v22 = vadd.f32 %v3897_v40, %v5668_v35 }
0x2757   :  { %3796 = vrot.lane.b32.xlu0 %v3787_v27, %s5151_s4  ;;  %v3789_v25 = vadd.f32 %v3787_v27, %v5666_v30  ;;  %v4289_v7 = vmul.f32 -1.442695, %v3899_v22 }
0x2759   :  { %v4287_v11 = vmul.f32 -1.442695, %v3789_v25  ;;  %4974 = vpow2.f32 %v4289_v7 }
0x275b   :  { %4976 = vpow2.f32 %v4287_v11 }
0x2763   :  { %v4975_v15 = vpop.eup %4974 }
0x2764   :  { %v3903_v60 = vadd.f32 1.0, %v4975_v15 }
0x2765   :  { %v4977_v44 = vpop.eup %4976 }
0x2766   :  { %v3793_v51 = vadd.f32 1.0, %v4977_v44  ;;  %4978 = vrcp.f32 %v3903_v60 }
0x2768   :  { %4980 = vrcp.f32 %v3793_v51 }
0x2770   :  { %v4979_v42 = vpop.eup %4978 }
0x2771   :  { %v3916_v58 = vsub.f32 1.0, %v4979_v42  ;;  %v3924_v63 = vmul.f32 %v4979_v42, %v3922_v59 }
0x2772   :  { %v4981_v47 = vpop.eup %4980 }
0x2773   :  { %v3806_v3 = vsub.f32 1.0, %v4981_v47  ;;  %v3814_v12 = vmul.f32 %v4981_v47, %v3812_v4 }
0x27c7   :  { %v3907_v46 = vpop.permute.xlu1 %3906 }
0x27c8   :  { %v3909_v45 = vmul.f32 %v4979_v42, %v3907_v46 }
0x27c9   :  { %v3797_v9 = vpop.permute.xlu0 %3796 }
0x27ca   :  { %v3799_v13 = vmul.f32 %v4981_v47, %v3797_v9  ;;  %3911 = vrot.lane.b32.xlu1 %v3909_v45, %s5144_s2 }
0x27cc   :  { %3801 = vrot.lane.b32.xlu0 %v3799_v13, %s5144_s2 }
0x283c   :  { %v3912_v48 = vpop.permute.xlu1 %3911 }
0x283d   :  { %v3914_v50 = vadd.f32 %v3912_v48, %v5668_v35 }
0x283e   :  { %v3802_v52 = vpop.permute.xlu0 %3801 }
0x283f   :  { %4982 = vtanh.f32 %v3914_v50  ;;  %v3804_v53 = vadd.f32 %v3802_v52, %v5666_v30 }
0x2841   :  { %4984 = vtanh.f32 %v3804_v53 }
0x2849   :  { %v4983_v56 = vpop.eup %4982 }
0x284a   :  { %3918 = vrot.lane.b32.xlu1 %v4983_v56, %s5153_s26 }
0x284b   :  { %v4985_v57 = vpop.eup %4984 }
0x284c   :  { %3808 = vrot.lane.b32.xlu0 %v4985_v57, %s5153_s26 }
0x28bc   :  { %v3919_v62 = vpop.permute.xlu1 %3918 }
0x28bd   :  { %v3921_v1 = vmul.f32 %v3919_v62, %v3916_v58 }
0x28be   :  { %v3809_v54 = vpop.permute.xlu0 %3808 }
0x28bf   :  { %v5889_v5 = vadd.f32 %v3924_v63, %v3921_v1  ;;  %v3811_v33 = vmul.f32 %v3809_v54, %v3806_v3 }
0x28c1   :  { %v4041_v2 = vrot.slane %v5889_v5, 2  ;;  %v5892_v14 = vadd.f32 %v3814_v12, %v3811_v33 }
0x28c3   :  { %v3931_v16 = vrot.slane %v5892_v14, 4  ;;  %4042 = vrot.lane.b32.xlu1 %v4041_v2, %s5153_s26 }
0x28c5   :  { %3932 = vrot.lane.b32.xlu0 %v3931_v16, %s5153_s26 }
0x2935   :  { %v4043_v17 = vpop.permute.xlu1 %4042 }
0x2936   :  { %4672 = vmatmul.mubr.msk.f32.vlgmr.msra.gmra.mrb[34].mxu1 %vm288_vm2, %v4043_v17 }
0x2937   :  { %v3933_v20 = vpop.permute.xlu0 %3932 }
0x2938   :  { %4665 = vmatmul.mubr.msk.f32.vlgmr.msra.gmra.mrb[34].mxu0 %vm288_vm2, %v3933_v20 }
0x2a09   :  { %v4112_v21 = vpop.f32.mrb[34].mxu1 }
0x2a0a   :  { %v4113_v24 = vadd.f32 %v5678_v37, %v4112_v21  ;;  %v4673_v28 = vpop.f32.mrb[35].mxu1 }
0x2a0b   :  { %v4002_v29 = vpop.f32.mrb[34].mxu0 }
0x2a0c   :  { %v4003_v6 = vadd.f32 %v5673_v36, %v4002_v29  ;;  %4124 = vrot.lane.b32.xlu1 %v4113_v24, %s5151_s4  ;;  %v4666_v26 = vpop.f32.mrb[35].mxu0  ;;  %v4116_v32 = vadd.f32 %v4113_v24, %v5668_v35 }
0x2a0e   :  { %v4007_v10 = vrot.slane %v4003_v6, 2  ;;  %v4293_v34 = vmul.f32 -1.442695, %v4116_v32 }
0x2a10   :  { %4016 = vrot.lane.b32.xlu0 %v4007_v10, %s5151_s4  ;;  %v4009_v38 = vadd.f32 %v4007_v10, %v5666_v30  ;;  %4986 = vpow2.f32 %v4293_v34 }
0x2a12   :  { %v4291_v39 = vmul.f32 -1.442695, %v4009_v38 }
0x2a14   :  { %4988 = vpow2.f32 %v4291_v39 }
0x2a1a   :  { %v4987_v40 = vpop.eup %4986 }
0x2a1b   :  { %v4120_v37 = vadd.f32 1.0, %v4987_v40 }
0x2a1d   :  { %4990 = vrcp.f32 %v4120_v37 }
0x2a1e   :  { %v4989_v41 = vpop.eup %4988 }
0x2a1f   :  { %v4013_v18 = vadd.f32 1.0, %v4989_v41 }
0x2a21   :  { %4992 = vrcp.f32 %v4013_v18 }
0x2a27   :  { %v4991_v36 = vpop.eup %4990 }
0x2a2b   :  { %v4993_v25 = vpop.eup %4992 }
0x2a7e   :  { %v4125_v27 = vpop.permute.xlu1 %4124 }
0x2a7f   :  { %v4127_v22 = vmul.f32 %v4991_v36, %v4125_v27 }
0x2a81   :  { %4129 = vrot.lane.b32.xlu1 %v4127_v22, %s5144_s2 }
0x2a82   :  { %v4017_v7 = vpop.permute.xlu0 %4016 }
0x2a83   :  { %v4019_v11 = vmul.f32 %v4993_v25, %v4017_v7 }
0x2a85   :  { %4021 = vrot.lane.b32.xlu0 %v4019_v11, %s5144_s2 }
0x2af3   :  { %v4130_v15 = vpop.permute.xlu1 %4129 }
0x2af4   :  { %v4132_v44 = vadd.f32 %v4130_v15, %v5668_v35 }
0x2af6   :  { %4994 = vtanh.f32 %v4132_v44 }
0x2af7   :  { %v4022_v60 = vpop.permute.xlu0 %4021 }
0x2af8   :  { %v4024_v51 = vadd.f32 %v4022_v60, %v5666_v30  ;;  %v4134_v30 = vsub.f32 1.0, %v4991_v36 }
0x2afa   :  { %4996 = vtanh.f32 %v4024_v51 }
0x2b00   :  { %v4995_v42 = vpop.eup %4994 }
0x2b01   :  { %4136 = vrot.lane.b32.xlu1 %v4995_v42, %s5153_s26 }
0x2b04   :  { %v4997_v46 = vpop.eup %4996 }
0x2b05   :  { %2622 = vrot.lane.b32.xlu1 %v5698_v8, %s5153_s26  ;;  %4028 = vrot.lane.b32.xlu0 %v4997_v46, %s5153_s26  ;;  %v4141_v8 = vmul.f32 %v4991_v36, %v4041_v2 }
0x2b09   :  { %3059 = vrot.lane.b32.xlu1 %v5763_v49, %s5153_s26  ;;  %2839 = vrot.lane.b32.xlu0 %v5731_v61, %s5153_s26 }
0x2b0d   :  { %3707 = vrot.lane.b32.xlu1 %v5859_v23, %s5153_s26  ;;  %3490 = vrot.lane.b32.xlu0 %v5826_v31, %s5153_s26 }
0x2b11   :  { %3927 = vrot.lane.b32.xlu0 %v5889_v5, %s5153_s26 }
0x2b15   :  { %2729 = vrot.lane.b32.xlu0 %v5733_v0, %s5153_s26  ;;  %v4026_v0 = vsub.f32 1.0, %v4993_v25 }
0x2b19   :  { %3169 = vrot.lane.b32.xlu0 %v5798_v43, %s5153_s26  ;;  %v4032_v43 = vrot.slane %v5892_v14, 6 }
0x2b1b   :  { %v4034_v50 = vmul.f32 %v4993_v25, %v4032_v43 }
0x2b1d   :  { %3817 = vrot.lane.b32.xlu0 %v5892_v14, %s5153_s26 }
0x2b73   :  { %v4137_v35 = vpop.permute.xlu1 %4136 }
0x2b74   :  { %v4139_v61 = vmul.f32 %v4137_v35, %v4134_v30 }
0x2b76   :  { %v4142_v49 = vadd.f32 %v4141_v8, %v4139_v61 }
0x2b77   :  { %v2623_v23 = vpop.permute.xlu1 %2622  ;;  %v4029_v45 = vpop.permute.xlu0 %4028 }
0x2b78   :  { %2625 = vst.msk [vmem:[#allocation3 + $0x8] sm:$0xc0] %vm512_vm4, %v2623_v23  ;;  %4144 = vrot.lane.b32.xlu1 %v4142_v49, %s5153_s26  ;;  %v4031_v9 = vmul.f32 %v4029_v45, %v4026_v0 }
0x2b7a   :  { %v4035_v52 = vadd.f32 %v4034_v50, %v4031_v9 }
0x2b7b   :  { %v3060_v31 = vpop.permute.xlu1 %3059  ;;  %v2840_v47 = vpop.permute.xlu0 %2839 }
0x2b7c   :  { %3062 = vst.msk [vmem:[#allocation3 + $0x8] sm:$0xc] %vm620_vm5, %v3060_v31  ;;  %2949 = vrot.lane.b32.xlu1 %v5766_v55, %s5153_s26 }
0x2b7d   :  { %2842 = vst.msk [vmem:[#allocation3 + $0x8] sm:$0x30] %vm731_vm6, %v2840_v47 }
0x2b7f   :  { %v3708_v13 = vpop.permute.xlu1 %3707  ;;  %v3491_v48 = vpop.permute.xlu0 %3490 }
0x2b80   :  { %3710 = vst.msk [vmem:[#allocation3] sm:$0x30] %vm731_vm6, %v3708_v13  ;;  %3597 = vrot.lane.b32.xlu1 %v5862_v19, %s5153_s26 }
0x2b81   :  { %3493 = vst.msk [vmem:[#allocation3] sm:$0xc0] %vm512_vm4, %v3491_v48 }
0x2b83   :  { %v3928_v53 = vpop.permute.xlu0 %3927 }
0x2b84   :  { %3930 = vst.msk [vmem:[#allocation3] sm:$0xc] %vm620_vm5, %v3928_v53  ;;  %4037 = vrot.lane.b32.xlu1 %v4035_v52, %s5153_s26  ;;  %v4155_v56 = vld [vmem:[#allocation3 + $0x8] sm:$0xff] }
0x2b87   :  { %v2730_v55 = vpop.permute.xlu0 %2729 }
0x2b88   :  { %2732 = vst.msk [vmem:[#allocation2] sm:$0xc] %vm620_vm5, %v2730_v55  ;;  %4160 = vrot.lane.b32.xlu1 %v4155_v56, %s5152_s5 }
0x2b8b   :  { %v3170_v57 = vpop.permute.xlu0 %3169 }
0x2b8c   :  { %3172 = vst.msk [vmem:[#allocation2] sm:$0xc0] %vm512_vm4, %v3170_v57 }
0x2b8f   :  { %v3818_v58 = vpop.permute.xlu0 %3817 }
0x2b90   :  { %3820 = vst.msk [vmem:[#allocation2 + $0x8] sm:$0x30] %vm731_vm6, %v3818_v58 }
0x2bea   :  { %v4145_v59 = vpop.permute.xlu1 %4144 }
0x2beb   :  { %4147 = vst.msk [vmem:[#allocation3] sm:$0x3] %vm395_vm3, %v4145_v59  ;;  %4151 = vst.msk [vmem:[#allocation13 + $0x6] sm:$0x3] %vm395_vm3, %v4145_v59 }
0x2bee   :  { %v2950_v19 = vpop.permute.xlu1 %2949 }
0x2bef   :  { %2952 = vst.msk [vmem:[#allocation2] sm:$0x30] %vm731_vm6, %v2950_v19 }
0x2bf2   :  { %v3598_v62 = vpop.permute.xlu1 %3597  ;;  %v4154_v63 = vld [vmem:[#allocation3] sm:$0xff] }
0x2bf3   :  { %3600 = vst.msk [vmem:[#allocation2 + $0x8] sm:$0xc] %vm620_vm5, %v3598_v62  ;;  %4158 = vrot.lane.b32.xlu0 %v4154_v63, %s5152_s5 }
0x2bf6   :  { %v4038_v1 = vpop.permute.xlu1 %4037 }
0x2bf7   :  { %4040 = vst.msk [vmem:[#allocation2 + $0x8] sm:$0xc0] %vm512_vm4, %v4038_v1  ;;  %4149 = vst.msk [vmem:[#allocation13 - $0x2] sm:$0xc0] %vm512_vm4, %v4038_v1 }
0x2bf8   :  { %5097 = shalt.err (!%p5094_p8)
}
0x2bf9   :  { %s5098_s23 = scalar_lea.hbm %s5996_s11, 128 }
0x2bfa   :  { %p5099_p9 = scmp.ne.s32.totalorder %s5996_s11, %s5098_s23  ;;  %p5102_p10 = scmp.lt.u32.totalorder %s5098_s23, %s5996_s11 }
0x2bfc   :  { %p5104_p11 = pnand %p5102_p10, %p5099_p9 }
0x2bfe   :  { %5107 = shalt.err (!%p5104_p11)
}
0x2bff   :  { %4192 = dma.vmem_to_hbm [thread:$0]  %s4187_s9, 128, %s5996_s11, [#allocation14], %s5144_s2, %s5144_s2, %s5145_s18   ;;  %vm4166_vm7 = vcmask 261120   ;;  %v4161_v3 = vpop.permute.xlu1 %4160  ;;  %v4153_v4 = vld [vmem:[#allocation2 + $0x8] sm:$0xff]  ;;  %v4152_v5 = vld [vmem:[#allocation2] sm:$0xff] }
0x2c00   :  { %v4165_v54 = vsel %vm288_vm2, %v4153_v4, %v4161_v3  ;;  %s5155_s15 = smov [#allocation12]  }
0x2c01   :  { %4168 = vst.msk [vmem:[#allocation12 + $0x8] sm:$0xff] %vm4166_vm7, %v4165_v54  ;;  %s4174_s6 = sshll.u32 %s5155_s15, 4  ;;  %s4175_s6 = int_to_ptr.vmem [resolvable:$true] %s4174_s6 }
0x2c02   :  { %s5108_s4 = scalar_lea.vmem %s4175_s6, 256  ;;  %p5113_p13 = scmp.lt.s32.totalorder %s4175_s6, %s4175_s6 }
0x2c03   :  { %p5109_p12 = scmp.ne.s32.totalorder %s4175_s6, %s5108_s4  ;;  %p5114_p0 = scmp.lt.s32.totalorder %s5108_s4, %s5108_s4 }
0x2c05   :  { %p5115_p1 = por %p5114_p0, %p5113_p13 }
0x2c07   :  { %p5116_p2 = pnand %p5115_p1, %p5109_p12 }
0x2c65   :  { %v4159_v12 = vpop.permute.xlu0 %4158 }
0x2c66   :  { %v4164_v33 = vsel %vm288_vm2, %v4152_v5, %v4159_v12 }
0x2c67   :  { %4167 = vst.msk [vmem:[#allocation12] sm:$0xff] %vm4166_vm7, %v4164_v33 }
0x2c68   :  { %5119 = shalt.err (!%p5116_p2)
}
0x2c69   :  { %s5120_s18 = scalar_lea.hbm %s5995_s10, 256 }
0x2c6a   :  { %p5121_p3 = scmp.ne.s32.totalorder %s5995_s10, %s5120_s18  ;;  %p5124_p4 = scmp.lt.u32.totalorder %s5120_s18, %s5995_s10 }
0x2c6c   :  { %p5126_p5 = pnand %p5124_p4, %p5121_p3 }
0x2c6e   :  { %5129 = shalt.err (!%p5126_p5)
}
0x2c6f   :  { %4180 = dma.vmem_to_hbm [thread:$0]  %s4175_s6, 256, %s5995_s10, [#allocation6], %s5141_s27, %s5141_s27, %s5142_s28  }
0x2c70   :  { %5136 = dma.done.wait [#allocation6], 256  }
0x2c71   :  { %5137 = vsyncadd [#allocation6], 4294967040 }
0x2c72   :  { %5138 = dma.done.wait [#allocation14], 128  }
0x2c73   :  { %5139 = vsyncadd [#allocation14], 4294967168 }
0x2c74   :  { %4199 = vsyncpa [#allocation5], 1 }
0x2c75   :  { %4200 = vsyncpa [#allocation8], 1 }
0x2c76   :  { %4201 = vsyncpa [#allocation11], 1 }
0x2c77   :  { %4202 = vsyncpa [#allocation6], 1 }
0x2c78   :  { %4203 = vsyncpa [#allocation14], 1 }

</bundles_post_ra>
